<compile_context>
chip_gen: v7x
topology: tpu7x:2x2x1
jax: 0.10.0
libtpu: 0.0.40
codegen_flags: <defaults>
</compile_context>

<pallas_src>
import jax
import jax.numpy as jnp
from jax.experimental import pallas as pl
from jax.experimental.pallas import tpu as pltpu

EPS = 1e-5


# ---------------------------------------------------------------------------
# Pallas kernel: 3x3 "same" conv (in-kernel im2col) + folded BN + ReLU,
# optionally with a fused 2x2 max-pool epilogue.
# ---------------------------------------------------------------------------
def _make_conv_kernel(H, W, TH, Cin, Cout, fuse_pool):
    """Returns a kernel operating on one (TH, W) row-tile of one image.

    Refs:
      xp_ref : (1, H+2, W+2, Cin)  bf16, zero-padded image (resident across row tiles)
      w_ref  : (9, Cin, Cout)      bf16, weights indexed by tap k = 3*kh + kw
      s_ref  : (1, Cout)           f32, folded BN scale
      b_ref  : (1, Cout)           f32, folded conv-bias + BN bias
      o_ref  : (1, TH, W, Cout)    conv+BN+ReLU output tile
      p_ref  : (1, TH//2, W//2, Cout)  (only when fuse_pool) 2x2 max-pooled tile
    """

    def kernel(xp_ref, w_ref, s_ref, b_ref, o_ref, *maybe_p):
        t = pl.program_id(1)
        row0 = pl.multiple_of(t * TH, TH)          # first (padded) input row of this tile

        # --- in-kernel im2col as 9 accumulated MXU dots (bf16 x bf16 -> f32) ---
        acc = jnp.zeros((TH * W, Cout), jnp.float32)
        for kh in range(3):
            for kw in range(3):
                tap = xp_ref[0, pl.ds(row0 + kh, TH), pl.ds(kw, W), :]   # (TH, W, Cin)
                acc = acc + jnp.dot(
                    tap.reshape(TH * W, Cin),
                    w_ref[3 * kh + kw],
                    preferred_element_type=jnp.float32,
                )

        # --- f32 epilogue: folded conv-bias + BatchNorm(eval), then ReLU ---
        y = jnp.maximum(acc * s_ref[...] + b_ref[...], 0.0)
        y3 = y.reshape(TH, W, Cout)
        o_ref[0] = y3.astype(o_ref.dtype)

        if fuse_pool:
            p_ref = maybe_p[0]
            # 2x2 max-pool straight from the f32 tile already in registers.
            for i in range(TH // 2):
                rowmax = jnp.maximum(y3[2 * i], y3[2 * i + 1])           # (W, Cout)
                for j in range(W // 2):
                    p_ref[0, i, j:j + 1, :] = jnp.maximum(
                        rowmax[2 * j:2 * j + 1, :],
                        rowmax[2 * j + 1:2 * j + 2, :],
                    )

    return kernel


# ---------------------------------------------------------------------------
# Wrapper: layout / parameter folding (plain JAX glue) + pallas_call
# ---------------------------------------------------------------------------
def conv3x3_bn_relu(x_nhwc, w_oihw, conv_bias, gamma, beta, run_mean, run_var,
                    *, fuse_pool=False, out_dtype=jnp.float32, row_tile=8):
    """3x3 'same' conv + eval-mode BN + ReLU (+ optional fused 2x2 max-pool).

    NHWC in / NHWC out. MXU operands are bf16, accumulation and epilogue are f32.
    """
    N, H, W, Cin = x_nhwc.shape
    Cout = w_oihw.shape[0]

    TH = row_tile if (H % row_tile == 0) else H
    assert H % TH == 0
    assert W % 8 == 0, "W should be a multiple of 8 for clean (sublane) tiling"
    if fuse_pool:
        assert TH % 2 == 0 and W % 2 == 0

    # 1-px zero pad in bf16 (the only inter-kernel XLA op; tiny vs. removed im2col traffic).
    xp = jnp.pad(x_nhwc.astype(jnp.bfloat16), ((0, 0), (1, 1), (1, 1), (0, 0)))

    # OIHW -> (tap=kh*3+kw, Cin, Cout), bf16 for the MXU.
    w = jnp.transpose(w_oihw, (2, 3, 1, 0)).reshape(9, Cin, Cout).astype(jnp.bfloat16)

    # Fold conv bias + BatchNorm (running stats) into per-channel scale / bias (f32).
    inv_std = 1.0 / jnp.sqrt(run_var.astype(jnp.float32) + EPS)
    scale = (gamma * inv_std).astype(jnp.float32)
    bias = (beta + (conv_bias - run_mean) * scale).astype(jnp.float32)
    scale = scale.reshape(1, Cout)
    bias = bias.reshape(1, Cout)

    out_shapes = [jax.ShapeDtypeStruct((N, H, W, Cout), out_dtype)]
    out_specs = [pl.BlockSpec((1, TH, W, Cout), lambda n, t: (n, t, 0, 0))]
    if fuse_pool:
        out_shapes.append(jax.ShapeDtypeStruct((N, H // 2, W // 2, Cout), jnp.float32))
        out_specs.append(
            pl.BlockSpec((1, TH // 2, W // 2, Cout), lambda n, t: (n, t, 0, 0)))

    kernel = _make_conv_kernel(H, W, TH, Cin, Cout, fuse_pool)

    outs = pl.pallas_call(
        kernel,
        out_shape=tuple(out_shapes) if fuse_pool else out_shapes[0],
        grid_spec=pltpu.PrefetchScalarGridSpec(
            num_scalar_prefetch=0,
            grid=(N, H // TH),
            in_specs=[
                # full padded image per n; same block across t -> fetched once, resident
                pl.BlockSpec((1, H + 2, W + 2, Cin), lambda n, t: (n, 0, 0, 0)),
                pl.BlockSpec((9, Cin, Cout), lambda n, t: (0, 0, 0)),
                pl.BlockSpec((1, Cout), lambda n, t: (0, 0)),
                pl.BlockSpec((1, Cout), lambda n, t: (0, 0)),
            ],
            out_specs=tuple(out_specs) if fuse_pool else out_specs[0],
        ),
        compiler_params=pltpu.CompilerParams(
            dimension_semantics=("parallel", "parallel"),
            vmem_limit_bytes=32 * 1024 * 1024,
        ),
    )(xp, w, scale, bias)
    return outs


# ---------------------------------------------------------------------------
# encoder_block forward (attention_type=None, the module default)
# ---------------------------------------------------------------------------
def encoder_block_forward(x_nchw, p_):
    x = jnp.transpose(x_nchw, (0, 2, 3, 1)).astype(jnp.bfloat16)   # NCHW -> NHWC (bf16 operands)
    h = conv3x3_bn_relu(
        x, p_["w1"], p_["b1"], p_["g1"], p_["be1"], p_["m1"], p_["v1"],
        fuse_pool=False, out_dtype=jnp.bfloat16)
    x2, pooled = conv3x3_bn_relu(
        h, p_["w2"], p_["b2"], p_["g2"], p_["be2"], p_["m2"], p_["v2"],
        fuse_pool=True, out_dtype=jnp.float32)
    # back to PyTorch NCHW convention for both returned tensors
    return jnp.transpose(x2, (0, 3, 1, 2)), jnp.transpose(pooled, (0, 3, 1, 2))


# ---------------------------------------------------------------------------
# Deterministic parameters + pure-JAX reference for validation
# ---------------------------------------------------------------------------
def init_params(key, in_c, out_c):
    ks = jax.random.split(key, 8)
    return {
        "w1": 0.1 * jax.random.normal(ks[0], (out_c, in_c, 3, 3), jnp.float32),
        "b1": 0.05 * jax.random.normal(ks[1], (out_c,), jnp.float32),
        "g1": 1.0 + 0.1 * jax.random.normal(ks[2], (out_c,), jnp.float32),
        "be1": 0.05 * jax.random.normal(ks[3], (out_c,), jnp.float32),
        "m1": 0.02 * jnp.arange(out_c, dtype=jnp.float32),
        "v1": 0.5 + 0.01 * jnp.arange(out_c, dtype=jnp.float32),
        "w2": 0.1 * jax.random.normal(ks[4], (out_c, out_c, 3, 3), jnp.float32),
        "b2": 0.05 * jax.random.normal(ks[5], (out_c,), jnp.float32),
        "g2": 1.0 + 0.1 * jax.random.normal(ks[6], (out_c,), jnp.float32),
        "be2": 0.05 * jax.random.normal(ks[7], (out_c,), jnp.float32),
        "m2": -0.01 * jnp.arange(out_c, dtype=jnp.float32),
        "v2": 0.75 + 0.02 * jnp.arange(out_c, dtype=jnp.float32),
    }


def reference_forward(x_nchw, p_):
    def conv_bn_relu(x, w, cb, g, be, m, v):
        y = jax.lax.conv_general_dilated(
            x, w, window_strides=(1, 1), padding="SAME",
            dimension_numbers=("NCHW", "OIHW", "NCHW"),
            precision=jax.lax.Precision.HIGHEST,
        )
        y = y + cb[None, :, None, None]
        y = (y - m[None, :, None, None]) / jnp.sqrt(v[None, :, None, None] + EPS)
        y = y * g[None, :, None, None] + be[None, :, None, None]
        return jnp.maximum(y, 0.0)

    x = conv_bn_relu(x_nchw, p_["w1"], p_["b1"], p_["g1"], p_["be1"], p_["m1"], p_["v1"])
    x = conv_bn_relu(x, p_["w2"], p_["b2"], p_["g2"], p_["be2"], p_["m2"], p_["v2"])
    N, C, H, W = x.shape
    pooled = x.reshape(N, C, H // 2, 2, W // 2, 2).max(axis=(3, 5))
    return x, pooled


# ---------------------------------------------------------------------------
if __name__ == "__main__":
    N, IN_C, OUT_C, H, W = 2, 4, 8, 16, 16

    key = jax.random.PRNGKey(0)
    k_x, k_p = jax.random.split(key)
    x = jax.random.normal(k_x, (N, IN_C, H, W), jnp.float32)
    params = init_params(k_p, IN_C, OUT_C)

    fwd = jax.jit(encoder_block_forward)
    x_out, p_out = fwd(x, params)
    x_out = jax.block_until_ready(x_out)
    p_out = jax.block_until_ready(p_out)

    x_exp, p_exp = reference_forward(x, params)

    assert x_out.shape == (N, OUT_C, H, W)
    assert p_out.shape == (N, OUT_C, H // 2, W // 2)
    # tolerances are loosened vs. the f32/HIGHEST reference because the MXU operands
    # (activations, weights, and the conv1->conv2 intermediate) are bf16.
    assert jnp.allclose(x_out, x_exp, atol=5e-2, rtol=5e-2)
    assert jnp.allclose(p_out, p_exp, atol=5e-2, rtol=5e-2)

    print("KERNEL_OK")
</pallas_src>

<mosaic_0001>
module attributes {stable_mosaic.version = 11 : i64} {
  func.func @kernel(%arg0: i32, %arg1: i32, %arg2: memref<1x18x18x4xbf16, #tpu.memory_space<vmem>>, %arg3: memref<9x4x8xbf16, #tpu.memory_space<vmem>>, %arg4: memref<1x8xf32, #tpu.memory_space<vmem>>, %arg5: memref<1x8xf32, #tpu.memory_space<vmem>>, %arg6: memref<1x8x16x8xbf16, #tpu.memory_space<vmem>>) attributes {dimension_semantics = [#tpu.dimension_semantics<parallel>, #tpu.dimension_semantics<parallel>], iteration_bounds = array<i64: 2, 2>, scalar_prefetch = 0 : i64, scratch_operands = 0 : i64, tpu.core_type = #tpu.core_type<tc>, window_params = [{transform_indices = @transform_0, window_bounds = array<i64: 1, 18, 18, 4>}, {pipeline_mode = #tpu.pipeline_mode<synchronous>, transform_indices = @transform_1, window_bounds = array<i64: 9, 4, 8>}, {pipeline_mode = #tpu.pipeline_mode<synchronous>, transform_indices = @transform_2, window_bounds = array<i64: 1, 8>}, {pipeline_mode = #tpu.pipeline_mode<synchronous>, transform_indices = @transform_3, window_bounds = array<i64: 1, 8>}, {transform_indices = @transform_4, window_bounds = array<i64: 1, 8, 16, 8>}]} {
    %c8_i32 = arith.constant 8 : i32
    %0 = arith.muli %arg1, %c8_i32 : i32
    %1 = tpu.assume_multiple %0, 8 : i32
    %cst = arith.constant 0.000000e+00 : f32
    %2 = vector.broadcast %cst : f32 to vector<128x8xf32>
    %c0_i32 = arith.constant 0 : i32
    %3 = arith.addi %1, %c0_i32 : i32
    %c0 = arith.constant 0 : index
    %4 = arith.index_cast %3 : i32 to index
    %c0_0 = arith.constant 0 : index
    %c0_1 = arith.constant 0 : index
    %5 = vector.load %arg2[%c0, %4, %c0_0, %c0_1] : memref<1x18x18x4xbf16, #tpu.memory_space<vmem>>, vector<1x8x16x4xbf16>
    %6 = vector.shape_cast %5 : vector<1x8x16x4xbf16> to vector<8x16x4xbf16>
    %7 = vector.shape_cast %6 : vector<8x16x4xbf16> to vector<128x4xbf16>
    %c0_2 = arith.constant 0 : index
    %c0_3 = arith.constant 0 : index
    %c0_4 = arith.constant 0 : index
    %8 = vector.load %arg3[%c0_2, %c0_3, %c0_4] : memref<9x4x8xbf16, #tpu.memory_space<vmem>>, vector<1x4x8xbf16>
    %9 = vector.shape_cast %8 : vector<1x4x8xbf16> to vector<4x8xbf16>
    %cst_5 = arith.constant dense<0.000000e+00> : vector<128x8xf32>
    %10 = tpu.matmul %7, %9, %cst_5 {dimension_numbers = #tpu.dot_dimension_numbers<[1], [0], [0], [1], [0, 0, 1, 1], [], []>} : vector<128x4xbf16>, vector<4x8xbf16>, vector<128x8xf32> -> vector<128x8xf32>
    %11 = arith.addf %2, %10 : vector<128x8xf32>
    %c0_i32_6 = arith.constant 0 : i32
    %12 = arith.addi %1, %c0_i32_6 : i32
    %c0_7 = arith.constant 0 : index
    %13 = arith.index_cast %12 : i32 to index
    %c1 = arith.constant 1 : index
    %c0_8 = arith.constant 0 : index
    %14 = vector.load %arg2[%c0_7, %13, %c1, %c0_8] : memref<1x18x18x4xbf16, #tpu.memory_space<vmem>>, vector<1x8x16x4xbf16>
    %15 = vector.shape_cast %14 : vector<1x8x16x4xbf16> to vector<8x16x4xbf16>
    %16 = vector.shape_cast %15 : vector<8x16x4xbf16> to vector<128x4xbf16>
    %c1_9 = arith.constant 1 : index
    %c0_10 = arith.constant 0 : index
    %c0_11 = arith.constant 0 : index
    %17 = vector.load %arg3[%c1_9, %c0_10, %c0_11] : memref<9x4x8xbf16, #tpu.memory_space<vmem>>, vector<1x4x8xbf16>
    %18 = vector.shape_cast %17 : vector<1x4x8xbf16> to vector<4x8xbf16>
    %cst_12 = arith.constant dense<0.000000e+00> : vector<128x8xf32>
    %19 = tpu.matmul %16, %18, %cst_12 {dimension_numbers = #tpu.dot_dimension_numbers<[1], [0], [0], [1], [0, 0, 1, 1], [], []>} : vector<128x4xbf16>, vector<4x8xbf16>, vector<128x8xf32> -> vector<128x8xf32>
    %20 = arith.addf %11, %19 : vector<128x8xf32>
    %c0_i32_13 = arith.constant 0 : i32
    %21 = arith.addi %1, %c0_i32_13 : i32
    %c0_14 = arith.constant 0 : index
    %22 = arith.index_cast %21 : i32 to index
    %c2 = arith.constant 2 : index
    %c0_15 = arith.constant 0 : index
    %23 = vector.load %arg2[%c0_14, %22, %c2, %c0_15] : memref<1x18x18x4xbf16, #tpu.memory_space<vmem>>, vector<1x8x16x4xbf16>
    %24 = vector.shape_cast %23 : vector<1x8x16x4xbf16> to vector<8x16x4xbf16>
    %25 = vector.shape_cast %24 : vector<8x16x4xbf16> to vector<128x4xbf16>
    %c2_16 = arith.constant 2 : index
    %c0_17 = arith.constant 0 : index
    %c0_18 = arith.constant 0 : index
    %26 = vector.load %arg3[%c2_16, %c0_17, %c0_18] : memref<9x4x8xbf16, #tpu.memory_space<vmem>>, vector<1x4x8xbf16>
    %27 = vector.shape_cast %26 : vector<1x4x8xbf16> to vector<4x8xbf16>
    %cst_19 = arith.constant dense<0.000000e+00> : vector<128x8xf32>
    %28 = tpu.matmul %25, %27, %cst_19 {dimension_numbers = #tpu.dot_dimension_numbers<[1], [0], [0], [1], [0, 0, 1, 1], [], []>} : vector<128x4xbf16>, vector<4x8xbf16>, vector<128x8xf32> -> vector<128x8xf32>
    %29 = arith.addf %20, %28 : vector<128x8xf32>
    %c1_i32 = arith.constant 1 : i32
    %30 = arith.addi %1, %c1_i32 : i32
    %c0_20 = arith.constant 0 : index
    %31 = arith.index_cast %30 : i32 to index
    %c0_21 = arith.constant 0 : index
    %c0_22 = arith.constant 0 : index
    %32 = vector.load %arg2[%c0_20, %31, %c0_21, %c0_22] : memref<1x18x18x4xbf16, #tpu.memory_space<vmem>>, vector<1x8x16x4xbf16>
    %33 = vector.shape_cast %32 : vector<1x8x16x4xbf16> to vector<8x16x4xbf16>
    %34 = vector.shape_cast %33 : vector<8x16x4xbf16> to vector<128x4xbf16>
    %c3 = arith.constant 3 : index
    %c0_23 = arith.constant 0 : index
    %c0_24 = arith.constant 0 : index
    %35 = vector.load %arg3[%c3, %c0_23, %c0_24] : memref<9x4x8xbf16, #tpu.memory_space<vmem>>, vector<1x4x8xbf16>
    %36 = vector.shape_cast %35 : vector<1x4x8xbf16> to vector<4x8xbf16>
    %cst_25 = arith.constant dense<0.000000e+00> : vector<128x8xf32>
    %37 = tpu.matmul %34, %36, %cst_25 {dimension_numbers = #tpu.dot_dimension_numbers<[1], [0], [0], [1], [0, 0, 1, 1], [], []>} : vector<128x4xbf16>, vector<4x8xbf16>, vector<128x8xf32> -> vector<128x8xf32>
    %38 = arith.addf %29, %37 : vector<128x8xf32>
    %c1_i32_26 = arith.constant 1 : i32
    %39 = arith.addi %1, %c1_i32_26 : i32
    %c0_27 = arith.constant 0 : index
    %40 = arith.index_cast %39 : i32 to index
    %c1_28 = arith.constant 1 : index
    %c0_29 = arith.constant 0 : index
    %41 = vector.load %arg2[%c0_27, %40, %c1_28, %c0_29] : memref<1x18x18x4xbf16, #tpu.memory_space<vmem>>, vector<1x8x16x4xbf16>
    %42 = vector.shape_cast %41 : vector<1x8x16x4xbf16> to vector<8x16x4xbf16>
    %43 = vector.shape_cast %42 : vector<8x16x4xbf16> to vector<128x4xbf16>
    %c4 = arith.constant 4 : index
    %c0_30 = arith.constant 0 : index
    %c0_31 = arith.constant 0 : index
    %44 = vector.load %arg3[%c4, %c0_30, %c0_31] : memref<9x4x8xbf16, #tpu.memory_space<vmem>>, vector<1x4x8xbf16>
    %45 = vector.shape_cast %44 : vector<1x4x8xbf16> to vector<4x8xbf16>
    %cst_32 = arith.constant dense<0.000000e+00> : vector<128x8xf32>
    %46 = tpu.matmul %43, %45, %cst_32 {dimension_numbers = #tpu.dot_dimension_numbers<[1], [0], [0], [1], [0, 0, 1, 1], [], []>} : vector<128x4xbf16>, vector<4x8xbf16>, vector<128x8xf32> -> vector<128x8xf32>
    %47 = arith.addf %38, %46 : vector<128x8xf32>
    %c1_i32_33 = arith.constant 1 : i32
    %48 = arith.addi %1, %c1_i32_33 : i32
    %c0_34 = arith.constant 0 : index
    %49 = arith.index_cast %48 : i32 to index
    %c2_35 = arith.constant 2 : index
    %c0_36 = arith.constant 0 : index
    %50 = vector.load %arg2[%c0_34, %49, %c2_35, %c0_36] : memref<1x18x18x4xbf16, #tpu.memory_space<vmem>>, vector<1x8x16x4xbf16>
    %51 = vector.shape_cast %50 : vector<1x8x16x4xbf16> to vector<8x16x4xbf16>
    %52 = vector.shape_cast %51 : vector<8x16x4xbf16> to vector<128x4xbf16>
    %c5 = arith.constant 5 : index
    %c0_37 = arith.constant 0 : index
    %c0_38 = arith.constant 0 : index
    %53 = vector.load %arg3[%c5, %c0_37, %c0_38] : memref<9x4x8xbf16, #tpu.memory_space<vmem>>, vector<1x4x8xbf16>
    %54 = vector.shape_cast %53 : vector<1x4x8xbf16> to vector<4x8xbf16>
    %cst_39 = arith.constant dense<0.000000e+00> : vector<128x8xf32>
    %55 = tpu.matmul %52, %54, %cst_39 {dimension_numbers = #tpu.dot_dimension_numbers<[1], [0], [0], [1], [0, 0, 1, 1], [], []>} : vector<128x4xbf16>, vector<4x8xbf16>, vector<128x8xf32> -> vector<128x8xf32>
    %56 = arith.addf %47, %55 : vector<128x8xf32>
    %c2_i32 = arith.constant 2 : i32
    %57 = arith.addi %1, %c2_i32 : i32
    %c0_40 = arith.constant 0 : index
    %58 = arith.index_cast %57 : i32 to index
    %c0_41 = arith.constant 0 : index
    %c0_42 = arith.constant 0 : index
    %59 = vector.load %arg2[%c0_40, %58, %c0_41, %c0_42] : memref<1x18x18x4xbf16, #tpu.memory_space<vmem>>, vector<1x8x16x4xbf16>
    %60 = vector.shape_cast %59 : vector<1x8x16x4xbf16> to vector<8x16x4xbf16>
    %61 = vector.shape_cast %60 : vector<8x16x4xbf16> to vector<128x4xbf16>
    %c6 = arith.constant 6 : index
    %c0_43 = arith.constant 0 : index
    %c0_44 = arith.constant 0 : index
    %62 = vector.load %arg3[%c6, %c0_43, %c0_44] : memref<9x4x8xbf16, #tpu.memory_space<vmem>>, vector<1x4x8xbf16>
    %63 = vector.shape_cast %62 : vector<1x4x8xbf16> to vector<4x8xbf16>
    %cst_45 = arith.constant dense<0.000000e+00> : vector<128x8xf32>
    %64 = tpu.matmul %61, %63, %cst_45 {dimension_numbers = #tpu.dot_dimension_numbers<[1], [0], [0], [1], [0, 0, 1, 1], [], []>} : vector<128x4xbf16>, vector<4x8xbf16>, vector<128x8xf32> -> vector<128x8xf32>
    %65 = arith.addf %56, %64 : vector<128x8xf32>
    %c2_i32_46 = arith.constant 2 : i32
    %66 = arith.addi %1, %c2_i32_46 : i32
    %c0_47 = arith.constant 0 : index
    %67 = arith.index_cast %66 : i32 to index
    %c1_48 = arith.constant 1 : index
    %c0_49 = arith.constant 0 : index
    %68 = vector.load %arg2[%c0_47, %67, %c1_48, %c0_49] : memref<1x18x18x4xbf16, #tpu.memory_space<vmem>>, vector<1x8x16x4xbf16>
    %69 = vector.shape_cast %68 : vector<1x8x16x4xbf16> to vector<8x16x4xbf16>
    %70 = vector.shape_cast %69 : vector<8x16x4xbf16> to vector<128x4xbf16>
    %c7 = arith.constant 7 : index
    %c0_50 = arith.constant 0 : index
    %c0_51 = arith.constant 0 : index
    %71 = vector.load %arg3[%c7, %c0_50, %c0_51] : memref<9x4x8xbf16, #tpu.memory_space<vmem>>, vector<1x4x8xbf16>
    %72 = vector.shape_cast %71 : vector<1x4x8xbf16> to vector<4x8xbf16>
    %cst_52 = arith.constant dense<0.000000e+00> : vector<128x8xf32>
    %73 = tpu.matmul %70, %72, %cst_52 {dimension_numbers = #tpu.dot_dimension_numbers<[1], [0], [0], [1], [0, 0, 1, 1], [], []>} : vector<128x4xbf16>, vector<4x8xbf16>, vector<128x8xf32> -> vector<128x8xf32>
    %74 = arith.addf %65, %73 : vector<128x8xf32>
    %c2_i32_53 = arith.constant 2 : i32
    %75 = arith.addi %1, %c2_i32_53 : i32
    %c0_54 = arith.constant 0 : index
    %76 = arith.index_cast %75 : i32 to index
    %c2_55 = arith.constant 2 : index
    %c0_56 = arith.constant 0 : index
    %77 = vector.load %arg2[%c0_54, %76, %c2_55, %c0_56] : memref<1x18x18x4xbf16, #tpu.memory_space<vmem>>, vector<1x8x16x4xbf16>
    %78 = vector.shape_cast %77 : vector<1x8x16x4xbf16> to vector<8x16x4xbf16>
    %79 = vector.shape_cast %78 : vector<8x16x4xbf16> to vector<128x4xbf16>
    %c8 = arith.constant 8 : index
    %c0_57 = arith.constant 0 : index
    %c0_58 = arith.constant 0 : index
    %80 = vector.load %arg3[%c8, %c0_57, %c0_58] : memref<9x4x8xbf16, #tpu.memory_space<vmem>>, vector<1x4x8xbf16>
    %81 = vector.shape_cast %80 : vector<1x4x8xbf16> to vector<4x8xbf16>
    %cst_59 = arith.constant dense<0.000000e+00> : vector<128x8xf32>
    %82 = tpu.matmul %79, %81, %cst_59 {dimension_numbers = #tpu.dot_dimension_numbers<[1], [0], [0], [1], [0, 0, 1, 1], [], []>} : vector<128x4xbf16>, vector<4x8xbf16>, vector<128x8xf32> -> vector<128x8xf32>
    %83 = arith.addf %74, %82 : vector<128x8xf32>
    %c0_60 = arith.constant 0 : index
    %c0_61 = arith.constant 0 : index
    %84 = vector.load %arg4[%c0_60, %c0_61] : memref<1x8xf32, #tpu.memory_space<vmem>>, vector<1x8xf32>
    %85 = vector.broadcast %84 : vector<1x8xf32> to vector<128x8xf32>
    %86 = arith.mulf %83, %85 : vector<128x8xf32>
    %c0_62 = arith.constant 0 : index
    %c0_63 = arith.constant 0 : index
    %87 = vector.load %arg5[%c0_62, %c0_63] : memref<1x8xf32, #tpu.memory_space<vmem>>, vector<1x8xf32>
    %88 = vector.broadcast %87 : vector<1x8xf32> to vector<128x8xf32>
    %89 = arith.addf %86, %88 : vector<128x8xf32>
    %cst_64 = arith.constant 0.000000e+00 : f32
    %90 = vector.broadcast %cst_64 : f32 to vector<128x8xf32>
    %91 = arith.maximumf %89, %90 : vector<128x8xf32>
    %92 = vector.shape_cast %91 : vector<128x8xf32> to vector<8x16x8xf32>
    %93 = arith.truncf %92 : vector<8x16x8xf32> to vector<8x16x8xbf16>
    %c0_65 = arith.constant 0 : index
    %c0_66 = arith.constant 0 : index
    %c0_67 = arith.constant 0 : index
    %c0_68 = arith.constant 0 : index
    %94 = vector.load %arg6[%c0_65, %c0_66, %c0_67, %c0_68] : memref<1x8x16x8xbf16, #tpu.memory_space<vmem>>, vector<1x8x16x8xbf16>
    %95 = vector.shape_cast %94 : vector<1x8x16x8xbf16> to vector<8x16x8xbf16>
    %96 = vector.shape_cast %93 : vector<8x16x8xbf16> to vector<1x8x16x8xbf16>
    tpu.vector_store %arg6[%c0_65, %c0_66, %c0_67, %c0_68], %96 {strides = array<i32>} : memref<1x8x16x8xbf16, #tpu.memory_space<vmem>>, vector<1x8x16x8xbf16>,
    return
  }
  func.func @transform_0(%arg0: i32, %arg1: i32) -> (i32, i32, i32, i32) {
    %c0_i32 = arith.constant 0 : i32
    %c0_i32_0 = arith.constant 0 : i32
    %c0_i32_1 = arith.constant 0 : i32
    %c0_i32_2 = arith.constant 0 : i32
    return %arg0, %c0_i32, %c0_i32_0, %c0_i32_1 : i32, i32, i32, i32
  }
  func.func @transform_1(%arg0: i32, %arg1: i32) -> (i32, i32, i32) {
    %c0_i32 = arith.constant 0 : i32
    %c0_i32_0 = arith.constant 0 : i32
    %c0_i32_1 = arith.constant 0 : i32
    %c0_i32_2 = arith.constant 0 : i32
    return %c0_i32, %c0_i32_0, %c0_i32_1 : i32, i32, i32
  }
  func.func @transform_2(%arg0: i32, %arg1: i32) -> (i32, i32) {
    %c0_i32 = arith.constant 0 : i32
    %c0_i32_0 = arith.constant 0 : i32
    %c0_i32_1 = arith.constant 0 : i32
    return %c0_i32, %c0_i32_0 : i32, i32
  }
  func.func @transform_3(%arg0: i32, %arg1: i32) -> (i32, i32) {
    %c0_i32 = arith.constant 0 : i32
    %c0_i32_0 = arith.constant 0 : i32
    %c0_i32_1 = arith.constant 0 : i32
    return %c0_i32, %c0_i32_0 : i32, i32
  }
  func.func @transform_4(%arg0: i32, %arg1: i32) -> (i32, i32, i32, i32) {
    %c0_i32 = arith.constant 0 : i32
    %c0_i32_0 = arith.constant 0 : i32
    %c0_i32_1 = arith.constant 0 : i32
    return %arg0, %arg1, %c0_i32, %c0_i32_0 : i32, i32, i32, i32
  }
}

module attributes {stable_mosaic.version = 11 : i64} {
  func.func @kernel(%arg0: i32, %arg1: i32, %arg2: memref<1x18x18x8xbf16, #tpu.memory_space<vmem>>, %arg3: memref<9x8x8xbf16, #tpu.memory_space<vmem>>, %arg4: memref<1x8xf32, #tpu.memory_space<vmem>>, %arg5: memref<1x8xf32, #tpu.memory_space<vmem>>, %arg6: memref<1x8x16x8xf32, #tpu.memory_space<vmem>>, %arg7: memref<1x4x8x8xf32, #tpu.memory_space<vmem>>) attributes {dimension_semantics = [#tpu.dimension_semantics<parallel>, #tpu.dimension_semantics<parallel>], iteration_bounds = array<i64: 2, 2>, scalar_prefetch = 0 : i64, scratch_operands = 0 : i64, tpu.core_type = #tpu.core_type<tc>, window_params = [{transform_indices = @transform_0, window_bounds = array<i64: 1, 18, 18, 8>}, {pipeline_mode = #tpu.pipeline_mode<synchronous>, transform_indices = @transform_1, window_bounds = array<i64: 9, 8, 8>}, {pipeline_mode = #tpu.pipeline_mode<synchronous>, transform_indices = @transform_2, window_bounds = array<i64: 1, 8>}, {pipeline_mode = #tpu.pipeline_mode<synchronous>, transform_indices = @transform_3, window_bounds = array<i64: 1, 8>}, {transform_indices = @transform_4, window_bounds = array<i64: 1, 8, 16, 8>}, {transform_indices = @transform_5, window_bounds = array<i64: 1, 4, 8, 8>}]} {
    %c8_i32 = arith.constant 8 : i32
    %0 = arith.muli %arg1, %c8_i32 : i32
    %1 = tpu.assume_multiple %0, 8 : i32
    %cst = arith.constant 0.000000e+00 : f32
    %2 = vector.broadcast %cst : f32 to vector<128x8xf32>
    %c0_i32 = arith.constant 0 : i32
    %3 = arith.addi %1, %c0_i32 : i32
    %c0 = arith.constant 0 : index
    %4 = arith.index_cast %3 : i32 to index
    %c0_0 = arith.constant 0 : index
    %c0_1 = arith.constant 0 : index
    %5 = vector.load %arg2[%c0, %4, %c0_0, %c0_1] : memref<1x18x18x8xbf16, #tpu.memory_space<vmem>>, vector<1x8x16x8xbf16>
    %6 = vector.shape_cast %5 : vector<1x8x16x8xbf16> to vector<8x16x8xbf16>
    %7 = vector.shape_cast %6 : vector<8x16x8xbf16> to vector<128x8xbf16>
    %c0_2 = arith.constant 0 : index
    %c0_3 = arith.constant 0 : index
    %c0_4 = arith.constant 0 : index
    %8 = vector.load %arg3[%c0_2, %c0_3, %c0_4] : memref<9x8x8xbf16, #tpu.memory_space<vmem>>, vector<1x8x8xbf16>
    %9 = vector.shape_cast %8 : vector<1x8x8xbf16> to vector<8x8xbf16>
    %cst_5 = arith.constant dense<0.000000e+00> : vector<128x8xf32>
    %10 = tpu.matmul %7, %9, %cst_5 {dimension_numbers = #tpu.dot_dimension_numbers<[1], [0], [0], [1], [0, 0, 1, 1], [], []>} : vector<128x8xbf16>, vector<8x8xbf16>, vector<128x8xf32> -> vector<128x8xf32>
    %11 = arith.addf %2, %10 : vector<128x8xf32>
    %c0_i32_6 = arith.constant 0 : i32
    %12 = arith.addi %1, %c0_i32_6 : i32
    %c0_7 = arith.constant 0 : index
    %13 = arith.index_cast %12 : i32 to index
    %c1 = arith.constant 1 : index
    %c0_8 = arith.constant 0 : index
    %14 = vector.load %arg2[%c0_7, %13, %c1, %c0_8] : memref<1x18x18x8xbf16, #tpu.memory_space<vmem>>, vector<1x8x16x8xbf16>
    %15 = vector.shape_cast %14 : vector<1x8x16x8xbf16> to vector<8x16x8xbf16>
    %16 = vector.shape_cast %15 : vector<8x16x8xbf16> to vector<128x8xbf16>
    %c1_9 = arith.constant 1 : index
    %c0_10 = arith.constant 0 : index
    %c0_11 = arith.constant 0 : index
    %17 = vector.load %arg3[%c1_9, %c0_10, %c0_11] : memref<9x8x8xbf16, #tpu.memory_space<vmem>>, vector<1x8x8xbf16>
    %18 = vector.shape_cast %17 : vector<1x8x8xbf16> to vector<8x8xbf16>
    %cst_12 = arith.constant dense<0.000000e+00> : vector<128x8xf32>
    %19 = tpu.matmul %16, %18, %cst_12 {dimension_numbers = #tpu.dot_dimension_numbers<[1], [0], [0], [1], [0, 0, 1, 1], [], []>} : vector<128x8xbf16>, vector<8x8xbf16>, vector<128x8xf32> -> vector<128x8xf32>
    %20 = arith.addf %11, %19 : vector<128x8xf32>
    %c0_i32_13 = arith.constant 0 : i32
    %21 = arith.addi %1, %c0_i32_13 : i32
    %c0_14 = arith.constant 0 : index
    %22 = arith.index_cast %21 : i32 to index
    %c2 = arith.constant 2 : index
    %c0_15 = arith.constant 0 : index
    %23 = vector.load %arg2[%c0_14, %22, %c2, %c0_15] : memref<1x18x18x8xbf16, #tpu.memory_space<vmem>>, vector<1x8x16x8xbf16>
    %24 = vector.shape_cast %23 : vector<1x8x16x8xbf16> to vector<8x16x8xbf16>
    %25 = vector.shape_cast %24 : vector<8x16x8xbf16> to vector<128x8xbf16>
    %c2_16 = arith.constant 2 : index
    %c0_17 = arith.constant 0 : index
    %c0_18 = arith.constant 0 : index
    %26 = vector.load %arg3[%c2_16, %c0_17, %c0_18] : memref<9x8x8xbf16, #tpu.memory_space<vmem>>, vector<1x8x8xbf16>
    %27 = vector.shape_cast %26 : vector<1x8x8xbf16> to vector<8x8xbf16>
    %cst_19 = arith.constant dense<0.000000e+00> : vector<128x8xf32>
    %28 = tpu.matmul %25, %27, %cst_19 {dimension_numbers = #tpu.dot_dimension_numbers<[1], [0], [0], [1], [0, 0, 1, 1], [], []>} : vector<128x8xbf16>, vector<8x8xbf16>, vector<128x8xf32> -> vector<128x8xf32>
    %29 = arith.addf %20, %28 : vector<128x8xf32>
    %c1_i32 = arith.constant 1 : i32
    %30 = arith.addi %1, %c1_i32 : i32
    %c0_20 = arith.constant 0 : index
    %31 = arith.index_cast %30 : i32 to index
    %c0_21 = arith.constant 0 : index
    %c0_22 = arith.constant 0 : index
    %32 = vector.load %arg2[%c0_20, %31, %c0_21, %c0_22] : memref<1x18x18x8xbf16, #tpu.memory_space<vmem>>, vector<1x8x16x8xbf16>
    %33 = vector.shape_cast %32 : vector<1x8x16x8xbf16> to vector<8x16x8xbf16>
    %34 = vector.shape_cast %33 : vector<8x16x8xbf16> to vector<128x8xbf16>
    %c3 = arith.constant 3 : index
    %c0_23 = arith.constant 0 : index
    %c0_24 = arith.constant 0 : index
    %35 = vector.load %arg3[%c3, %c0_23, %c0_24] : memref<9x8x8xbf16, #tpu.memory_space<vmem>>, vector<1x8x8xbf16>
    %36 = vector.shape_cast %35 : vector<1x8x8xbf16> to vector<8x8xbf16>
    %cst_25 = arith.constant dense<0.000000e+00> : vector<128x8xf32>
    %37 = tpu.matmul %34, %36, %cst_25 {dimension_numbers = #tpu.dot_dimension_numbers<[1], [0], [0], [1], [0, 0, 1, 1], [], []>} : vector<128x8xbf16>, vector<8x8xbf16>, vector<128x8xf32> -> vector<128x8xf32>
    %38 = arith.addf %29, %37 : vector<128x8xf32>
    %c1_i32_26 = arith.constant 1 : i32
    %39 = arith.addi %1, %c1_i32_26 : i32
    %c0_27 = arith.constant 0 : index
    %40 = arith.index_cast %39 : i32 to index
    %c1_28 = arith.constant 1 : index
    %c0_29 = arith.constant 0 : index
    %41 = vector.load %arg2[%c0_27, %40, %c1_28, %c0_29] : memref<1x18x18x8xbf16, #tpu.memory_space<vmem>>, vector<1x8x16x8xbf16>
    %42 = vector.shape_cast %41 : vector<1x8x16x8xbf16> to vector<8x16x8xbf16>
    %43 = vector.shape_cast %42 : vector<8x16x8xbf16> to vector<128x8xbf16>
    %c4 = arith.constant 4 : index
    %c0_30 = arith.constant 0 : index
    %c0_31 = arith.constant 0 : index
    %44 = vector.load %arg3[%c4, %c0_30, %c0_31] : memref<9x8x8xbf16, #tpu.memory_space<vmem>>, vector<1x8x8xbf16>
    %45 = vector.shape_cast %44 : vector<1x8x8xbf16> to vector<8x8xbf16>
    %cst_32 = arith.constant dense<0.000000e+00> : vector<128x8xf32>
    %46 = tpu.matmul %43, %45, %cst_32 {dimension_numbers = #tpu.dot_dimension_numbers<[1], [0], [0], [1], [0, 0, 1, 1], [], []>} : vector<128x8xbf16>, vector<8x8xbf16>, vector<128x8xf32> -> vector<128x8xf32>
    %47 = arith.addf %38, %46 : vector<128x8xf32>
    %c1_i32_33 = arith.constant 1 : i32
    %48 = arith.addi %1, %c1_i32_33 : i32
    %c0_34 = arith.constant 0 : index
    %49 = arith.index_cast %48 : i32 to index
    %c2_35 = arith.constant 2 : index
    %c0_36 = arith.constant 0 : index
    %50 = vector.load %arg2[%c0_34, %49, %c2_35, %c0_36] : memref<1x18x18x8xbf16, #tpu.memory_space<vmem>>, vector<1x8x16x8xbf16>
    %51 = vector.shape_cast %50 : vector<1x8x16x8xbf16> to vector<8x16x8xbf16>
    %52 = vector.shape_cast %51 : vector<8x16x8xbf16> to vector<128x8xbf16>
    %c5 = arith.constant 5 : index
    %c0_37 = arith.constant 0 : index
    %c0_38 = arith.constant 0 : index
    %53 = vector.load %arg3[%c5, %c0_37, %c0_38] : memref<9x8x8xbf16, #tpu.memory_space<vmem>>, vector<1x8x8xbf16>
    %54 = vector.shape_cast %53 : vector<1x8x8xbf16> to vector<8x8xbf16>
    %cst_39 = arith.constant dense<0.000000e+00> : vector<128x8xf32>
    %55 = tpu.matmul %52, %54, %cst_39 {dimension_numbers = #tpu.dot_dimension_numbers<[1], [0], [0], [1], [0, 0, 1, 1], [], []>} : vector<128x8xbf16>, vector<8x8xbf16>, vector<128x8xf32> -> vector<128x8xf32>
    %56 = arith.addf %47, %55 : vector<128x8xf32>
    %c2_i32 = arith.constant 2 : i32
    %57 = arith.addi %1, %c2_i32 : i32
    %c0_40 = arith.constant 0 : index
    %58 = arith.index_cast %57 : i32 to index
    %c0_41 = arith.constant 0 : index
    %c0_42 = arith.constant 0 : index
    %59 = vector.load %arg2[%c0_40, %58, %c0_41, %c0_42] : memref<1x18x18x8xbf16, #tpu.memory_space<vmem>>, vector<1x8x16x8xbf16>
    %60 = vector.shape_cast %59 : vector<1x8x16x8xbf16> to vector<8x16x8xbf16>
    %61 = vector.shape_cast %60 : vector<8x16x8xbf16> to vector<128x8xbf16>
    %c6 = arith.constant 6 : index
    %c0_43 = arith.constant 0 : index
    %c0_44 = arith.constant 0 : index
    %62 = vector.load %arg3[%c6, %c0_43, %c0_44] : memref<9x8x8xbf16, #tpu.memory_space<vmem>>, vector<1x8x8xbf16>
    %63 = vector.shape_cast %62 : vector<1x8x8xbf16> to vector<8x8xbf16>
    %cst_45 = arith.constant dense<0.000000e+00> : vector<128x8xf32>
    %64 = tpu.matmul %61, %63, %cst_45 {dimension_numbers = #tpu.dot_dimension_numbers<[1], [0], [0], [1], [0, 0, 1, 1], [], []>} : vector<128x8xbf16>, vector<8x8xbf16>, vector<128x8xf32> -> vector<128x8xf32>
    %65 = arith.addf %56, %64 : vector<128x8xf32>
    %c2_i32_46 = arith.constant 2 : i32
    %66 = arith.addi %1, %c2_i32_46 : i32
    %c0_47 = arith.constant 0 : index
    %67 = arith.index_cast %66 : i32 to index
    %c1_48 = arith.constant 1 : index
    %c0_49 = arith.constant 0 : index
    %68 = vector.load %arg2[%c0_47, %67, %c1_48, %c0_49] : memref<1x18x18x8xbf16, #tpu.memory_space<vmem>>, vector<1x8x16x8xbf16>
    %69 = vector.shape_cast %68 : vector<1x8x16x8xbf16> to vector<8x16x8xbf16>
    %70 = vector.shape_cast %69 : vector<8x16x8xbf16> to vector<128x8xbf16>
    %c7 = arith.constant 7 : index
    %c0_50 = arith.constant 0 : index
    %c0_51 = arith.constant 0 : index
    %71 = vector.load %arg3[%c7, %c0_50, %c0_51] : memref<9x8x8xbf16, #tpu.memory_space<vmem>>, vector<1x8x8xbf16>
    %72 = vector.shape_cast %71 : vector<1x8x8xbf16> to vector<8x8xbf16>
    %cst_52 = arith.constant dense<0.000000e+00> : vector<128x8xf32>
    %73 = tpu.matmul %70, %72, %cst_52 {dimension_numbers = #tpu.dot_dimension_numbers<[1], [0], [0], [1], [0, 0, 1, 1], [], []>} : vector<128x8xbf16>, vector<8x8xbf16>, vector<128x8xf32> -> vector<128x8xf32>
    %74 = arith.addf %65, %73 : vector<128x8xf32>
    %c2_i32_53 = arith.constant 2 : i32
    %75 = arith.addi %1, %c2_i32_53 : i32
    %c0_54 = arith.constant 0 : index
    %76 = arith.index_cast %75 : i32 to index
    %c2_55 = arith.constant 2 : index
    %c0_56 = arith.constant 0 : index
    %77 = vector.load %arg2[%c0_54, %76, %c2_55, %c0_56] : memref<1x18x18x8xbf16, #tpu.memory_space<vmem>>, vector<1x8x16x8xbf16>
    %78 = vector.shape_cast %77 : vector<1x8x16x8xbf16> to vector<8x16x8xbf16>
    %79 = vector.shape_cast %78 : vector<8x16x8xbf16> to vector<128x8xbf16>
    %c8 = arith.constant 8 : index
    %c0_57 = arith.constant 0 : index
    %c0_58 = arith.constant 0 : index
    %80 = vector.load %arg3[%c8, %c0_57, %c0_58] : memref<9x8x8xbf16, #tpu.memory_space<vmem>>, vector<1x8x8xbf16>
    %81 = vector.shape_cast %80 : vector<1x8x8xbf16> to vector<8x8xbf16>
    %cst_59 = arith.constant dense<0.000000e+00> : vector<128x8xf32>
    %82 = tpu.matmul %79, %81, %cst_59 {dimension_numbers = #tpu.dot_dimension_numbers<[1], [0], [0], [1], [0, 0, 1, 1], [], []>} : vector<128x8xbf16>, vector<8x8xbf16>, vector<128x8xf32> -> vector<128x8xf32>
    %83 = arith.addf %74, %82 : vector<128x8xf32>
    %c0_60 = arith.constant 0 : index
    %c0_61 = arith.constant 0 : index
    %84 = vector.load %arg4[%c0_60, %c0_61] : memref<1x8xf32, #tpu.memory_space<vmem>>, vector<1x8xf32>
    %85 = vector.broadcast %84 : vector<1x8xf32> to vector<128x8xf32>
    %86 = arith.mulf %83, %85 : vector<128x8xf32>
    %c0_62 = arith.constant 0 : index
    %c0_63 = arith.constant 0 : index
    %87 = vector.load %arg5[%c0_62, %c0_63] : memref<1x8xf32, #tpu.memory_space<vmem>>, vector<1x8xf32>
    %88 = vector.broadcast %87 : vector<1x8xf32> to vector<128x8xf32>
    %89 = arith.addf %86, %88 : vector<128x8xf32>
    %cst_64 = arith.constant 0.000000e+00 : f32
    %90 = vector.broadcast %cst_64 : f32 to vector<128x8xf32>
    %91 = arith.maximumf %89, %90 : vector<128x8xf32>
    %92 = vector.shape_cast %91 : vector<128x8xf32> to vector<8x16x8xf32>
    %c0_65 = arith.constant 0 : index
    %c0_66 = arith.constant 0 : index
    %c0_67 = arith.constant 0 : index
    %c0_68 = arith.constant 0 : index
    %93 = vector.load %arg6[%c0_65, %c0_66, %c0_67, %c0_68] : memref<1x8x16x8xf32, #tpu.memory_space<vmem>>, vector<1x8x16x8xf32>
    %94 = vector.shape_cast %93 : vector<1x8x16x8xf32> to vector<8x16x8xf32>
    %95 = vector.shape_cast %92 : vector<8x16x8xf32> to vector<1x8x16x8xf32>
    tpu.vector_store %arg6[%c0_65, %c0_66, %c0_67, %c0_68], %95 {strides = array<i32>} : memref<1x8x16x8xf32, #tpu.memory_space<vmem>>, vector<1x8x16x8xf32>,
    %96 = vector.extract_strided_slice %92 {offsets = [0, 0, 0], sizes = [1, 16, 8], strides = [1, 1, 1]} : vector<8x16x8xf32> to vector<1x16x8xf32>
    %97 = vector.shape_cast %96 : vector<1x16x8xf32> to vector<16x8xf32>
    %98 = vector.extract_strided_slice %92 {offsets = [1, 0, 0], sizes = [1, 16, 8], strides = [1, 1, 1]} : vector<8x16x8xf32> to vector<1x16x8xf32>
    %99 = vector.shape_cast %98 : vector<1x16x8xf32> to vector<16x8xf32>
    %100 = arith.maximumf %97, %99 : vector<16x8xf32>
    %101 = vector.extract_strided_slice %100 {offsets = [0, 0], sizes = [1, 8], strides = [1, 1]} : vector<16x8xf32> to vector<1x8xf32>
    %102 = vector.extract_strided_slice %100 {offsets = [1, 0], sizes = [1, 8], strides = [1, 1]} : vector<16x8xf32> to vector<1x8xf32>
    %103 = arith.maximumf %101, %102 : vector<1x8xf32>
    %c0_69 = arith.constant 0 : index
    %c0_70 = arith.constant 0 : index
    %c0_71 = arith.constant 0 : index
    %c0_72 = arith.constant 0 : index
    %104 = vector.load %arg7[%c0_69, %c0_70, %c0_71, %c0_72] : memref<1x4x8x8xf32, #tpu.memory_space<vmem>>, vector<1x1x1x8xf32>
    %105 = vector.shape_cast %104 : vector<1x1x1x8xf32> to vector<1x8xf32>
    %106 = vector.shape_cast %103 : vector<1x8xf32> to vector<1x1x1x8xf32>
    tpu.vector_store %arg7[%c0_69, %c0_70, %c0_71, %c0_72], %106 {strides = array<i32>} : memref<1x4x8x8xf32, #tpu.memory_space<vmem>>, vector<1x1x1x8xf32>,
    %107 = vector.extract_strided_slice %100 {offsets = [2, 0], sizes = [1, 8], strides = [1, 1]} : vector<16x8xf32> to vector<1x8xf32>
    %108 = vector.extract_strided_slice %100 {offsets = [3, 0], sizes = [1, 8], strides = [1, 1]} : vector<16x8xf32> to vector<1x8xf32>
    %109 = arith.maximumf %107, %108 : vector<1x8xf32>
    %c0_73 = arith.constant 0 : index
    %c0_74 = arith.constant 0 : index
    %c1_75 = arith.constant 1 : index
    %c0_76 = arith.constant 0 : index
    %110 = vector.load %arg7[%c0_73, %c0_74, %c1_75, %c0_76] : memref<1x4x8x8xf32, #tpu.memory_space<vmem>>, vector<1x1x1x8xf32>
    %111 = vector.shape_cast %110 : vector<1x1x1x8xf32> to vector<1x8xf32>
    %112 = vector.shape_cast %109 : vector<1x8xf32> to vector<1x1x1x8xf32>
    tpu.vector_store %arg7[%c0_73, %c0_74, %c1_75, %c0_76], %112 {strides = array<i32>} : memref<1x4x8x8xf32, #tpu.memory_space<vmem>>, vector<1x1x1x8xf32>,
    %113 = vector.extract_strided_slice %100 {offsets = [4, 0], sizes = [1, 8], strides = [1, 1]} : vector<16x8xf32> to vector<1x8xf32>
    %114 = vector.extract_strided_slice %100 {offsets = [5, 0], sizes = [1, 8], strides = [1, 1]} : vector<16x8xf32> to vector<1x8xf32>
    %115 = arith.maximumf %113, %114 : vector<1x8xf32>
    %c0_77 = arith.constant 0 : index
    %c0_78 = arith.constant 0 : index
    %c2_79 = arith.constant 2 : index
    %c0_80 = arith.constant 0 : index
    %116 = vector.load %arg7[%c0_77, %c0_78, %c2_79, %c0_80] : memref<1x4x8x8xf32, #tpu.memory_space<vmem>>, vector<1x1x1x8xf32>
    %117 = vector.shape_cast %116 : vector<1x1x1x8xf32> to vector<1x8xf32>
    %118 = vector.shape_cast %115 : vector<1x8xf32> to vector<1x1x1x8xf32>
    tpu.vector_store %arg7[%c0_77, %c0_78, %c2_79, %c0_80], %118 {strides = array<i32>} : memref<1x4x8x8xf32, #tpu.memory_space<vmem>>, vector<1x1x1x8xf32>,
    %119 = vector.extract_strided_slice %100 {offsets = [6, 0], sizes = [1, 8], strides = [1, 1]} : vector<16x8xf32> to vector<1x8xf32>
    %120 = vector.extract_strided_slice %100 {offsets = [7, 0], sizes = [1, 8], strides = [1, 1]} : vector<16x8xf32> to vector<1x8xf32>
    %121 = arith.maximumf %119, %120 : vector<1x8xf32>
    %c0_81 = arith.constant 0 : index
    %c0_82 = arith.constant 0 : index
    %c3_83 = arith.constant 3 : index
    %c0_84 = arith.constant 0 : index
    %122 = vector.load %arg7[%c0_81, %c0_82, %c3_83, %c0_84] : memref<1x4x8x8xf32, #tpu.memory_space<vmem>>, vector<1x1x1x8xf32>
    %123 = vector.shape_cast %122 : vector<1x1x1x8xf32> to vector<1x8xf32>
    %124 = vector.shape_cast %121 : vector<1x8xf32> to vector<1x1x1x8xf32>
    tpu.vector_store %arg7[%c0_81, %c0_82, %c3_83, %c0_84], %124 {strides = array<i32>} : memref<1x4x8x8xf32, #tpu.memory_space<vmem>>, vector<1x1x1x8xf32>,
    %125 = vector.extract_strided_slice %100 {offsets = [8, 0], sizes = [1, 8], strides = [1, 1]} : vector<16x8xf32> to vector<1x8xf32>
    %126 = vector.extract_strided_slice %100 {offsets = [9, 0], sizes = [1, 8], strides = [1, 1]} : vector<16x8xf32> to vector<1x8xf32>
    %127 = arith.maximumf %125, %126 : vector<1x8xf32>
    %c0_85 = arith.constant 0 : index
    %c0_86 = arith.constant 0 : index
    %c4_87 = arith.constant 4 : index
    %c0_88 = arith.constant 0 : index
    %128 = vector.load %arg7[%c0_85, %c0_86, %c4_87, %c0_88] : memref<1x4x8x8xf32, #tpu.memory_space<vmem>>, vector<1x1x1x8xf32>
    %129 = vector.shape_cast %128 : vector<1x1x1x8xf32> to vector<1x8xf32>
    %130 = vector.shape_cast %127 : vector<1x8xf32> to vector<1x1x1x8xf32>
    tpu.vector_store %arg7[%c0_85, %c0_86, %c4_87, %c0_88], %130 {strides = array<i32>} : memref<1x4x8x8xf32, #tpu.memory_space<vmem>>, vector<1x1x1x8xf32>,
    %131 = vector.extract_strided_slice %100 {offsets = [10, 0], sizes = [1, 8], strides = [1, 1]} : vector<16x8xf32> to vector<1x8xf32>
    %132 = vector.extract_strided_slice %100 {offsets = [11, 0], sizes = [1, 8], strides = [1, 1]} : vector<16x8xf32> to vector<1x8xf32>
    %133 = arith.maximumf %131, %132 : vector<1x8xf32>
    %c0_89 = arith.constant 0 : index
    %c0_90 = arith.constant 0 : index
    %c5_91 = arith.constant 5 : index
    %c0_92 = arith.constant 0 : index
    %134 = vector.load %arg7[%c0_89, %c0_90, %c5_91, %c0_92] : memref<1x4x8x8xf32, #tpu.memory_space<vmem>>, vector<1x1x1x8xf32>
    %135 = vector.shape_cast %134 : vector<1x1x1x8xf32> to vector<1x8xf32>
    %136 = vector.shape_cast %133 : vector<1x8xf32> to vector<1x1x1x8xf32>
    tpu.vector_store %arg7[%c0_89, %c0_90, %c5_91, %c0_92], %136 {strides = array<i32>} : memref<1x4x8x8xf32, #tpu.memory_space<vmem>>, vector<1x1x1x8xf32>,
    %137 = vector.extract_strided_slice %100 {offsets = [12, 0], sizes = [1, 8], strides = [1, 1]} : vector<16x8xf32> to vector<1x8xf32>
    %138 = vector.extract_strided_slice %100 {offsets = [13, 0], sizes = [1, 8], strides = [1, 1]} : vector<16x8xf32> to vector<1x8xf32>
    %139 = arith.maximumf %137, %138 : vector<1x8xf32>
    %c0_93 = arith.constant 0 : index
    %c0_94 = arith.constant 0 : index
    %c6_95 = arith.constant 6 : index
    %c0_96 = arith.constant 0 : index
    %140 = vector.load %arg7[%c0_93, %c0_94, %c6_95, %c0_96] : memref<1x4x8x8xf32, #tpu.memory_space<vmem>>, vector<1x1x1x8xf32>
    %141 = vector.shape_cast %140 : vector<1x1x1x8xf32> to vector<1x8xf32>
    %142 = vector.shape_cast %139 : vector<1x8xf32> to vector<1x1x1x8xf32>
    tpu.vector_store %arg7[%c0_93, %c0_94, %c6_95, %c0_96], %142 {strides = array<i32>} : memref<1x4x8x8xf32, #tpu.memory_space<vmem>>, vector<1x1x1x8xf32>,
    %143 = vector.extract_strided_slice %100 {offsets = [14, 0], sizes = [1, 8], strides = [1, 1]} : vector<16x8xf32> to vector<1x8xf32>
    %144 = vector.extract_strided_slice %100 {offsets = [15, 0], sizes = [1, 8], strides = [1, 1]} : vector<16x8xf32> to vector<1x8xf32>
    %145 = arith.maximumf %143, %144 : vector<1x8xf32>
    %c0_97 = arith.constant 0 : index
    %c0_98 = arith.constant 0 : index
    %c7_99 = arith.constant 7 : index
    %c0_100 = arith.constant 0 : index
    %146 = vector.load %arg7[%c0_97, %c0_98, %c7_99, %c0_100] : memref<1x4x8x8xf32, #tpu.memory_space<vmem>>, vector<1x1x1x8xf32>
    %147 = vector.shape_cast %146 : vector<1x1x1x8xf32> to vector<1x8xf32>
    %148 = vector.shape_cast %145 : vector<1x8xf32> to vector<1x1x1x8xf32>
    tpu.vector_store %arg7[%c0_97, %c0_98, %c7_99, %c0_100], %148 {strides = array<i32>} : memref<1x4x8x8xf32, #tpu.memory_space<vmem>>, vector<1x1x1x8xf32>,
    %149 = vector.extract_strided_slice %92 {offsets = [2, 0, 0], sizes = [1, 16, 8], strides = [1, 1, 1]} : vector<8x16x8xf32> to vector<1x16x8xf32>
    %150 = vector.shape_cast %149 : vector<1x16x8xf32> to vector<16x8xf32>
    %151 = vector.extract_strided_slice %92 {offsets = [3, 0, 0], sizes = [1, 16, 8], strides = [1, 1, 1]} : vector<8x16x8xf32> to vector<1x16x8xf32>
    %152 = vector.shape_cast %151 : vector<1x16x8xf32> to vector<16x8xf32>
    %153 = arith.maximumf %150, %152 : vector<16x8xf32>
    %154 = vector.extract_strided_slice %153 {offsets = [0, 0], sizes = [1, 8], strides = [1, 1]} : vector<16x8xf32> to vector<1x8xf32>
    %155 = vector.extract_strided_slice %153 {offsets = [1, 0], sizes = [1, 8], strides = [1, 1]} : vector<16x8xf32> to vector<1x8xf32>
    %156 = arith.maximumf %154, %155 : vector<1x8xf32>
    %c0_101 = arith.constant 0 : index
    %c1_102 = arith.constant 1 : index
    %c0_103 = arith.constant 0 : index
    %c0_104 = arith.constant 0 : index
    %157 = vector.load %arg7[%c0_101, %c1_102, %c0_103, %c0_104] : memref<1x4x8x8xf32, #tpu.memory_space<vmem>>, vector<1x1x1x8xf32>
    %158 = vector.shape_cast %157 : vector<1x1x1x8xf32> to vector<1x8xf32>
    %159 = vector.shape_cast %156 : vector<1x8xf32> to vector<1x1x1x8xf32>
    tpu.vector_store %arg7[%c0_101, %c1_102, %c0_103, %c0_104], %159 {strides = array<i32>} : memref<1x4x8x8xf32, #tpu.memory_space<vmem>>, vector<1x1x1x8xf32>,
    %160 = vector.extract_strided_slice %153 {offsets = [2, 0], sizes = [1, 8], strides = [1, 1]} : vector<16x8xf32> to vector<1x8xf32>
    %161 = vector.extract_strided_slice %153 {offsets = [3, 0], sizes = [1, 8], strides = [1, 1]} : vector<16x8xf32> to vector<1x8xf32>
    %162 = arith.maximumf %160, %161 : vector<1x8xf32>
    %c0_105 = arith.constant 0 : index
    %c1_106 = arith.constant 1 : index
    %c1_107 = arith.constant 1 : index
    %c0_108 = arith.constant 0 : index
    %163 = vector.load %arg7[%c0_105, %c1_106, %c1_107, %c0_108] : memref<1x4x8x8xf32, #tpu.memory_space<vmem>>, vector<1x1x1x8xf32>
    %164 = vector.shape_cast %163 : vector<1x1x1x8xf32> to vector<1x8xf32>
    %165 = vector.shape_cast %162 : vector<1x8xf32> to vector<1x1x1x8xf32>
    tpu.vector_store %arg7[%c0_105, %c1_106, %c1_107, %c0_108], %165 {strides = array<i32>} : memref<1x4x8x8xf32, #tpu.memory_space<vmem>>, vector<1x1x1x8xf32>,
    %166 = vector.extract_strided_slice %153 {offsets = [4, 0], sizes = [1, 8], strides = [1, 1]} : vector<16x8xf32> to vector<1x8xf32>
    %167 = vector.extract_strided_slice %153 {offsets = [5, 0], sizes = [1, 8], strides = [1, 1]} : vector<16x8xf32> to vector<1x8xf32>
    %168 = arith.maximumf %166, %167 : vector<1x8xf32>
    %c0_109 = arith.constant 0 : index
    %c1_110 = arith.constant 1 : index
    %c2_111 = arith.constant 2 : index
    %c0_112 = arith.constant 0 : index
    %169 = vector.load %arg7[%c0_109, %c1_110, %c2_111, %c0_112] : memref<1x4x8x8xf32, #tpu.memory_space<vmem>>, vector<1x1x1x8xf32>
    %170 = vector.shape_cast %169 : vector<1x1x1x8xf32> to vector<1x8xf32>
    %171 = vector.shape_cast %168 : vector<1x8xf32> to vector<1x1x1x8xf32>
    tpu.vector_store %arg7[%c0_109, %c1_110, %c2_111, %c0_112], %171 {strides = array<i32>} : memref<1x4x8x8xf32, #tpu.memory_space<vmem>>, vector<1x1x1x8xf32>,
    %172 = vector.extract_strided_slice %153 {offsets = [6, 0], sizes = [1, 8], strides = [1, 1]} : vector<16x8xf32> to vector<1x8xf32>
    %173 = vector.extract_strided_slice %153 {offsets = [7, 0], sizes = [1, 8], strides = [1, 1]} : vector<16x8xf32> to vector<1x8xf32>
    %174 = arith.maximumf %172, %173 : vector<1x8xf32>
    %c0_113 = arith.constant 0 : index
    %c1_114 = arith.constant 1 : index
    %c3_115 = arith.constant 3 : index
    %c0_116 = arith.constant 0 : index
    %175 = vector.load %arg7[%c0_113, %c1_114, %c3_115, %c0_116] : memref<1x4x8x8xf32, #tpu.memory_space<vmem>>, vector<1x1x1x8xf32>
    %176 = vector.shape_cast %175 : vector<1x1x1x8xf32> to vector<1x8xf32>
    %177 = vector.shape_cast %174 : vector<1x8xf32> to vector<1x1x1x8xf32>
    tpu.vector_store %arg7[%c0_113, %c1_114, %c3_115, %c0_116], %177 {strides = array<i32>} : memref<1x4x8x8xf32, #tpu.memory_space<vmem>>, vector<1x1x1x8xf32>,
    %178 = vector.extract_strided_slice %153 {offsets = [8, 0], sizes = [1, 8], strides = [1, 1]} : vector<16x8xf32> to vector<1x8xf32>
    %179 = vector.extract_strided_slice %153 {offsets = [9, 0], sizes = [1, 8], strides = [1, 1]} : vector<16x8xf32> to vector<1x8xf32>
    %180 = arith.maximumf %178, %179 : vector<1x8xf32>
    %c0_117 = arith.constant 0 : index
    %c1_118 = arith.constant 1 : index
    %c4_119 = arith.constant 4 : index
    %c0_120 = arith.constant 0 : index
    %181 = vector.load %arg7[%c0_117, %c1_118, %c4_119, %c0_120] : memref<1x4x8x8xf32, #tpu.memory_space<vmem>>, vector<1x1x1x8xf32>
    %182 = vector.shape_cast %181 : vector<1x1x1x8xf32> to vector<1x8xf32>
    %183 = vector.shape_cast %180 : vector<1x8xf32> to vector<1x1x1x8xf32>
    tpu.vector_store %arg7[%c0_117, %c1_118, %c4_119, %c0_120], %183 {strides = array<i32>} : memref<1x4x8x8xf32, #tpu.memory_space<vmem>>, vector<1x1x1x8xf32>,
    %184 = vector.extract_strided_slice %153 {offsets = [10, 0], sizes = [1, 8], strides = [1, 1]} : vector<16x8xf32> to vector<1x8xf32>
    %185 = vector.extract_strided_slice %153 {offsets = [11, 0], sizes = [1, 8], strides = [1, 1]} : vector<16x8xf32> to vector<1x8xf32>
    %186 = arith.maximumf %184, %185 : vector<1x8xf32>
    %c0_121 = arith.constant 0 : index
    %c1_122 = arith.constant 1 : index
    %c5_123 = arith.constant 5 : index
    %c0_124 = arith.constant 0 : index
    %187 = vector.load %arg7[%c0_121, %c1_122, %c5_123, %c0_124] : memref<1x4x8x8xf32, #tpu.memory_space<vmem>>, vector<1x1x1x8xf32>
    %188 = vector.shape_cast %187 : vector<1x1x1x8xf32> to vector<1x8xf32>
    %189 = vector.shape_cast %186 : vector<1x8xf32> to vector<1x1x1x8xf32>
    tpu.vector_store %arg7[%c0_121, %c1_122, %c5_123, %c0_124], %189 {strides = array<i32>} : memref<1x4x8x8xf32, #tpu.memory_space<vmem>>, vector<1x1x1x8xf32>,
    %190 = vector.extract_strided_slice %153 {offsets = [12, 0], sizes = [1, 8], strides = [1, 1]} : vector<16x8xf32> to vector<1x8xf32>
    %191 = vector.extract_strided_slice %153 {offsets = [13, 0], sizes = [1, 8], strides = [1, 1]} : vector<16x8xf32> to vector<1x8xf32>
    %192 = arith.maximumf %190, %191 : vector<1x8xf32>
    %c0_125 = arith.constant 0 : index
    %c1_126 = arith.constant 1 : index
    %c6_127 = arith.constant 6 : index
    %c0_128 = arith.constant 0 : index
    %193 = vector.load %arg7[%c0_125, %c1_126, %c6_127, %c0_128] : memref<1x4x8x8xf32, #tpu.memory_space<vmem>>, vector<1x1x1x8xf32>
    %194 = vector.shape_cast %193 : vector<1x1x1x8xf32> to vector<1x8xf32>
    %195 = vector.shape_cast %192 : vector<1x8xf32> to vector<1x1x1x8xf32>
    tpu.vector_store %arg7[%c0_125, %c1_126, %c6_127, %c0_128], %195 {strides = array<i32>} : memref<1x4x8x8xf32, #tpu.memory_space<vmem>>, vector<1x1x1x8xf32>,
    %196 = vector.extract_strided_slice %153 {offsets = [14, 0], sizes = [1, 8], strides = [1, 1]} : vector<16x8xf32> to vector<1x8xf32>
    %197 = vector.extract_strided_slice %153 {offsets = [15, 0], sizes = [1, 8], strides = [1, 1]} : vector<16x8xf32> to vector<1x8xf32>
    %198 = arith.maximumf %196, %197 : vector<1x8xf32>
    %c0_129 = arith.constant 0 : index
    %c1_130 = arith.constant 1 : index
    %c7_131 = arith.constant 7 : index
    %c0_132 = arith.constant 0 : index
    %199 = vector.load %arg7[%c0_129, %c1_130, %c7_131, %c0_132] : memref<1x4x8x8xf32, #tpu.memory_space<vmem>>, vector<1x1x1x8xf32>
    %200 = vector.shape_cast %199 : vector<1x1x1x8xf32> to vector<1x8xf32>
    %201 = vector.shape_cast %198 : vector<1x8xf32> to vector<1x1x1x8xf32>
    tpu.vector_store %arg7[%c0_129, %c1_130, %c7_131, %c0_132], %201 {strides = array<i32>} : memref<1x4x8x8xf32, #tpu.memory_space<vmem>>, vector<1x1x1x8xf32>,
    %202 = vector.extract_strided_slice %92 {offsets = [4, 0, 0], sizes = [1, 16, 8], strides = [1, 1, 1]} : vector<8x16x8xf32> to vector<1x16x8xf32>
    %203 = vector.shape_cast %202 : vector<1x16x8xf32> to vector<16x8xf32>
    %204 = vector.extract_strided_slice %92 {offsets = [5, 0, 0], sizes = [1, 16, 8], strides = [1, 1, 1]} : vector<8x16x8xf32> to vector<1x16x8xf32>
    %205 = vector.shape_cast %204 : vector<1x16x8xf32> to vector<16x8xf32>
    %206 = arith.maximumf %203, %205 : vector<16x8xf32>
    %207 = vector.extract_strided_slice %206 {offsets = [0, 0], sizes = [1, 8], strides = [1, 1]} : vector<16x8xf32> to vector<1x8xf32>
    %208 = vector.extract_strided_slice %206 {offsets = [1, 0], sizes = [1, 8], strides = [1, 1]} : vector<16x8xf32> to vector<1x8xf32>
    %209 = arith.maximumf %207, %208 : vector<1x8xf32>
    %c0_133 = arith.constant 0 : index
    %c2_134 = arith.constant 2 : index
    %c0_135 = arith.constant 0 : index
    %c0_136 = arith.constant 0 : index
    %210 = vector.load %arg7[%c0_133, %c2_134, %c0_135, %c0_136] : memref<1x4x8x8xf32, #tpu.memory_space<vmem>>, vector<1x1x1x8xf32>
    %211 = vector.shape_cast %210 : vector<1x1x1x8xf32> to vector<1x8xf32>
    %212 = vector.shape_cast %209 : vector<1x8xf32> to vector<1x1x1x8xf32>
    tpu.vector_store %arg7[%c0_133, %c2_134, %c0_135, %c0_136], %212 {strides = array<i32>} : memref<1x4x8x8xf32, #tpu.memory_space<vmem>>, vector<1x1x1x8xf32>,
    %213 = vector.extract_strided_slice %206 {offsets = [2, 0], sizes = [1, 8], strides = [1, 1]} : vector<16x8xf32> to vector<1x8xf32>
    %214 = vector.extract_strided_slice %206 {offsets = [3, 0], sizes = [1, 8], strides = [1, 1]} : vector<16x8xf32> to vector<1x8xf32>
    %215 = arith.maximumf %213, %214 : vector<1x8xf32>
    %c0_137 = arith.constant 0 : index
    %c2_138 = arith.constant 2 : index
    %c1_139 = arith.constant 1 : index
    %c0_140 = arith.constant 0 : index
    %216 = vector.load %arg7[%c0_137, %c2_138, %c1_139, %c0_140] : memref<1x4x8x8xf32, #tpu.memory_space<vmem>>, vector<1x1x1x8xf32>
    %217 = vector.shape_cast %216 : vector<1x1x1x8xf32> to vector<1x8xf32>
    %218 = vector.shape_cast %215 : vector<1x8xf32> to vector<1x1x1x8xf32>
    tpu.vector_store %arg7[%c0_137, %c2_138, %c1_139, %c0_140], %218 {strides = array<i32>} : memref<1x4x8x8xf32, #tpu.memory_space<vmem>>, vector<1x1x1x8xf32>,
    %219 = vector.extract_strided_slice %206 {offsets = [4, 0], sizes = [1, 8], strides = [1, 1]} : vector<16x8xf32> to vector<1x8xf32>
    %220 = vector.extract_strided_slice %206 {offsets = [5, 0], sizes = [1, 8], strides = [1, 1]} : vector<16x8xf32> to vector<1x8xf32>
    %221 = arith.maximumf %219, %220 : vector<1x8xf32>
    %c0_141 = arith.constant 0 : index
    %c2_142 = arith.constant 2 : index
    %c2_143 = arith.constant 2 : index
    %c0_144 = arith.constant 0 : index
    %222 = vector.load %arg7[%c0_141, %c2_142, %c2_143, %c0_144] : memref<1x4x8x8xf32, #tpu.memory_space<vmem>>, vector<1x1x1x8xf32>
    %223 = vector.shape_cast %222 : vector<1x1x1x8xf32> to vector<1x8xf32>
    %224 = vector.shape_cast %221 : vector<1x8xf32> to vector<1x1x1x8xf32>
    tpu.vector_store %arg7[%c0_141, %c2_142, %c2_143, %c0_144], %224 {strides = array<i32>} : memref<1x4x8x8xf32, #tpu.memory_space<vmem>>, vector<1x1x1x8xf32>,
    %225 = vector.extract_strided_slice %206 {offsets = [6, 0], sizes = [1, 8], strides = [1, 1]} : vector<16x8xf32> to vector<1x8xf32>
    %226 = vector.extract_strided_slice %206 {offsets = [7, 0], sizes = [1, 8], strides = [1, 1]} : vector<16x8xf32> to vector<1x8xf32>
    %227 = arith.maximumf %225, %226 : vector<1x8xf32>
    %c0_145 = arith.constant 0 : index
    %c2_146 = arith.constant 2 : index
    %c3_147 = arith.constant 3 : index
    %c0_148 = arith.constant 0 : index
    %228 = vector.load %arg7[%c0_145, %c2_146, %c3_147, %c0_148] : memref<1x4x8x8xf32, #tpu.memory_space<vmem>>, vector<1x1x1x8xf32>
    %229 = vector.shape_cast %228 : vector<1x1x1x8xf32> to vector<1x8xf32>
    %230 = vector.shape_cast %227 : vector<1x8xf32> to vector<1x1x1x8xf32>
    tpu.vector_store %arg7[%c0_145, %c2_146, %c3_147, %c0_148], %230 {strides = array<i32>} : memref<1x4x8x8xf32, #tpu.memory_space<vmem>>, vector<1x1x1x8xf32>,
    %231 = vector.extract_strided_slice %206 {offsets = [8, 0], sizes = [1, 8], strides = [1, 1]} : vector<16x8xf32> to vector<1x8xf32>
    %232 = vector.extract_strided_slice %206 {offsets = [9, 0], sizes = [1, 8], strides = [1, 1]} : vector<16x8xf32> to vector<1x8xf32>
    %233 = arith.maximumf %231, %232 : vector<1x8xf32>
    %c0_149 = arith.constant 0 : index
    %c2_150 = arith.constant 2 : index
    %c4_151 = arith.constant 4 : index
    %c0_152 = arith.constant 0 : index
    %234 = vector.load %arg7[%c0_149, %c2_150, %c4_151, %c0_152] : memref<1x4x8x8xf32, #tpu.memory_space<vmem>>, vector<1x1x1x8xf32>
    %235 = vector.shape_cast %234 : vector<1x1x1x8xf32> to vector<1x8xf32>
    %236 = vector.shape_cast %233 : vector<1x8xf32> to vector<1x1x1x8xf32>
    tpu.vector_store %arg7[%c0_149, %c2_150, %c4_151, %c0_152], %236 {strides = array<i32>} : memref<1x4x8x8xf32, #tpu.memory_space<vmem>>, vector<1x1x1x8xf32>,
    %237 = vector.extract_strided_slice %206 {offsets = [10, 0], sizes = [1, 8], strides = [1, 1]} : vector<16x8xf32> to vector<1x8xf32>
    %238 = vector.extract_strided_slice %206 {offsets = [11, 0], sizes = [1, 8], strides = [1, 1]} : vector<16x8xf32> to vector<1x8xf32>
    %239 = arith.maximumf %237, %238 : vector<1x8xf32>
    %c0_153 = arith.constant 0 : index
    %c2_154 = arith.constant 2 : index
    %c5_155 = arith.constant 5 : index
    %c0_156 = arith.constant 0 : index
    %240 = vector.load %arg7[%c0_153, %c2_154, %c5_155, %c0_156] : memref<1x4x8x8xf32, #tpu.memory_space<vmem>>, vector<1x1x1x8xf32>
    %241 = vector.shape_cast %240 : vector<1x1x1x8xf32> to vector<1x8xf32>
    %242 = vector.shape_cast %239 : vector<1x8xf32> to vector<1x1x1x8xf32>
    tpu.vector_store %arg7[%c0_153, %c2_154, %c5_155, %c0_156], %242 {strides = array<i32>} : memref<1x4x8x8xf32, #tpu.memory_space<vmem>>, vector<1x1x1x8xf32>,
    %243 = vector.extract_strided_slice %206 {offsets = [12, 0], sizes = [1, 8], strides = [1, 1]} : vector<16x8xf32> to vector<1x8xf32>
    %244 = vector.extract_strided_slice %206 {offsets = [13, 0], sizes = [1, 8], strides = [1, 1]} : vector<16x8xf32> to vector<1x8xf32>
    %245 = arith.maximumf %243, %244 : vector<1x8xf32>
    %c0_157 = arith.constant 0 : index
    %c2_158 = arith.constant 2 : index
    %c6_159 = arith.constant 6 : index
    %c0_160 = arith.constant 0 : index
    %246 = vector.load %arg7[%c0_157, %c2_158, %c6_159, %c0_160] : memref<1x4x8x8xf32, #tpu.memory_space<vmem>>, vector<1x1x1x8xf32>
    %247 = vector.shape_cast %246 : vector<1x1x1x8xf32> to vector<1x8xf32>
    %248 = vector.shape_cast %245 : vector<1x8xf32> to vector<1x1x1x8xf32>
    tpu.vector_store %arg7[%c0_157, %c2_158, %c6_159, %c0_160], %248 {strides = array<i32>} : memref<1x4x8x8xf32, #tpu.memory_space<vmem>>, vector<1x1x1x8xf32>,
    %249 = vector.extract_strided_slice %206 {offsets = [14, 0], sizes = [1, 8], strides = [1, 1]} : vector<16x8xf32> to vector<1x8xf32>
    %250 = vector.extract_strided_slice %206 {offsets = [15, 0], sizes = [1, 8], strides = [1, 1]} : vector<16x8xf32> to vector<1x8xf32>
    %251 = arith.maximumf %249, %250 : vector<1x8xf32>
    %c0_161 = arith.constant 0 : index
    %c2_162 = arith.constant 2 : index
    %c7_163 = arith.constant 7 : index
    %c0_164 = arith.constant 0 : index
    %252 = vector.load %arg7[%c0_161, %c2_162, %c7_163, %c0_164] : memref<1x4x8x8xf32, #tpu.memory_space<vmem>>, vector<1x1x1x8xf32>
    %253 = vector.shape_cast %252 : vector<1x1x1x8xf32> to vector<1x8xf32>
    %254 = vector.shape_cast %251 : vector<1x8xf32> to vector<1x1x1x8xf32>
    tpu.vector_store %arg7[%c0_161, %c2_162, %c7_163, %c0_164], %254 {strides = array<i32>} : memref<1x4x8x8xf32, #tpu.memory_space<vmem>>, vector<1x1x1x8xf32>,
    %255 = vector.extract_strided_slice %92 {offsets = [6, 0, 0], sizes = [1, 16, 8], strides = [1, 1, 1]} : vector<8x16x8xf32> to vector<1x16x8xf32>
    %256 = vector.shape_cast %255 : vector<1x16x8xf32> to vector<16x8xf32>
    %257 = vector.extract_strided_slice %92 {offsets = [7, 0, 0], sizes = [1, 16, 8], strides = [1, 1, 1]} : vector<8x16x8xf32> to vector<1x16x8xf32>
    %258 = vector.shape_cast %257 : vector<1x16x8xf32> to vector<16x8xf32>
    %259 = arith.maximumf %256, %258 : vector<16x8xf32>
    %260 = vector.extract_strided_slice %259 {offsets = [0, 0], sizes = [1, 8], strides = [1, 1]} : vector<16x8xf32> to vector<1x8xf32>
    %261 = vector.extract_strided_slice %259 {offsets = [1, 0], sizes = [1, 8], strides = [1, 1]} : vector<16x8xf32> to vector<1x8xf32>
    %262 = arith.maximumf %260, %261 : vector<1x8xf32>
    %c0_165 = arith.constant 0 : index
    %c3_166 = arith.constant 3 : index
    %c0_167 = arith.constant 0 : index
    %c0_168 = arith.constant 0 : index
    %263 = vector.load %arg7[%c0_165, %c3_166, %c0_167, %c0_168] : memref<1x4x8x8xf32, #tpu.memory_space<vmem>>, vector<1x1x1x8xf32>
    %264 = vector.shape_cast %263 : vector<1x1x1x8xf32> to vector<1x8xf32>
    %265 = vector.shape_cast %262 : vector<1x8xf32> to vector<1x1x1x8xf32>
    tpu.vector_store %arg7[%c0_165, %c3_166, %c0_167, %c0_168], %265 {strides = array<i32>} : memref<1x4x8x8xf32, #tpu.memory_space<vmem>>, vector<1x1x1x8xf32>,
    %266 = vector.extract_strided_slice %259 {offsets = [2, 0], sizes = [1, 8], strides = [1, 1]} : vector<16x8xf32> to vector<1x8xf32>
    %267 = vector.extract_strided_slice %259 {offsets = [3, 0], sizes = [1, 8], strides = [1, 1]} : vector<16x8xf32> to vector<1x8xf32>
    %268 = arith.maximumf %266, %267 : vector<1x8xf32>
    %c0_169 = arith.constant 0 : index
    %c3_170 = arith.constant 3 : index
    %c1_171 = arith.constant 1 : index
    %c0_172 = arith.constant 0 : index
    %269 = vector.load %arg7[%c0_169, %c3_170, %c1_171, %c0_172] : memref<1x4x8x8xf32, #tpu.memory_space<vmem>>, vector<1x1x1x8xf32>
    %270 = vector.shape_cast %269 : vector<1x1x1x8xf32> to vector<1x8xf32>
    %271 = vector.shape_cast %268 : vector<1x8xf32> to vector<1x1x1x8xf32>
    tpu.vector_store %arg7[%c0_169, %c3_170, %c1_171, %c0_172], %271 {strides = array<i32>} : memref<1x4x8x8xf32, #tpu.memory_space<vmem>>, vector<1x1x1x8xf32>,
    %272 = vector.extract_strided_slice %259 {offsets = [4, 0], sizes = [1, 8], strides = [1, 1]} : vector<16x8xf32> to vector<1x8xf32>
    %273 = vector.extract_strided_slice %259 {offsets = [5, 0], sizes = [1, 8], strides = [1, 1]} : vector<16x8xf32> to vector<1x8xf32>
    %274 = arith.maximumf %272, %273 : vector<1x8xf32>
    %c0_173 = arith.constant 0 : index
    %c3_174 = arith.constant 3 : index
    %c2_175 = arith.constant 2 : index
    %c0_176 = arith.constant 0 : index
    %275 = vector.load %arg7[%c0_173, %c3_174, %c2_175, %c0_176] : memref<1x4x8x8xf32, #tpu.memory_space<vmem>>, vector<1x1x1x8xf32>
    %276 = vector.shape_cast %275 : vector<1x1x1x8xf32> to vector<1x8xf32>
    %277 = vector.shape_cast %274 : vector<1x8xf32> to vector<1x1x1x8xf32>
    tpu.vector_store %arg7[%c0_173, %c3_174, %c2_175, %c0_176], %277 {strides = array<i32>} : memref<1x4x8x8xf32, #tpu.memory_space<vmem>>, vector<1x1x1x8xf32>,
    %278 = vector.extract_strided_slice %259 {offsets = [6, 0], sizes = [1, 8], strides = [1, 1]} : vector<16x8xf32> to vector<1x8xf32>
    %279 = vector.extract_strided_slice %259 {offsets = [7, 0], sizes = [1, 8], strides = [1, 1]} : vector<16x8xf32> to vector<1x8xf32>
    %280 = arith.maximumf %278, %279 : vector<1x8xf32>
    %c0_177 = arith.constant 0 : index
    %c3_178 = arith.constant 3 : index
    %c3_179 = arith.constant 3 : index
    %c0_180 = arith.constant 0 : index
    %281 = vector.load %arg7[%c0_177, %c3_178, %c3_179, %c0_180] : memref<1x4x8x8xf32, #tpu.memory_space<vmem>>, vector<1x1x1x8xf32>
    %282 = vector.shape_cast %281 : vector<1x1x1x8xf32> to vector<1x8xf32>
    %283 = vector.shape_cast %280 : vector<1x8xf32> to vector<1x1x1x8xf32>
    tpu.vector_store %arg7[%c0_177, %c3_178, %c3_179, %c0_180], %283 {strides = array<i32>} : memref<1x4x8x8xf32, #tpu.memory_space<vmem>>, vector<1x1x1x8xf32>,
    %284 = vector.extract_strided_slice %259 {offsets = [8, 0], sizes = [1, 8], strides = [1, 1]} : vector<16x8xf32> to vector<1x8xf32>
    %285 = vector.extract_strided_slice %259 {offsets = [9, 0], sizes = [1, 8], strides = [1, 1]} : vector<16x8xf32> to vector<1x8xf32>
    %286 = arith.maximumf %284, %285 : vector<1x8xf32>
    %c0_181 = arith.constant 0 : index
    %c3_182 = arith.constant 3 : index
    %c4_183 = arith.constant 4 : index
    %c0_184 = arith.constant 0 : index
    %287 = vector.load %arg7[%c0_181, %c3_182, %c4_183, %c0_184] : memref<1x4x8x8xf32, #tpu.memory_space<vmem>>, vector<1x1x1x8xf32>
    %288 = vector.shape_cast %287 : vector<1x1x1x8xf32> to vector<1x8xf32>
    %289 = vector.shape_cast %286 : vector<1x8xf32> to vector<1x1x1x8xf32>
    tpu.vector_store %arg7[%c0_181, %c3_182, %c4_183, %c0_184], %289 {strides = array<i32>} : memref<1x4x8x8xf32, #tpu.memory_space<vmem>>, vector<1x1x1x8xf32>,
    %290 = vector.extract_strided_slice %259 {offsets = [10, 0], sizes = [1, 8], strides = [1, 1]} : vector<16x8xf32> to vector<1x8xf32>
    %291 = vector.extract_strided_slice %259 {offsets = [11, 0], sizes = [1, 8], strides = [1, 1]} : vector<16x8xf32> to vector<1x8xf32>
    %292 = arith.maximumf %290, %291 : vector<1x8xf32>
    %c0_185 = arith.constant 0 : index
    %c3_186 = arith.constant 3 : index
    %c5_187 = arith.constant 5 : index
    %c0_188 = arith.constant 0 : index
    %293 = vector.load %arg7[%c0_185, %c3_186, %c5_187, %c0_188] : memref<1x4x8x8xf32, #tpu.memory_space<vmem>>, vector<1x1x1x8xf32>
    %294 = vector.shape_cast %293 : vector<1x1x1x8xf32> to vector<1x8xf32>
    %295 = vector.shape_cast %292 : vector<1x8xf32> to vector<1x1x1x8xf32>
    tpu.vector_store %arg7[%c0_185, %c3_186, %c5_187, %c0_188], %295 {strides = array<i32>} : memref<1x4x8x8xf32, #tpu.memory_space<vmem>>, vector<1x1x1x8xf32>,
    %296 = vector.extract_strided_slice %259 {offsets = [12, 0], sizes = [1, 8], strides = [1, 1]} : vector<16x8xf32> to vector<1x8xf32>
    %297 = vector.extract_strided_slice %259 {offsets = [13, 0], sizes = [1, 8], strides = [1, 1]} : vector<16x8xf32> to vector<1x8xf32>
    %298 = arith.maximumf %296, %297 : vector<1x8xf32>
    %c0_189 = arith.constant 0 : index
    %c3_190 = arith.constant 3 : index
    %c6_191 = arith.constant 6 : index
    %c0_192 = arith.constant 0 : index
    %299 = vector.load %arg7[%c0_189, %c3_190, %c6_191, %c0_192] : memref<1x4x8x8xf32, #tpu.memory_space<vmem>>, vector<1x1x1x8xf32>
    %300 = vector.shape_cast %299 : vector<1x1x1x8xf32> to vector<1x8xf32>
    %301 = vector.shape_cast %298 : vector<1x8xf32> to vector<1x1x1x8xf32>
    tpu.vector_store %arg7[%c0_189, %c3_190, %c6_191, %c0_192], %301 {strides = array<i32>} : memref<1x4x8x8xf32, #tpu.memory_space<vmem>>, vector<1x1x1x8xf32>,
    %302 = vector.extract_strided_slice %259 {offsets = [14, 0], sizes = [1, 8], strides = [1, 1]} : vector<16x8xf32> to vector<1x8xf32>
    %303 = vector.extract_strided_slice %259 {offsets = [15, 0], sizes = [1, 8], strides = [1, 1]} : vector<16x8xf32> to vector<1x8xf32>
    %304 = arith.maximumf %302, %303 : vector<1x8xf32>
    %c0_193 = arith.constant 0 : index
    %c3_194 = arith.constant 3 : index
    %c7_195 = arith.constant 7 : index
    %c0_196 = arith.constant 0 : index
    %305 = vector.load %arg7[%c0_193, %c3_194, %c7_195, %c0_196] : memref<1x4x8x8xf32, #tpu.memory_space<vmem>>, vector<1x1x1x8xf32>
    %306 = vector.shape_cast %305 : vector<1x1x1x8xf32> to vector<1x8xf32>
    %307 = vector.shape_cast %304 : vector<1x8xf32> to vector<1x1x1x8xf32>
    tpu.vector_store %arg7[%c0_193, %c3_194, %c7_195, %c0_196], %307 {strides = array<i32>} : memref<1x4x8x8xf32, #tpu.memory_space<vmem>>, vector<1x1x1x8xf32>,
    return
  }
  func.func @transform_0(%arg0: i32, %arg1: i32) -> (i32, i32, i32, i32) {
    %c0_i32 = arith.constant 0 : i32
    %c0_i32_0 = arith.constant 0 : i32
    %c0_i32_1 = arith.constant 0 : i32
    %c0_i32_2 = arith.constant 0 : i32
    return %arg0, %c0_i32, %c0_i32_0, %c0_i32_1 : i32, i32, i32, i32
  }
  func.func @transform_1(%arg0: i32, %arg1: i32) -> (i32, i32, i32) {
    %c0_i32 = arith.constant 0 : i32
    %c0_i32_0 = arith.constant 0 : i32
    %c0_i32_1 = arith.constant 0 : i32
    %c0_i32_2 = arith.constant 0 : i32
    return %c0_i32, %c0_i32_0, %c0_i32_1 : i32, i32, i32
  }
  func.func @transform_2(%arg0: i32, %arg1: i32) -> (i32, i32) {
    %c0_i32 = arith.constant 0 : i32
    %c0_i32_0 = arith.constant 0 : i32
    %c0_i32_1 = arith.constant 0 : i32
    return %c0_i32, %c0_i32_0 : i32, i32
  }
  func.func @transform_3(%arg0: i32, %arg1: i32) -> (i32, i32) {
    %c0_i32 = arith.constant 0 : i32
    %c0_i32_0 = arith.constant 0 : i32
    %c0_i32_1 = arith.constant 0 : i32
    return %c0_i32, %c0_i32_0 : i32, i32
  }
  func.func @transform_4(%arg0: i32, %arg1: i32) -> (i32, i32, i32, i32) {
    %c0_i32 = arith.constant 0 : i32
    %c0_i32_0 = arith.constant 0 : i32
    %c0_i32_1 = arith.constant 0 : i32
    return %arg0, %arg1, %c0_i32, %c0_i32_0 : i32, i32, i32, i32
  }
  func.func @transform_5(%arg0: i32, %arg1: i32) -> (i32, i32, i32, i32) {
    %c0_i32 = arith.constant 0 : i32
    %c0_i32_0 = arith.constant 0 : i32
    %c0_i32_1 = arith.constant 0 : i32
    return %arg0, %arg1, %c0_i32, %c0_i32_0 : i32, i32, i32, i32
  }
}

</mosaic_0001>

<bundles_post_ra>
// kernel: encoder_block_forward.2
= control target key start
LH: loop header
LB: loop body
LE: loop exit
PB: predicated region body
PF: predicated region fallthrough
CT: control target
= control target key end

     0   :  { %s3772_s15 = smov 0   ;;  %s3774_s16 = smov 0   ;;  %s4764_s0 = inlined_call_operand.vmem [shape: bf16[2,18,18,4], index: 0, kind: input, shape index: {}]   ;;  %s4765_s1 = inlined_call_operand.vmem [shape: bf16[9,4,8], index: 1, kind: input, shape index: {}]   ;;  %s4766_s2 = inlined_call_operand.vmem [shape: f32[1,8], index: 2, kind: input, shape index: {}]   ;;  %s4767_s3 = inlined_call_operand.vmem [shape: f32[1,8], index: 3, kind: input, shape index: {}]   ;;  %s4768_s4 = inlined_call_operand.vmem [shape: bf16[2,16,16,8], index: 4, kind: output, shape index: {}]  }
   0x1   :  { %s3776_s17 = smov 0   ;;  %s3778_s18 = smov 0  }
   0x2   :  { %s3780_s19 = smov 0  }
   0x3 LB: > { %s23_s20 = sadd.s32 1, %s3737_s17  ;;  %s26_s21 = sadd.s32 1, %s3741_s18  ;;  %s3745_s19 = sphi %s3780_s19, %s14_s19   ;;  %s3741_s18 = sphi %s3778_s18, %s4794_s18   ;;  %s3737_s17 = sphi %s3776_s17, %s4793_s17   ;;  %s3733_s16 = sphi %s3774_s16, %s4792_s16   ;;  %s3729_s15 = sphi %s3772_s15, %s4791_s15  }
   0x4   : > { %p24_p0 = scmp.ge.s32.totalorder %s23_s20, 2  ;;  %p2936_p1 = scmp.ge.s32.totalorder %s3745_s19, 1 }
   0x5   : > { %p176_p2 = scmp.lt.s32.totalorder %s3745_s19, 5 }
   0x6   : > { %s4796_s20 = smov (%p24_p0, %s23_s20), 0  ;;  %s4798_s21 = smov (!%p24_p0, %s26_s21), %s3741_s18 }
   0x7   : > { %p177_p3 = pnand %p2936_p1, %p176_p2  ;;  %p28_p4 = scmp.ge.s32.totalorder %s4798_s21, 2 }
   0x9   : > { %s4800_s21 = smov (%p28_p4, %s4798_s21), 0  ;;  %180 = sbr.rel (%p177_p3) target bundleno = 425 (0x1a9), region = 36 }
  0x10   : > { %v2945_v0 = vld [vmem:[%s4765_s1 + $0x2] sm:$0x3]  ;;  %vm499_vm0 = vcmask 1041408   ;;  %v3062_v1 = vld [vmem:[%s4765_s1 + $0x8] sm:$0x3]  ;;  %p207_p5 = scmp.lt.s32.totalorder %s3733_s16, 1 }
  0x11   : > { %3631 = vmatprep.subr.msk.bf16.mxu1 %vm499_vm0, %v2945_v0  ;;  %3635 = vmatprep.subr.msk.bf16.mxu0 %vm499_vm0, %v3062_v1  ;;  %v501_v2 = vsel %vm499_vm0, %v2945_v0, 0  ;;  %v3814_v3 = vsel %vm499_vm0, %v3062_v1, 0  ;;  %v244_v4 = vld [vmem:[%s4765_s1] sm:$0x3]  ;;  %s3241_s28 = smul.u32 96, %s3729_s15  ;;  %vm474_vm3 = vcmask 31744  }
  0x12   : > { %3340 = vmatpush3.bf16.msra.mxu1 %v501_v2  ;;  %3412 = vmatpush3.bf16.msra.mxu0 %v3814_v3  ;;  %s4802_s16 = smov (!%p207_p5, %s3733_s16), 1  ;;  %v3095_v5 = vld [vmem:[%s4765_s1 + $0xa] sm:$0x3]  ;;  %vm253_vm1 = vsmask.f32 3328  ;;  %v3856_v17 = vsel %vm499_vm0, %v244_v4, 0 }
  0x13   : > { %3632 = vmatprep.subr.msk.bf16.mxu1 %vm499_vm0, %v244_v4  ;;  %s3641_s5 = smul.u32 216, %s4802_s16  ;;  %3637 = vmatprep.subr.msk.bf16.mxu0 %vm499_vm0, %v3095_v5  ;;  %vm254_vm2 = vsmask.f32 7440  ;;  %v3862_v26 = vld [vmem:[%s4765_s1 + $0xc] sm:$0x3]  ;;  %v3879_v37 = vsel %vm499_vm0, %v3095_v5, 0 }
  0x14   : > { %vm3871_vm4 = vmor %vm253_vm1, %vm254_vm2  ;;  %v3883_v41 = vsel %vm499_vm0, %v3862_v26, 0  ;;  %vm788_vm5 = vcmask 1042432   ;;  %vm789_vm6 = vcmask 1046532   ;;  %s2938_s29 = sshll.u32 %s3729_s15, 3  ;;  %vm2815_vm8 = vcmask 60416  }
  0x15   : > { %s211_s8 = scalar_lea.vmem %s4764_s0, %s3641_s5  ;;  %vm4026_vm7 = vmor %vm788_vm5, %vm789_vm6  ;;  %p215_p6 = scmp.lt.s32.totalorder %s2938_s29, 15 }
  0x16   : > { %s3832_s9 = scalar_lea.vmem %s211_s8, %s3241_s28  ;;  %s2940_s5 = sshll.u32 %s4802_s16, 5 }
  0x17   : > { %v3835_v6 = vld [vmem:[%s3832_s9] sm:$0xf]  ;;  %v3838_v7 = vld [vmem:[%s3832_s9 + $0x4] sm:$0xf]  ;;  %v3841_v8 = vld [vmem:[%s3832_s9 + $0x8] sm:$0x1] }
  0x18   : > { %v257_v9 = vshrl.u32 %v3835_v6, 16  ;;  %v260_v10 = vshll.u32 %v3835_v6, 16  ;;  %v266_v11 = vshll.u32 %v3838_v7, 16  ;;  %v270_v12 = vshrl.u32 %v3838_v7, 16  ;;  %v3038_v13 = vld [vmem:[%s3832_s9 + $0xc] sm:$0xf] }
  0x19   : > { %v276_v14 = vshll.u32 %v3841_v8, 16  ;;  %v3850_v15 = vld [vmem:[%s3832_s9 + $0x10] sm:$0xf]  ;;  %v3853_v16 = vld [vmem:[%s3832_s9 + $0x14] sm:$0x1]  ;;  %v1240_v23 = vshrl.u32 %v3038_v13, 16 }
  0x1a   : > { %v259_v18 = vrot.slane %v257_v9, 4  ;;  %v262_v19 = vrot.slane %v260_v10, 5  ;;  %v268_v20 = vrot.slane %v266_v11, 5  ;;  %v272_v21 = vrot.slane %v270_v12, 4  ;;  %v3867_v31 = vld [vmem:[%s3832_s9 + $0xc] sm:$0xf] }
  0x1b   : > { %v278_v22 = vrot.slane %v276_v14, 5  ;;  %v1243_v24 = vshll.u32 %v3038_v13, 16  ;;  %v1249_v25 = vshll.u32 %v3850_v15, 16  ;;  %v1253_v29 = vshrl.u32 %v3850_v15, 16  ;;  %v3876_v36 = vld [vmem:[%s3832_s9 + $0x10] sm:$0xf] }
  0x1c   : > { %v263_v27 = vor.u32 %v262_v19, %v259_v18  ;;  %v273_v28 = vor.u32 %v272_v21, %v268_v20  ;;  %v1259_v30 = vshll.u32 %v3853_v16, 16  ;;  %v1242_v33 = vrot.slane %v1240_v23, 4  ;;  %v3886_v44 = vld [vmem:[%s3832_s9 + $0x14] sm:$0x1]  ;;  %v3041_v55 = vld [vmem:[%s3832_s9 + $0x18] sm:$0xf] }
  0x1d   : > { %v1245_v34 = vrot.slane %v1243_v24, 5  ;;  %v1251_v35 = vrot.slane %v1249_v25, 5  ;;  %v1255_v40 = vrot.slane %v1253_v29, 4  ;;  %v281_v45 = vshrl.u32 %v3867_v31, 16  ;;  %v3899_v60 = vld [vmem:[%s3832_s9 + $0x1c] sm:$0xf] }
  0x1e   : > { %v264_v38 = vrot.slane %v263_v27, 4  ;;  %v274_v39 = vrot.slane %v273_v28, 4  ;;  %v1261_v43 = vrot.slane %v1259_v30, 5  ;;  %v284_v46 = vshll.u32 %v3867_v31, 16  ;;  %v3907_v1 = vld [vmem:[%s3832_s9 + $0x20] sm:$0x1] }
  0x1f   : > { %v1246_v42 = vor.u32 %v1245_v34, %v1242_v33  ;;  %v1256_v49 = vor.u32 %v1255_v40, %v1251_v35  ;;  %v290_v50 = vshll.u32 %v3876_v36, 16  ;;  %v283_v53 = vrot.slane %v281_v45, 4  ;;  %v3915_v21 = vld [vmem:[%s3832_s9 + $0x18] sm:$0xf]  ;;  %v3922_v27 = vld [vmem:[%s3832_s9 + $0x1c] sm:$0xf] }
  0x20   : > { %v269_v47 = vsel %vm3871_vm4, %v264_v38, %v268_v20  ;;  %v279_v48 = vsel %vm3871_vm4, %v274_v39, %v278_v22  ;;  %v286_v54 = vrot.slane %v284_v46, 5  ;;  %v294_v58 = vshrl.u32 %v3876_v36, 16  ;;  %v3930_v38 = vld [vmem:[%s3832_s9 + $0x20] sm:$0x1]  ;;  %s4804_s29 = smov (!%p215_p6, %s2938_s29), 15 }
  0x21   : > { %v2946_v51 = vcombine.low %v269_v47, %v279_v48  ;;  %v1247_v52 = vrot.slane %v1246_v42, 4  ;;  %v1257_v56 = vrot.slane %v1256_v49, 4  ;;  %v292_v57 = vrot.slane %v290_v50, 5  ;;  %v3044_v47 = vld [vmem:[%s3832_s9 + $0x24] sm:$0xf]  ;;  %s2939_s30 = sshll.u32 %s4804_s29, 1 }
  0x22   : > { %v300_v59 = vshll.u32 %v3886_v44, 16  ;;  %v1631_v62 = vrot.slane %v3850_v15, 5  ;;  %v1634_v63 = vrot.slane %v3853_v16, 5  ;;  %v287_v0 = vor.u32 %v286_v54, %v283_v53  ;;  %s219_s8 = sadd.s32 %s2940_s5, %s2939_s30 }
  0x23   : > { %3341 = vmatprep.mubr.msk.bf16.mxu1 %vm474_vm3, %v2946_v51  ;;  %v1252_v61 = vsel %vm3871_vm4, %v1247_v52, %v1251_v35  ;;  %v1262_v2 = vsel %vm3871_vm4, %v1257_v56, %v1261_v43  ;;  %v296_v4 = vrot.slane %v294_v58, 4  ;;  %v1264_v9 = vshrl.u32 %v3041_v55, 16  ;;  %v3940_v52 = vld [vmem:[%s3832_s9 + $0x28] sm:$0xf]  ;;  %s2941_s15 = sshll.u32 %s219_s8, 2 }
  0x24   : > { %v302_v5 = vrot.slane %v300_v59, 5  ;;  %v3063_v10 = vcombine.low %v1252_v61, %v1262_v2  ;;  %v288_v11 = vrot.slane %v287_v0, 4  ;;  %v1267_v12 = vshll.u32 %v3041_v55, 16  ;;  %v3952_v61 = vld [vmem:[%s3832_s9 + $0x2c] sm:$0x1]  ;;  %s4690_s12 = scalar_lea.vmem %s4768_s4, %s2941_s15 }
  0x25   : > { %v1273_v13 = vshll.u32 %v3899_v60, 16  ;;  %v297_v14 = vor.u32 %v296_v4, %v292_v57  ;;  %v1266_v18 = vrot.slane %v1264_v9, 4  ;;  %v1277_v19 = vshrl.u32 %v3899_v60, 16 }
  0x26   : > { %v1283_v20 = vshll.u32 %v3907_v1, 16  ;;  %3413 = vmatprep.mubr.msk.bf16.mxu0 %vm474_vm3, %v3063_v10  ;;  %v293_v22 = vsel %vm3871_vm4, %v288_v11, %v292_v57  ;;  %v1269_v23 = vrot.slane %v1267_v12, 5  ;;  %v1638_v25 = vrot.slane %v3899_v60, 5  ;;  %v3946_v57 = vld [vmem:[%s4765_s1 + $0x4] sm:$0x3] }
  0x27   : > { %v1275_v24 = vrot.slane %v1273_v13, 5  ;;  %v298_v28 = vrot.slane %v297_v14, 4  ;;  %v1279_v29 = vrot.slane %v1277_v19, 4  ;;  %v1641_v33 = vrot.slane %v3907_v1, 5  ;;  %v3959_v11 = vld [vmem:[%s3832_s9 + $0x24] sm:$0xf] }
  0x28   : > { %v1285_v30 = vrot.slane %v1283_v20, 5  ;;  %v1270_v34 = vor.u32 %v1269_v23, %v1266_v18  ;;  %v3927_v35 = vrot.slane %v1638_v25, 4  ;;  %v305_v39 = vshrl.u32 %v3915_v21, 16  ;;  %v3962_v19 = vld [vmem:[%s3832_s9 + $0x28] sm:$0xf] }
  0x29   : > { %v308_v40 = vshll.u32 %v3915_v21, 16  ;;  %v303_v42 = vsel %vm3871_vm4, %v298_v28, %v302_v5  ;;  %v1280_v43 = vor.u32 %v1279_v29, %v1275_v24  ;;  %v314_v45 = vshll.u32 %v3922_v27, 16  ;;  %v3972_v29 = vld [vmem:[%s3832_s9 + $0x2c] sm:$0x1] }
  0x2a   : > { %v318_v46 = vshrl.u32 %v3922_v27, 16  ;;  %v2947_v48 = vcombine.low %v293_v22, %v303_v42  ;;  %v1271_v49 = vrot.slane %v1270_v34, 4  ;;  %v307_v50 = vrot.slane %v305_v39, 4 }
  0x2b   : > { %v310_v51 = vrot.slane %v308_v40, 5  ;;  %v1281_v53 = vrot.slane %v1280_v43, 4  ;;  %v316_v54 = vrot.slane %v314_v45, 5  ;;  %v324_v56 = vshll.u32 %v3930_v38, 16  ;;  %v3047_v45 = vld [vmem:[%s3832_s9 + $0x30] sm:$0xf] }
  0x2c   : > { %v320_v55 = vrot.slane %v318_v46, 4  ;;  %3342 = vmatmul.mubr.msk.bf16.vlgmr.msra.gmra.mrb[0].mxu1 %vm474_vm3, %v2947_v48  ;;  %v1276_v58 = vsel %vm3871_vm4, %v1271_v49, %v1275_v24  ;;  %v1288_v0 = vshrl.u32 %v3044_v47, 16  ;;  %v1291_v2 = vshll.u32 %v3044_v47, 16 }
  0x2d   : > { %v311_v59 = vor.u32 %v310_v51, %v307_v50  ;;  %3358 = vmatpush3.bf16.msra.mxu1 %v3856_v17  ;;  %v1286_v4 = vsel %vm3871_vm4, %v1281_v53, %v1285_v30  ;;  %v326_v9 = vrot.slane %v324_v56, 5  ;;  %v1297_v10 = vshll.u32 %v3940_v52, 16  ;;  %v3982_v50 = vld [vmem:[%s3832_s9 + $0x34] sm:$0xf] }
  0x2e   : > { %v321_v5 = vor.u32 %v320_v55, %v316_v54  ;;  %v3064_v12 = vcombine.low %v1276_v58, %v1286_v4  ;;  %v1290_v14 = vrot.slane %v1288_v0, 4  ;;  %v1293_v18 = vrot.slane %v1291_v2, 5  ;;  %3633 = vmatprep.subr.msk.bf16.mxu1 %vm499_vm0, %v3946_v57  ;;  %v3992_v58 = vld [vmem:[%s3832_s9 + $0x38] sm:$0x1] }
  0x2f   : > { %v312_v13 = vrot.slane %v311_v59, 4  ;;  %v1299_v20 = vrot.slane %v1297_v10, 5  ;;  %v1301_v22 = vshrl.u32 %v3940_v52, 16  ;;  %v1307_v23 = vshll.u32 %v3952_v61, 16 }
  0x30   : > { %v322_v17 = vrot.slane %v321_v5, 4  ;;  %3414 = vmatmul.mubr.msk.bf16.vlgmr.msra.gmra.mrb[0].mxu0 %vm474_vm3, %v3064_v12  ;;  %v1294_v28 = vor.u32 %v1293_v18, %v1290_v14  ;;  %v329_v30 = vshrl.u32 %v3959_v11, 16  ;;  %v332_v34 = vshll.u32 %v3959_v11, 16  ;;  %v3997_v14 = vld [vmem:[%s3832_s9 + $0x30] sm:$0xf] }
  0x31   : > { %v317_v24 = vsel %vm3871_vm4, %v312_v13, %v316_v54  ;;  %3430 = vmatpush3.bf16.msra.mxu0 %v3879_v37  ;;  %v1303_v40 = vrot.slane %v1301_v22, 4  ;;  %v1309_v42 = vrot.slane %v1307_v23, 5  ;;  %v338_v43 = vshll.u32 %v3962_v19, 16  ;;  %v4003_v23 = vld [vmem:[%s3832_s9 + $0x34] sm:$0xf] }
  0x32   : > { %v327_v39 = vsel %vm3871_vm4, %v322_v17, %v326_v9  ;;  %v1295_v47 = vrot.slane %v1294_v28, 4  ;;  %v331_v48 = vrot.slane %v329_v30, 4  ;;  %v334_v49 = vrot.slane %v332_v34, 5  ;;  %3638 = vmatprep.subr.msk.bf16.mxu0 %vm499_vm0, %v3862_v26 }
  0x33   : > { %v2948_v46 = vcombine.low %v317_v24, %v327_v39  ;;  %v1304_v37 = vor.u32 %v1303_v40, %v1299_v20  ;;  %v340_v51 = vrot.slane %v338_v43, 5  ;;  %v342_v53 = vshrl.u32 %v3962_v19, 16  ;;  %v4008_v39 = vld [vmem:[%s3832_s9 + $0x38] sm:$0x1] }
  0x34   : > { %v348_v54 = vshll.u32 %v3972_v29, 16  ;;  %v1300_v55 = vsel %vm3871_vm4, %v1295_v47, %v1299_v20  ;;  %v335_v56 = vor.u32 %v334_v49, %v331_v48  ;;  %v1312_v59 = vshrl.u32 %v3047_v45, 16 }
  0x35   : > { %3345 = vmatprep.mubr.msk.bf16.mxu1 %vm474_vm3, %v2948_v46  ;;  %v1315_v0 = vshll.u32 %v3047_v45, 16  ;;  %v1305_v2 = vrot.slane %v1304_v37, 4  ;;  %v344_v26 = vrot.slane %v342_v53, 4  ;;  %v1321_v5 = vshll.u32 %v3982_v50, 16  ;;  %v3079_v37 = vld [vmem:[%s3832_s9 + $0xc] sm:$0xe] }
  0x36   : > { %v350_v4 = vrot.slane %v348_v54, 5  ;;  %v336_v9 = vrot.slane %v335_v56, 4  ;;  %v1314_v10 = vrot.slane %v1312_v59, 4  ;;  %v1325_v13 = vshrl.u32 %v3982_v50, 16  ;;  %v4020_v56 = vld [vmem:[%s3832_s9 + $0x3c] sm:$0xf] }
  0x37   : > { %v1317_v12 = vrot.slane %v1315_v0, 5  ;;  %v1310_v18 = vsel %vm3871_vm4, %v1305_v2, %v1309_v42  ;;  %v345_v17 = vor.u32 %v344_v26, %v340_v51  ;;  %v1323_v20 = vrot.slane %v1321_v5, 5 }
  0x38   : > { %v1331_v22 = vshll.u32 %v3992_v58, 16  ;;  %v3065_v24 = vcombine.low %v1300_v55, %v1310_v18  ;;  %v341_v28 = vsel %vm3871_vm4, %v336_v9, %v340_v51  ;;  %v1327_v34 = vrot.slane %v1325_v13, 4  ;;  %v4034_v18 = vld [vmem:[%s3832_s9 + $0x44] sm:$0x1] }
  0x39   : > { %v1318_v30 = vor.u32 %v1317_v12, %v1314_v10  ;;  %v346_v40 = vrot.slane %v345_v17, 4  ;;  %v353_v42 = vshrl.u32 %v3997_v14, 16  ;;  %v356_v45 = vshll.u32 %v3997_v14, 16  ;;  %v3080_v17 = vld [vmem:[%s3832_s9 + $0x18] sm:$0xe] }
  0x3a   : > { %v1333_v43 = vrot.slane %v1331_v22, 5  ;;  %3417 = vmatprep.mubr.msk.bf16.mxu0 %vm474_vm3, %v3065_v24  ;;  %v1328_v47 = vor.u32 %v1327_v34, %v1323_v20  ;;  %v362_v48 = vshll.u32 %v4003_v23, 16  ;;  %v366_v49 = vshrl.u32 %v4003_v23, 16 }
  0x3b   : > { %v1319_v46 = vrot.slane %v1318_v30, 4  ;;  %v351_v51 = vsel %vm3871_vm4, %v346_v40, %v350_v4  ;;  %v355_v53 = vrot.slane %v353_v42, 4  ;;  %v358_v54 = vrot.slane %v356_v45, 5  ;;  %v4031_v4 = vld [vmem:[%s3832_s9 + $0x40] sm:$0xf] }
  0x3c   : > { %v372_v55 = vshll.u32 %v4008_v39, 16  ;;  %v2949_v59 = vcombine.low %v341_v28, %v351_v51  ;;  %v1329_v2 = vrot.slane %v1328_v47, 4  ;;  %v364_v26 = vrot.slane %v362_v48, 5  ;;  %v4045_v30 = vld [vmem:[%s3832_s9 + $0x48] sm:$0xf] }
  0x3d   : > { %v1324_v0 = vsel %vm3871_vm4, %v1319_v46, %v1323_v20  ;;  %v359_v9 = vor.u32 %v358_v54, %v355_v53  ;;  %v368_v10 = vrot.slane %v366_v49, 4  ;;  %v3087_v13 = vrot.slane %v3079_v37, 9 }
  0x3e   : > { %v374_v12 = vrot.slane %v372_v55, 5  ;;  %3346 = vmatmul.mubr.msk.bf16.gmra.mrb[4].mxu1 %vm474_vm3, %v2949_v59  ;;  %v1334_v20 = vsel %vm3871_vm4, %v1329_v2, %v1333_v43  ;;  %v1633_v22 = vrot.slane %v1631_v62, 4  ;;  %v377_v24 = vshrl.u32 %v4020_v56, 16  ;;  %v4065_v55 = vld [vmem:[%s3832_s9 + $0x50] sm:$0x1] }
  0x3f   : > { %v380_v28 = vshll.u32 %v4020_v56, 16  ;;  %v3066_v34 = vcombine.low %v1324_v0, %v1334_v20  ;;  %v360_v40 = vrot.slane %v359_v9, 4  ;;  %v369_v42 = vor.u32 %v368_v10, %v364_v26 }
  0x40   : > { %v1632_v45 = vsel %vm4026_vm7, %v3087_v13, %v1631_v62  ;;  %v1635_v43 = vsel %vm4026_vm7, %v1633_v22, %v1634_v63  ;;  %v379_v46 = vrot.slane %v377_v24, 4  ;;  %v386_v48 = vshll.u32 %v4031_v4, 16  ;;  %v4061_v62 = vld [vmem:[%s3832_s9 + $0x4c] sm:$0xf] }
  0x41   : > { %v382_v47 = vrot.slane %v380_v28, 5  ;;  %3418 = vmatmul.mubr.msk.bf16.gmra.mrb[4].mxu0 %vm474_vm3, %v3066_v34  ;;  %v365_v49 = vsel %vm3871_vm4, %v360_v40, %v364_v26  ;;  %v370_v37 = vrot.slane %v369_v42, 4  ;;  %v3096_v15 = vcombine.low %v1632_v45, %v1635_v43  ;;  %v4083_v28 = vld [vmem:[%s3832_s9 + $0x54] sm:$0xf]  ;;  %v4094_v34 = vld [vmem:[%s4765_s1 + $0xe] sm:$0x3] }
  0x42   : > { %v390_v51 = vshrl.u32 %v4031_v4, 16  ;;  %v388_v53 = vrot.slane %v386_v48, 5  ;;  %v396_v63 = vshll.u32 %v4034_v18, 16  ;;  %v3088_v54 = vrot.slane %v3080_v17, 9 }
  0x43   : > { %v383_v16 = vor.u32 %v382_v47, %v379_v46  ;;  %v375_v59 = vsel %vm3871_vm4, %v370_v37, %v374_v12  ;;  %3431 = vmatprep.mubr.msk.bf16.mxu0 %vm474_vm3, %v3096_v15  ;;  %v1642_v2 = vsel %vm4026_vm7, %v3927_v35, %v1641_v33  ;;  %v401_v26 = vshrl.u32 %v4045_v30, 16  ;;  %v3081_v12 = vld [vmem:[%s3832_s9 + $0x24] sm:$0xe]  ;;  %v4099_v37 = vld [vmem:[%s3832_s9 + $0x58] sm:$0xf] }
  0x44   : > { %v392_v0 = vrot.slane %v390_v51, 4  ;;  %v2950_v9 = vcombine.low %v365_v49, %v375_v59  ;;  %v398_v13 = vrot.slane %v396_v63, 5  ;;  %v1639_v17 = vsel %vm4026_vm7, %v3088_v54, %v1638_v25  ;;  %v4108_v54 = vld [vmem:[%s3832_s9 + $0x5c] sm:$0x1] }
  0x45   : > { %v384_v10 = vrot.slane %v383_v16, 4  ;;  %v3097_v22 = vcombine.low %v1639_v17, %v1642_v2  ;;  %v403_v24 = vrot.slane %v401_v26, 4  ;;  %v404_v1 = vshll.u32 %v4045_v30, 16 }
  0x46   : > { %v393_v20 = vor.u32 %v392_v0, %v388_v53  ;;  %3349 = vmatprep.mubr.msk.bf16.mxu1 %vm474_vm3, %v2950_v9  ;;  %v410_v35 = vshll.u32 %v4061_v62, 16  ;;  %v414_v60 = vshrl.u32 %v4061_v62, 16  ;;  %v420_v25 = vshll.u32 %v4065_v55, 16 }
  0x47   : > { %v389_v33 = vsel %vm3871_vm4, %v384_v10, %v388_v53  ;;  %v406_v42 = vrot.slane %v404_v1, 5  ;;  %v3089_v45 = vrot.slane %v3081_v12, 9  ;;  %v1645_v43 = vrot.slane %v3940_v52, 5  ;;  %v3082_v10 = vld [vmem:[%s3832_s9 + $0x30] sm:$0xe] }
  0x48   : > { %v394_v40 = vrot.slane %v393_v20, 4  ;;  %v412_v46 = vrot.slane %v410_v35, 5  ;;  %v416_v47 = vrot.slane %v414_v60, 4  ;;  %v422_v48 = vrot.slane %v420_v25, 5 }
  0x49   : > { %v1648_v49 = vrot.slane %v3952_v61, 5  ;;  %3432 = vmatmul.mubr.msk.bf16.vlgmr.msra.gmra.mrb[0].mxu0 %vm474_vm3, %v3097_v22  ;;  %v407_v51 = vor.u32 %v406_v42, %v403_v24  ;;  %v1646_v16 = vsel %vm4026_vm7, %v3089_v45, %v1645_v43  ;;  %v1647_v53 = vrot.slane %v1645_v43, 4  ;;  %v4129_v42 = vld [vmem:[%s3832_s9 + $0x40] sm:$0xf]  ;;  %v4132_v45 = vld [vmem:[%s3832_s9 + $0x44] sm:$0x1] }
  0x4a   : > { %v399_v15 = vsel %vm3871_vm4, %v394_v40, %v398_v13  ;;  %3448 = vmatpush3.bf16.msra.mxu0 %v3883_v41  ;;  %v417_v52 = vor.u32 %v416_v47, %v412_v46  ;;  %v425_v61 = vshrl.u32 %v4083_v28, 16  ;;  %v428_v59 = vshll.u32 %v4083_v28, 16 }
  0x4b   : > { %v2951_v63 = vcombine.low %v389_v33, %v399_v15  ;;  %v408_v0 = vrot.slane %v407_v51, 4  ;;  %v1649_v2 = vsel %vm4026_vm7, %v1647_v53, %v1648_v49  ;;  %v434_v26 = vshll.u32 %v4099_v37, 16  ;;  %3639 = vmatprep.subr.msk.bf16.mxu0 %vm499_vm0, %v4094_v34  ;;  %v3083_v33 = vld [vmem:[%s3832_s9 + $0x3c] sm:$0xe] }
  0x4c   : > { %v438_v9 = vshrl.u32 %v4099_v37, 16  ;;  %v418_v41 = vrot.slane %v417_v52, 4  ;;  %v3098_v13 = vcombine.low %v1646_v16, %v1649_v2  ;;  %v427_v17 = vrot.slane %v425_v61, 4  ;;  %v3084_v2 = vld [vmem:[%s3832_s9 + $0x48] sm:$0xe] }
  0x4d   : > { %3350 = vmatmul.mubr.msk.bf16.gmra.mrb[8].mxu1 %vm474_vm3, %v2951_v63  ;;  %v430_v12 = vrot.slane %v428_v59, 5  ;;  %v413_v20 = vsel %vm3871_vm4, %v408_v0, %v412_v46  ;;  %v436_v22 = vrot.slane %v434_v26, 5  ;;  %v444_v1 = vshll.u32 %v4108_v54, 16  ;;  %v4147_v59 = vld [vmem:[%s3832_s9 + $0x4c] sm:$0xf] }
  0x4e   : > { %v440_v24 = vrot.slane %v438_v9, 4  ;;  %v423_v35 = vsel %vm3871_vm4, %v418_v41, %v422_v48  ;;  %3435 = vmatprep.mubr.msk.bf16.mxu0 %vm474_vm3, %v3098_v13  ;;  %v3090_v25 = vrot.slane %v3082_v10, 9  ;;  %v1652_v40 = vrot.slane %v3982_v50, 5  ;;  %v4150_v0 = vld [vmem:[%s3832_s9 + $0x50] sm:$0x1] }
  0x4f   : > { %v431_v60 = vor.u32 %v430_v12, %v427_v17  ;;  %v2952_v43 = vcombine.low %v413_v20, %v423_v35  ;;  %v446_v47 = vrot.slane %v444_v1, 5  ;;  %v1655_v49 = vrot.slane %v3992_v58, 5  ;;  %v4158_v17 = vld [vmem:[%s3832_s9 + $0x58] sm:$0xf]  ;;  %v4161_v12 = vld [vmem:[%s3832_s9 + $0x5c] sm:$0x1] }
  0x50   : > { %v441_v46 = vor.u32 %v440_v24, %v436_v22  ;;  %v1653_v48 = vsel %vm4026_vm7, %v3090_v25, %v1652_v40  ;;  %v1654_v51 = vrot.slane %v1652_v40, 4  ;;  %v3091_v16 = vrot.slane %v3083_v33, 9  ;;  %4778 = vst [vmem:[#allocation2_spill] sm:$0xff] %v4161_v12  ;;  %v4171_v35 = vld [vmem:[%s3832_s9 + $0x64] sm:$0xf] }
  0x51   : > { %v432_v15 = vrot.slane %v431_v60, 4  ;;  %3353 = vmatprep.mubr.msk.bf16.mxu1 %vm474_vm3, %v2952_v43  ;;  %v1659_v53 = vrot.slane %v4129_v42, 5  ;;  %v1662_v63 = vrot.slane %v4132_v45, 5  ;;  %v2962_v61 = vcombine.low %v3835_v6, %v3838_v7  ;;  %v3085_v6 = vld [vmem:[%s3832_s9 + $0x54] sm:$0xe]  ;;  %4779 = vst [vmem:[#allocation3_spill] sm:$0xff] %v4171_v35 }
  0x52   : > { %v442_v50 = vrot.slane %v441_v46, 4  ;;  %v1656_v58 = vsel %vm4026_vm7, %v1654_v51, %v1655_v49  ;;  %v1666_v24 = vrot.slane %v4147_v59, 5  ;;  %v1669_v1 = vrot.slane %v4150_v0, 5  ;;  %v4174_v60 = vld [vmem:[%s3832_s9 + $0x68] sm:$0x1] }
  0x53   : > { %v437_v52 = vsel %vm3871_vm4, %v432_v15, %v436_v22  ;;  %v3099_v9 = vcombine.low %v1653_v48, %v1656_v58  ;;  %v1660_v10 = vsel %vm4026_vm7, %v3091_v16, %v1659_v53  ;;  %v1661_v41 = vrot.slane %v1659_v53, 4  ;;  %4780 = vst [vmem:[#allocation4_spill] sm:$0xff] %v4174_v60 }
  0x54   : > { %v447_v26 = vsel %vm3871_vm4, %v442_v50, %v446_v47  ;;  %v3092_v22 = vrot.slane %v3084_v2, 9  ;;  %v1668_v40 = vrot.slane %v1666_v24, 4  ;;  %v3093_v43 = vrot.slane %v3085_v6, 9  ;;  %v3086_v47 = vld [vmem:[%s3832_s9 + $0x60] sm:$0xe] }
  0x55   : > { %v2953_v13 = vcombine.low %v437_v52, %v447_v26  ;;  %3436 = vmatmul.mubr.msk.bf16.gmra.mrb[4].mxu0 %vm474_vm3, %v3099_v9  ;;  %v1663_v20 = vsel %vm4026_vm7, %v1661_v41, %v1662_v63  ;;  %v1673_v46 = vrot.slane %v4158_v17, 5  ;;  %v800_v49 = vrot.slane %v3876_v36, 5  ;;  %v766_v2 = vld [vmem:[%s3832_s9 + $0x18] sm:$0xe]  ;;  %v4206_v6 = vld [vmem:[%s4765_s1 + $0x6] sm:$0x3] }
  0x56   : > { %v3100_v33 = vcombine.low %v1660_v10, %v1663_v20  ;;  %v1667_v25 = vsel %vm4026_vm7, %v3092_v22, %v1666_v24  ;;  %v1676_v15 = vrot.slane %v4161_v12, 5  ;;  %v1670_v48 = vsel %vm4026_vm7, %v1668_v40, %v1669_v1  ;;  %v768_v1 = vld [vmem:[%s3832_s9 + $0x30] sm:$0xe] }
  0x57   : > { %3354 = vmatmul.mubr.msk.bf16.gmra.mrb[12].mxu1 %vm474_vm3, %v2953_v13  ;;  %v1674_v51 = vsel %vm4026_vm7, %v3093_v43, %v1673_v46  ;;  %v1675_v16 = vrot.slane %v1673_v46, 4  ;;  %v1680_v50 = vrot.slane %v4171_v35, 5  ;;  %v2963_v53 = vcombine.low %v3867_v31, %v3876_v36  ;;  %v767_v36 = vld [vmem:[%s3832_s9 + $0x24] sm:$0xe]  ;;  %v4480_v12 = vld [vmem:[%s3832_s9 + $0x70] sm:$0xf] }
  0x58   : > { %3359 = vmatprep.mubr.msk.bf16.mxu1 %vm474_vm3, %v2962_v61  ;;  %3439 = vmatprep.mubr.msk.bf16.mxu0 %vm474_vm3, %v3100_v33  ;;  %v3101_v63 = vcombine.low %v1667_v25, %v1670_v48  ;;  %v3094_v52 = vrot.slane %v3086_v47, 9  ;;  %v1683_v58 = vrot.slane %v4174_v60, 5  ;;  %v765_v61 = vld [vmem:[%s3832_s9 + $0xc] sm:$0xe]  ;;  %v803_v26 = vrot.slane %v3886_v44, 5 }
  0x59   : > { %v2964_v9 = vcombine.low %v3915_v21, %v3922_v27  ;;  %v1677_v10 = vsel %vm4026_vm7, %v1675_v16, %v1676_v15  ;;  %v1682_v41 = vrot.slane %v1680_v50, 4  ;;  %v898_v13 = vsel %vm499_vm0, %v3946_v57, 0  ;;  %v3687_v16 = vld [vmem:[%s3832_s9 + $0x18] sm:$0xff]   ;;  %v4452_v60 = vld [vmem:[%s3832_s9 + $0x64] sm:$0xf] }
  0x5a   : > { %v3102_v31 = vcombine.low %v1674_v51, %v1677_v10  ;;  %v2979_v44 = vrot.slane %v765_v61, 9  ;;  %v802_v20 = vrot.slane %v800_v49, 4  ;;  %v2980_v21 = vrot.slane %v766_v2, 9  ;;  %4781 = vst [vmem:[#allocation5_spill] sm:$0xff] %v4452_v60 }
  0x5b   : > { %v1681_v22 = vsel %vm4026_vm7, %v3094_v52, %v1680_v50  ;;  %v1684_v57 = vsel %vm4026_vm7, %v1682_v41, %v1683_v58  ;;  %v807_v24 = vrot.slane %v3922_v27, 5  ;;  %v810_v40 = vrot.slane %v3930_v38, 5 }
  0x5c   : > { %v4219_v33 = vsel %vm4026_vm7, %v2979_v44, %v800_v49  ;;  %v4223_v25 = vsel %vm4026_vm7, %v802_v20, %v803_v26  ;;  %v2981_v43 = vrot.slane %v767_v36, 9  ;;  %v3103_v49 = vcombine.low %v1681_v22, %v1684_v57  ;;  %v3147_v26 = vld [vmem:[%s3832_s9 + $0x18] sm:$0xf]  ;;  %v3689_v57 = vld [vmem:[%s3832_s9 + $0x24] sm:$0xff]  }
  0x5d   : > { %3440 = vmatmul.mubr.msk.bf16.gmra.mrb[8].mxu0 %vm474_vm3, %v3101_v63  ;;  %v2988_v27 = vcombine.low %v4219_v33, %v4223_v25  ;;  %v4232_v46 = vsel %vm4026_vm7, %v2980_v21, %v807_v24  ;;  %v809_v47 = vrot.slane %v807_v24, 4  ;;  %v814_v15 = vrot.slane %v3962_v19, 5 }
  0x5e   : > { %3443 = vmatprep.mubr.msk.bf16.mxu0 %vm474_vm3, %v3102_v31  ;;  %v817_v48 = vrot.slane %v3972_v29, 5  ;;  %v2982_v38 = vrot.slane %v768_v1, 9  ;;  %v2965_v51 = vcombine.low %v3959_v11, %v3962_v19  ;;  %v824_v63 = vrot.slane %v4008_v39, 5  ;;  %v769_v19 = vld [vmem:[%s3832_s9 + $0x3c] sm:$0xe] }
  0x5f   : > { %3360 = vmatmul.mubr.msk.bf16.vlgmr.msra.gmra.mrb[0].mxu1 %vm474_vm3, %v2963_v53  ;;  %v4241_v50 = vsel %vm4026_vm7, %v809_v47, %v810_v40  ;;  %v821_v53 = vrot.slane %v4003_v23, 5  ;;  %v2966_v52 = vcombine.low %v3997_v14, %v4003_v23  ;;  %v4251_v58 = vsel %vm4026_vm7, %v2981_v43, %v814_v15  ;;  %v764_v14 = vld [vmem:[%s3832_s9] sm:$0xe]  ;;  %v4279_v31 = vld [vmem:[%s3832_s9 + $0x1c] sm:$0xf] }
  0x60   : > { %3376 = vmatpush3.bf16.msra.mxu1 %v898_v13  ;;  %3363 = vmatprep.mubr.msk.bf16.mxu1 %vm474_vm3, %v2964_v9  ;;  %v2989_v29 = vcombine.low %v4232_v46, %v4241_v50  ;;  %v816_v11 = vrot.slane %v814_v15, 4  ;;  %v793_v61 = vrot.slane %v3838_v7, 5  ;;  %v2983_v10 = vrot.slane %v769_v19, 9  ;;  %v770_v1 = vld [vmem:[%s3832_s9 + $0x48] sm:$0xe] }
  0x61   : > { %3634 = vmatprep.subr.msk.bf16.mxu1 %vm499_vm0, %v4206_v6  ;;  %v4257_v2 = vsel %vm4026_vm7, %v2982_v38, %v821_v53  ;;  %v823_v39 = vrot.slane %v821_v53, 4  ;;  %v796_v41 = vrot.slane %v3841_v8, 5  ;;  %v2978_v36 = vrot.slane %v764_v14, 9  ;;  %v4305_v38 = vld [vmem:[%s4765_s1 + $0x10] sm:$0x3] }
  0x62   : > { %v4263_v23 = vsel %vm4026_vm7, %v816_v11, %v817_v48  ;;  %v795_v44 = vrot.slane %v793_v61, 4  ;;  %v828_v20 = vrot.slane %v4031_v4, 5  ;;  %v831_v21 = vrot.slane %v4034_v18, 5  ;;  %v4326_v14 = vld [vmem:[%s3832_s9 + $0x28] sm:$0xf] }
  0x63   : > { %v4272_v9 = vsel %vm4026_vm7, %v823_v39, %v824_v63  ;;  %v2967_v22 = vcombine.low %v4020_v56, %v4031_v4  ;;  %v2078_v24 = vshrl.u32 %v3147_v26, 16  ;;  %v2081_v8 = vshll.u32 %v3147_v26, 16  ;;  %v3691_v4 = vld [vmem:[%s3832_s9 + $0x30] sm:$0xff]   ;;  %v4428_v46 = vld [vmem:[%s3832_s9 + $0x44] sm:$0x1] }
  0x64   : > { %v2087_v40 = vshll.u32 %v4279_v31, 16  ;;  %v2091_v43 = vshrl.u32 %v4279_v31, 16  ;;  %v4291_v47 = vsel %vm4026_vm7, %v2983_v10, %v828_v20  ;;  %v2320_v18 = vsel %vm499_vm0, %v4094_v34, 0  ;;  %v3165_v7 = vld [vmem:[%s3832_s9 + $0x60] sm:$0xf] }
  0x65   : > { %3444 = vmatmul.mubr.msk.bf16.gmra.mrb[12].mxu0 %vm474_vm3, %v3103_v49  ;;  %v830_v49 = vrot.slane %v828_v20, 4  ;;  %v2968_v56 = vcombine.low %v4045_v30, %v4061_v62  ;;  %v794_v15 = vsel %vm4026_vm7, %v2978_v36, %v793_v61  ;;  %v797_v48 = vsel %vm4026_vm7, %v795_v44, %v796_v41  ;;  %v4313_v30 = vld [vmem:[%s3832_s9 + $0x20] sm:$0x1]  ;;  %v3150_v61 = vld [vmem:[%s3832_s9 + $0x24] sm:$0xf] }
  0x66   : > { %3449 = vmatprep.mubr.msk.bf16.mxu0 %vm474_vm3, %v3687_v16  ;;  %v2984_v34 = vrot.slane %v770_v1, 9  ;;  %v2080_v16 = vrot.slane %v2078_v24, 4  ;;  %v2083_v53 = vrot.slane %v2081_v8, 5  ;;  %v4319_v11 = vrot.slane %v2087_v40, 5  ;;  %v771_v44 = vld [vmem:[%s3832_s9 + $0x54] sm:$0xe] }
  0x67   : > { %3364 = vmatmul.mubr.msk.bf16.gmra.mrb[4].mxu1 %vm474_vm3, %v2965_v51  ;;  %v4309_v51 = vsel %vm4026_vm7, %v830_v49, %v831_v21  ;;  %v2093_v19 = vrot.slane %v2091_v43, 4  ;;  %v838_v39 = vrot.slane %v4065_v55, 5  ;;  %v2969_v10 = vcombine.low %v4083_v28, %v4099_v37  ;;  %v3153_v55 = vld [vmem:[%s3832_s9 + $0x30] sm:$0xf]  ;;  %v3693_v20 = vld [vmem:[%s3832_s9 + $0x3c] sm:$0xff]   ;;  %v3694_v1 = vld [vmem:[%s3832_s9 + $0x48] sm:$0xff]  }
  0x68   : > { %3367 = vmatprep.mubr.msk.bf16.mxu1 %vm474_vm3, %v2966_v52  ;;  %v835_v52 = vrot.slane %v4061_v62, 5  ;;  %v2987_v41 = vcombine.low %v794_v15, %v797_v48  ;;  %v2097_v36 = vshll.u32 %v4313_v30, 16  ;;  %v2084_v21 = vor.u32 %v2083_v53, %v2080_v16  ;;  %v4345_v8 = vld [vmem:[%s3832_s9 + $0x34] sm:$0xf] }
  0x69   : > { %v2094_v28 = vor.u32 %v2093_v19, %v4319_v11  ;;  %v2111_v40 = vshll.u32 %v4326_v14, 16  ;;  %v2115_v43 = vshrl.u32 %v4326_v14, 16  ;;  %v842_v15 = vrot.slane %v4099_v37, 5 }
  0x6a   : > { %v4330_v62 = vsel %vm4026_vm7, %v2984_v34, %v835_v52  ;;  %v837_v26 = vrot.slane %v835_v52, 4  ;;  %v2135_v48 = vshll.u32 %v4345_v8, 16  ;;  %v2139_v34 = vshrl.u32 %v4345_v8, 16 }
  0x6b   : > { %v845_v16 = vrot.slane %v4108_v54, 5  ;;  %v2085_v53 = vrot.slane %v2084_v21, 4  ;;  %v2099_v52 = vrot.slane %v2097_v36, 5  ;;  %v2095_v37 = vrot.slane %v2094_v28, 4  ;;  %v4368_v36 = vld [vmem:[%s3832_s9 + $0x2c] sm:$0x1] }
  0x6c   : > { %v4342_v24 = vsel %vm4026_vm7, %v837_v26, %v838_v39  ;;  %v4364_v26 = vrot.slane %v2111_v40, 5  ;;  %v4375_v21 = vld [vmem:[%s3832_s9 + $0x38] sm:$0x1]  ;;  %v1100_v28 = vsel %vm499_vm0, %v4206_v6, 0 }
  0x6d   : > { %3450 = vmatmul.mubr.msk.bf16.vlgmr.msra.gmra.mrb[0].mxu0 %vm474_vm3, %v3689_v57  ;;  %v2105_v57 = vshll.u32 %v3150_v61, 16  ;;  %v3695_v40 = vld [vmem:[%s3832_s9 + $0x54] sm:$0xff]  }
  0x6e   : > { %3466 = vmatpush3.bf16.msra.mxu0 %v2320_v18  ;;  %3453 = vmatprep.mubr.msk.bf16.mxu0 %vm474_vm3, %v3691_v4  ;;  %v2126_v18 = vshrl.u32 %v3153_v55, 16  ;;  %v2985_v4 = vrot.slane %v771_v44, 9 }
  0x6f   : > { %3368 = vmatmul.mubr.msk.bf16.gmra.mrb[8].mxu1 %vm474_vm3, %v2967_v22  ;;  %3640 = vmatprep.subr.msk.bf16.mxu0 %vm499_vm0, %v4305_v38  ;;  %v2102_v22 = vshrl.u32 %v3150_v61, 16  ;;  %v844_v61 = vrot.slane %v842_v15, 4  ;;  %v2107_v54 = vrot.slane %v2105_v57, 5  ;;  %v2141_v57 = vrot.slane %v2139_v34, 4  ;;  %v3159_v34 = vld [vmem:[%s3832_s9 + $0x48] sm:$0xf] }
  0x70   : > { %3371 = vmatprep.mubr.msk.bf16.mxu1 %vm474_vm3, %v2968_v56  ;;  %v2129_v56 = vshll.u32 %v3153_v55, 16  ;;  %v4360_v19 = vsel %vm4026_vm7, %v2985_v4, %v842_v15  ;;  %v2117_v55 = vrot.slane %v2115_v43, 4  ;;  %v2128_v44 = vrot.slane %v2126_v18, 4  ;;  %v4386_v43 = vld [vmem:[%s3832_s9 + $0x40] sm:$0xf] }
  0x71   : > { %v2104_v39 = vrot.slane %v2102_v22, 4  ;;  %v4377_v22 = vrot.slane %v2135_v48, 5  ;;  %v3696_v18 = vld [vmem:[%s3832_s9 + $0x60] sm:$0xff]   ;;  %v2100_v4 = vsel %vm3871_vm4, %v2095_v37, %v2099_v52  ;;  %v2121_v48 = vshll.u32 %v4368_v36, 16 }
  0x72   : > { %v2174_v52 = vshrl.u32 %v3159_v34, 16  ;;  %v2177_v37 = vshll.u32 %v3159_v34, 16 }
  0x73   : > { %v2108_v15 = vor.u32 %v2107_v54, %v2104_v39  ;;  %v2142_v63 = vor.u32 %v2141_v57, %v4377_v22  ;;  %v3162_v57 = vld [vmem:[%s3832_s9 + $0x54] sm:$0xf] }
  0x74   : > { %v2176_v50 = vrot.slane %v2174_v52, 4  ;;  %v2201_v34 = vshll.u32 %v3162_v57, 16 }
  0x75   : > { %3454 = vmatmul.mubr.msk.bf16.gmra.mrb[4].mxu0 %vm474_vm3, %v3693_v20  ;;  %v2131_v20 = vrot.slane %v2129_v56, 5  ;;  %v2090_v56 = vsel %vm3871_vm4, %v2085_v53, %v4319_v11  ;;  %v2159_v11 = vshll.u32 %v4386_v43, 16  ;;  %v2163_v53 = vshrl.u32 %v4386_v43, 16 }
  0x76   : > { %3457 = vmatprep.mubr.msk.bf16.mxu0 %vm474_vm3, %v3694_v1  ;;  %v2145_v1 = vshll.u32 %v4375_v21, 16  ;;  %v3172_v54 = vcombine.low %v2090_v56, %v2100_v4  ;;  %v2143_v56 = vrot.slane %v2142_v63, 4  ;;  %v4433_v63 = vld [vmem:[%s3832_s9 + $0x50] sm:$0x1] }
  0x77   : > { %3372 = vmatmul.mubr.msk.bf16.gmra.mrb[12].mxu1 %vm474_vm3, %v2969_v10  ;;  %v4372_v10 = vsel %vm4026_vm7, %v844_v61, %v845_v16  ;;  %v4397_v16 = vld [vmem:[%s3832_s9 + $0x4c] sm:$0xf]  ;;  %v2118_v61 = vor.u32 %v2117_v55, %v4364_v26  ;;  %v2132_v6 = vor.u32 %v2131_v20, %v2128_v44  ;;  %v2109_v55 = vrot.slane %v2108_v15, 4 }
  0x78   : > { %3377 = vmatprep.mubr.msk.bf16.mxu1 %vm474_vm3, %v2987_v41  ;;  %v3156_v41 = vld [vmem:[%s3832_s9 + $0x3c] sm:$0xf]  ;;  %v2183_v39 = vshll.u32 %v4397_v16, 16  ;;  %v2123_v44 = vrot.slane %v2121_v48, 5  ;;  %v2187_v20 = vshrl.u32 %v4397_v16, 16  ;;  %v2147_v33 = vrot.slane %v2145_v1, 5 }
  0x79   : > { %v2150_v49 = vshrl.u32 %v3156_v41, 16  ;;  %v2153_v13 = vshll.u32 %v3156_v41, 16  ;;  %v2119_v41 = vrot.slane %v2118_v61, 4  ;;  %v4421_v15 = vrot.slane %v2159_v11, 5 }
  0x7a   : > { %v2165_v48 = vrot.slane %v2163_v53, 4  ;;  %v2198_v1 = vshrl.u32 %v3162_v57, 16  ;;  %v1369_v11 = vshll.u32 %v4147_v59, 16  ;;  %v2114_v53 = vsel %vm3871_vm4, %v2109_v55, %v4364_v26 }
  0x7b   : > { %v2152_v25 = vrot.slane %v2150_v49, 4  ;;  %v2155_v4 = vrot.slane %v2153_v13, 5  ;;  %v4430_v49 = vrot.slane %v2183_v39, 5  ;;  %v2189_v13 = vrot.slane %v2187_v20, 4 }
  0x7c   : > { %v2124_v52 = vsel %vm3871_vm4, %v2119_v41, %v2123_v44  ;;  %v2166_v57 = vor.u32 %v2165_v48, %v4421_v15  ;;  %v2148_v26 = vsel %vm3871_vm4, %v2143_v56, %v2147_v33  ;;  %v2200_v44 = vrot.slane %v2198_v1, 4  ;;  %v4471_v56 = vld [vmem:[%s3832_s9 + $0x5c] sm:$0x1] }
  0x7d   : > { %3458 = vmatmul.mubr.msk.bf16.gmra.mrb[8].mxu0 %vm474_vm3, %v3695_v40  ;;  %v2133_v40 = vrot.slane %v2132_v6, 4  ;;  %v2156_v20 = vor.u32 %v2155_v4, %v2152_v25  ;;  %v2190_v41 = vor.u32 %v2189_v13, %v4430_v49  ;;  %v4783_v33 = vcombine.low %v4257_v2, %v4272_v9 }
  0x7e   : > { %3461 = vmatprep.mubr.msk.bf16.mxu0 %vm474_vm3, %v3696_v18  ;;  %v3697_v18 = vld [vmem:[%s3832_s9 + $0x6c] sm:$0xff]   ;;  %v2222_v4 = vshrl.u32 %v3165_v7, 16  ;;  %v1373_v48 = vshrl.u32 %v4147_v59, 16  ;;  %v3173_v13 = vcombine.low %v2114_v53, %v2124_v52 }
  0x7f   : > { %3378 = vmatmul.mubr.msk.bf16.vlgmr.msra.gmra.mrb[0].mxu1 %vm474_vm3, %v2988_v27  ;;  %v4418_v27 = vld [vmem:[%s3832_s9 + $0x58] sm:$0xf]  ;;  %v2138_v39 = vsel %vm3871_vm4, %v2133_v40, %v4377_v22  ;;  %v4782_v22 = vcombine.low %v4251_v58, %v4263_v23  ;;  %v2203_v40 = vrot.slane %v2201_v34, 5  ;;  %v2225_v58 = vshll.u32 %v3165_v7, 16 }
  0x80   : > { %3394 = vmatpush3.bf16.msra.mxu1 %v1100_v28  ;;  %3381 = vmatprep.mubr.msk.bf16.mxu1 %vm474_vm3, %v2989_v29  ;;  %v3706_v28 = vld [vmem:[%s4765_s1 + $0x8] sm:$0x3]  ;;  %v2179_v29 = vrot.slane %v2177_v37, 5  ;;  %v2207_v61 = vshll.u32 %v4418_v27, 16  ;;  %v2211_v6 = vshrl.u32 %v4418_v27, 16  ;;  %v2574_v37 = vsel %vm499_vm0, %v4305_v38, 0 }
  0x81   : > { %3636 = vmatprep.subr.msk.bf16.mxu1 %vm499_vm0, %v3706_v28  ;;  %v2169_v28 = vshll.u32 %v4428_v46, 16  ;;  %v2193_v38 = vshll.u32 %v4433_v63, 16  ;;  %v2231_v23 = vshll.u32 %v4452_v60, 16  ;;  %v3174_v34 = vcombine.low %v2138_v39, %v2148_v26 }
  0x82   : > { %v2180_v55 = vor.u32 %v2179_v29, %v2176_v50  ;;  %v4464_v25 = vrot.slane %v2207_v61, 5  ;;  %v2157_v50 = vrot.slane %v2156_v20, 4  ;;  %v2167_v29 = vrot.slane %v2166_v57, 4 }
  0x83   : > { %v2171_v1 = vrot.slane %v2169_v28, 5  ;;  %v2195_v9 = vrot.slane %v2193_v38, 5  ;;  %v2191_v61 = vrot.slane %v2190_v41, 4  ;;  %v2217_v7 = vshll.u32 %v4471_v56, 16  ;;  %v4492_v28 = vld [vmem:[%s3832_s9 + $0x68] sm:$0x1] }
  0x84   : > { %v2181_v2 = vrot.slane %v2180_v55, 4  ;;  %v2224_v35 = vrot.slane %v2222_v4, 4  ;;  %v4482_v59 = vrot.slane %v2231_v23, 5  ;;  %v4484_v57 = vrot.slane %v1369_v11, 5 }
  0x85   : > { %3462 = vmatmul.mubr.msk.bf16.gmra.mrb[12].mxu0 %vm474_vm3, %v3697_v18  ;;  %v2213_v18 = vrot.slane %v2211_v6, 4  ;;  %v2204_v6 = vor.u32 %v2203_v40, %v2200_v44  ;;  %v1375_v53 = vrot.slane %v1373_v48, 4  ;;  %v2162_v52 = vsel %vm3871_vm4, %v2157_v50, %v4421_v15 }
  0x86   : > { %3467 = vmatprep.mubr.msk.bf16.mxu0 %vm474_vm3, %v3172_v54  ;;  %v2235_v54 = vshrl.u32 %v4452_v60, 16  ;;  %v2227_v60 = vrot.slane %v2225_v58, 5  ;;  %v2172_v39 = vsel %vm3871_vm4, %v2167_v29, %v2171_v1  ;;  %v2255_v38 = vshll.u32 %v4480_v12, 16  ;;  %v3698_v1 = vld [vmem:[%s3832_s9 + $0xc] sm:$0xff]  }
  0x87   : > { %3382 = vmatmul.mubr.msk.bf16.gmra.mrb[4].mxu1 %vm474_vm3, %v4782_v22  ;;  %v2214_v22 = vor.u32 %v2213_v18, %v4464_v25  ;;  %v2259_v44 = vshrl.u32 %v4480_v12, 16  ;;  %v4784_v11 = vcombine.low %v4291_v47, %v4309_v51  ;;  %v2186_v15 = vsel %vm3871_vm4, %v2181_v2, %v4430_v49 }
  0x88   : > { %3385 = vmatprep.mubr.msk.bf16.mxu1 %vm474_vm3, %v4783_v33  ;;  %v3168_v33 = vld [vmem:[%s3832_s9 + $0x6c] sm:$0xf]  ;;  %v2237_v20 = vrot.slane %v2235_v54, 4  ;;  %v2196_v41 = vsel %vm3871_vm4, %v2191_v61, %v2195_v9  ;;  %v2205_v40 = vrot.slane %v2204_v6, 4  ;;  %v2219_v18 = vrot.slane %v2217_v7, 5 }
  0x89   : > { %v2246_v26 = vshrl.u32 %v3168_v33, 16  ;;  %v2249_v55 = vshll.u32 %v3168_v33, 16  ;;  %v4785_v4 = vcombine.low %v4330_v62, %v4342_v24  ;;  %v2215_v47 = vrot.slane %v2214_v22, 4  ;;  %v3053_v22 = vld [vmem:[%s3832_s9 + $0x48] sm:$0xf] }
  0x8a   : > { %v2228_v51 = vor.u32 %v2227_v60, %v2224_v35  ;;  %v2241_v49 = vshll.u32 %v4492_v28, 16  ;;  %v1376_v58 = vor.u32 %v1375_v53, %v4484_v57  ;;  %v1379_v23 = vshll.u32 %v4150_v0, 16  ;;  %v4521_v60 = vld [vmem:[%s3832_s9 + $0x74] sm:$0x1] }
  0x8b   : > { %v3175_v54 = vcombine.low %v2162_v52, %v2172_v39  ;;  %v2248_v48 = vrot.slane %v2246_v26, 4  ;;  %v2251_v62 = vrot.slane %v2249_v55, 5  ;;  %v4515_v24 = vrot.slane %v2255_v38, 5 }
  0x8c   : > { %v2261_v50 = vrot.slane %v2259_v44, 4  ;;  %v3176_v29 = vcombine.low %v2186_v15, %v2196_v41  ;;  %v2210_v35 = vsel %vm3871_vm4, %v2205_v40, %v4464_v25  ;;  %v2229_v0 = vrot.slane %v2228_v51, 4  ;;  %v3700_v51 = vld [vmem:[%s3832_s9 + $0x24] sm:$0xff]  }
  0x8d   : > { %3468 = vmatmul.mubr.msk.bf16.vlgmr.msra.gmra.mrb[0].mxu0 %vm474_vm3, %v3173_v13  ;;  %v2220_v13 = vsel %vm3871_vm4, %v2215_v47, %v2219_v18  ;;  %v2243_v2 = vrot.slane %v2241_v49, 5  ;;  %v1377_v9 = vrot.slane %v1376_v58, 4  ;;  %v1381_v61 = vrot.slane %v1379_v23, 5 }
  0x8e   : > { %3484 = vmatpush3.bf16.msra.mxu0 %v2574_v37  ;;  %3471 = vmatprep.mubr.msk.bf16.mxu0 %vm474_vm3, %v3174_v34  ;;  %v2238_v37 = vor.u32 %v2237_v20, %v4482_v59  ;;  %v2469_v6 = vrot.slane %v4279_v31, 5  ;;  %v2252_v7 = vor.u32 %v2251_v62, %v2248_v48  ;;  %v2262_v33 = vor.u32 %v2261_v50, %v4515_v24  ;;  %v3188_v20 = vld [vmem:[%s3832_s9 + $0x18] sm:$0xe]  ;;  %v3190_v62 = vld [vmem:[%s3832_s9 + $0x30] sm:$0xe] }
  0x8f   : > { %3386 = vmatmul.mubr.msk.bf16.gmra.mrb[8].mxu1 %vm474_vm3, %v4784_v11  ;;  %v2265_v25 = vshll.u32 %v4521_v60, 16  ;;  %v4786_v53 = vcombine.low %v4360_v19, %v4372_v10  ;;  %v3177_v52 = vcombine.low %v2210_v35, %v2220_v13  ;;  %v2234_v31 = vsel %vm3871_vm4, %v2229_v0, %v4482_v59  ;;  %v3699_v59 = vld [vmem:[%s3832_s9 + $0x18] sm:$0xff]  }
  0x90   : > { %3389 = vmatprep.mubr.msk.bf16.mxu1 %vm474_vm3, %v4785_v4  ;;  %v2239_v34 = vrot.slane %v2238_v37, 4  ;;  %v1360_v26 = vshrl.u32 %v3053_v22, 16  ;;  %v1363_v55 = vshll.u32 %v3053_v22, 16  ;;  %v3196_v19 = vrot.slane %v3188_v20, 9  ;;  %v3050_v4 = vld [vmem:[%s3832_s9 + $0x3c] sm:$0xf] }
  0x91   : > { %v2471_v10 = vrot.slane %v2469_v6, 4  ;;  %v2472_v38 = vrot.slane %v4313_v30, 5  ;;  %v1382_v44 = vsel %vm3871_vm4, %v1377_v9, %v1381_v61  ;;  %v2253_v11 = vrot.slane %v2252_v7, 4  ;;  %v3189_v30 = vld [vmem:[%s3832_s9 + $0x24] sm:$0xe]  ;;  %v3701_v22 = vld [vmem:[%s3832_s9 + $0x30] sm:$0xff]  }
  0x92   : > { %v2244_v39 = vsel %vm3871_vm4, %v2239_v34, %v2243_v2  ;;  %v2263_v15 = vrot.slane %v2262_v33, 4  ;;  %v2267_v41 = vrot.slane %v2265_v25, 5  ;;  %v1362_v40 = vrot.slane %v1360_v26, 4  ;;  %v3702_v20 = vld [vmem:[%s3832_s9 + $0x3c] sm:$0xff]   ;;  %v3056_v26 = vld [vmem:[%s3832_s9 + $0x54] sm:$0xf] }
  0x93   : > { %v3178_v18 = vcombine.low %v2234_v31, %v2244_v39  ;;  %v1365_v47 = vrot.slane %v1363_v55, 5  ;;  %v2470_v37 = vsel %vm4026_vm7, %v3196_v19, %v2469_v6  ;;  %v2473_v49 = vsel %vm4026_vm7, %v2471_v10, %v2472_v38  ;;  %v3192_v38 = vld [vmem:[%s3832_s9 + $0x48] sm:$0xe] }
  0x94   : > { %v2476_v58 = vrot.slane %v4326_v14, 5  ;;  %v2268_v48 = vsel %vm3871_vm4, %v2263_v15, %v2267_v41  ;;  %v2483_v50 = vrot.slane %v4345_v8, 5  ;;  %v1339_v35 = vshll.u32 %v3050_v4, 16 }
  0x95   : > { %3472 = vmatmul.mubr.msk.bf16.gmra.mrb[4].mxu0 %vm474_vm3, %v3175_v54  ;;  %v1366_v23 = vor.u32 %v1365_v47, %v1362_v40  ;;  %v2258_v54 = vsel %vm3871_vm4, %v2253_v11, %v4515_v24  ;;  %v1345_v14 = vshll.u32 %v4129_v42, 16  ;;  %v3197_v24 = vrot.slane %v3189_v30, 9 }
  0x96   : > { %3475 = vmatprep.mubr.msk.bf16.mxu0 %vm474_vm3, %v3176_v29  ;;  %v1336_v29 = vshrl.u32 %v3050_v4, 16  ;;  %v2479_v8 = vrot.slane %v4368_v36, 5  ;;  %v3205_v0 = vcombine.low %v2470_v37, %v2473_v49  ;;  %v2478_v34 = vrot.slane %v2476_v58, 4  ;;  %v3703_v37 = vld [vmem:[%s3832_s9 + $0x48] sm:$0xff]  }
  0x97   : > { %3390 = vmatmul.mubr.msk.bf16.gmra.mrb[12].mxu1 %vm474_vm3, %v4786_v53  ;;  %v1367_v13 = vrot.slane %v1366_v23, 4  ;;  %v3198_v2 = vrot.slane %v3190_v62, 9  ;;  %v3179_v61 = vcombine.low %v2258_v54, %v2268_v48  ;;  %v2485_v6 = vrot.slane %v2483_v50, 4  ;;  %v3704_v23 = vld [vmem:[%s3832_s9 + $0x54] sm:$0xff]  }
  0x98   : > { %3395 = vmatprep.mubr.msk.bf16.mxu1 %vm474_vm3, %v3698_v1  ;;  %v1349_v1 = vshrl.u32 %v4129_v42, 16  ;;  %v2486_v42 = vrot.slane %v4375_v21, 5  ;;  %v1338_v7 = vrot.slane %v1336_v29, 4  ;;  %v1341_v33 = vrot.slane %v1339_v35, 5 }
  0x99   : > { %v1372_v9 = vsel %vm3871_vm4, %v1367_v13, %v4484_v57  ;;  %v4577_v25 = vrot.slane %v1345_v14, 5  ;;  %v2477_v53 = vsel %vm4026_vm7, %v3197_v24, %v2476_v58  ;;  %v2480_v57 = vsel %vm4026_vm7, %v2478_v34, %v2479_v8  ;;  %v3193_v24 = vld [vmem:[%s3832_s9 + $0x54] sm:$0xe]  ;;  %v4787_v8 = vld [vmem:[#allocation5_spill] sm:$0xff] }
  0x9a   : > { %v1351_v36 = vrot.slane %v1349_v1, 4  ;;  %v2484_v21 = vsel %vm4026_vm7, %v3198_v2, %v2483_v50  ;;  %v2490_v31 = vrot.slane %v4386_v43, 5  ;;  %v1355_v39 = vshll.u32 %v4132_v45, 16  ;;  %v3059_v50 = vld [vmem:[%s3832_s9 + $0x60] sm:$0xf] }
  0x9b   : > { %v2487_v55 = vsel %vm4026_vm7, %v2485_v6, %v2486_v42  ;;  %v1342_v19 = vor.u32 %v1341_v33, %v1338_v7  ;;  %v3206_v43 = vcombine.low %v2477_v53, %v2480_v57  ;;  %v2493_v11 = vrot.slane %v4428_v46, 5  ;;  %v4789_v33 = vld [vmem:[#allocation2_spill] sm:$0xff] }
  0x9c   : > { %v1352_v10 = vor.u32 %v1351_v36, %v4577_v25  ;;  %v1384_v15 = vshrl.u32 %v3056_v26, 16  ;;  %v1387_v41 = vshll.u32 %v3056_v26, 16  ;;  %v1393_v40 = vshll.u32 %v4158_v17, 16 }
  0x9d   : > { %3476 = vmatmul.mubr.msk.bf16.gmra.mrb[8].mxu0 %vm474_vm3, %v3177_v52  ;;  %v3191_v52 = vld [vmem:[%s3832_s9 + $0x3c] sm:$0xe]  ;;  %v2492_v4 = vrot.slane %v2490_v31, 4  ;;  %v1357_v47 = vrot.slane %v1355_v39, 5  ;;  %v2500_v58 = vrot.slane %v4433_v63, 5  ;;  %v2504_v63 = vrot.slane %v4418_v27, 5 }
  0x9e   : > { %3479 = vmatprep.mubr.msk.bf16.mxu0 %vm474_vm3, %v3178_v18  ;;  %v3199_v45 = vrot.slane %v3191_v52, 9  ;;  %v3207_v18 = vcombine.low %v2484_v21, %v2487_v55  ;;  %v1353_v49 = vrot.slane %v1352_v10, 4  ;;  %v1386_v46 = vrot.slane %v1384_v15, 4  ;;  %v3194_v27 = vld [vmem:[%s3832_s9 + $0x60] sm:$0xe] }
  0x9f   : > { %3396 = vmatmul.mubr.msk.bf16.vlgmr.msra.gmra.mrb[0].mxu1 %vm474_vm3, %v3699_v59  ;;  %v1397_v59 = vshrl.u32 %v4158_v17, 16  ;;  %v1389_v54 = vrot.slane %v1387_v41, 5  ;;  %v1395_v48 = vrot.slane %v1393_v40, 5  ;;  %v2494_v29 = vsel %vm4026_vm7, %v2492_v4, %v2493_v11  ;;  %v3705_v52 = vld [vmem:[%s3832_s9 + $0x60] sm:$0xff]  }
  0xa0   : > { %3502 = vmatpush3.bf16.msra.mxu1 %v3814_v3  ;;  %3399 = vmatprep.mubr.msk.bf16.mxu1 %vm474_vm3, %v3700_v51  ;;  %v4574_v3 = vcombine.low %v1372_v9, %v1382_v44  ;;  %v2497_v44 = vrot.slane %v4397_v16, 5  ;;  %v3200_v51 = vrot.slane %v3192_v38, 9  ;;  %v1343_v16 = vrot.slane %v1342_v19, 4  ;;  %v4788_v9 = vld [vmem:[#allocation3_spill] sm:$0xff] }
  0xa1   : > { %v1399_v62 = vrot.slane %v1397_v59, 4  ;;  %v2491_v17 = vsel %vm4026_vm7, %v3199_v45, %v2490_v31  ;;  %v1358_v1 = vsel %vm3871_vm4, %v1353_v49, %v1357_v47  ;;  %v1408_v34 = vshrl.u32 %v3059_v50, 16  ;;  %v3195_v47 = vld [vmem:[%s3832_s9 + $0x6c] sm:$0xe] }
  0xa2   : > { %v2499_v30 = vrot.slane %v2497_v44, 4  ;;  %v2498_v35 = vsel %vm4026_vm7, %v3200_v51, %v2497_v44  ;;  %v1348_v14 = vsel %vm3871_vm4, %v1343_v16, %v4577_v25  ;;  %v1411_v2 = vshll.u32 %v3059_v50, 16 }
  0xa3   : > { %v1421_v6 = vshrl.u32 %v4788_v9, 16  ;;  %v3208_v42 = vcombine.low %v2491_v17, %v2494_v29  ;;  %v1400_v7 = vor.u32 %v1399_v62, %v1395_v48  ;;  %v1403_v25 = vshll.u32 %v4789_v33, 16 }
  0xa4   : > { %v2501_v13 = vsel %vm4026_vm7, %v2499_v30, %v2500_v58  ;;  %v2506_v53 = vrot.slane %v2504_v63, 4  ;;  %v2507_v57 = vrot.slane %v4471_v56, 5  ;;  %v3067_v21 = vcombine.low %v1348_v14, %v1358_v1 }
  0xa5   : > { %3480 = vmatmul.mubr.msk.bf16.gmra.mrb[12].mxu0 %vm474_vm3, %v3179_v61  ;;  %v1417_v61 = vshll.u32 %v4788_v9, 16  ;;  %v3209_v36 = vcombine.low %v2498_v35, %v2501_v13  ;;  %v3202_v31 = vrot.slane %v3194_v27, 9  ;;  %v2514_v26 = vrot.slane %v4492_v28, 5 }
  0xa6   : > { %3485 = vmatprep.mubr.msk.bf16.mxu0 %vm474_vm3, %v3205_v0  ;;  %v2511_v0 = vrot.slane %v4787_v8, 5  ;;  %v1410_v55 = vrot.slane %v1408_v34, 4  ;;  %v1413_v19 = vrot.slane %v1411_v2, 5  ;;  %v1423_v38 = vrot.slane %v1421_v6, 4  ;;  %v4678_v2 = vld [vmem:[%s4767_s3] ss:$0 sm:$0xff] }
  0xa7   : > { %3400 = vmatmul.mubr.msk.bf16.gmra.mrb[4].mxu1 %vm474_vm3, %v3701_v22  ;;  %v1390_v22 = vor.u32 %v1389_v54, %v1386_v46  ;;  %v1419_v10 = vrot.slane %v1417_v61, 5  ;;  %v1405_v45 = vrot.slane %v1403_v25, 5  ;;  %v2508_v28 = vsel %vm4026_vm7, %v2506_v53, %v2507_v57 }
  0xa8   : > { %3403 = vmatprep.mubr.msk.bf16.mxu1 %vm474_vm3, %v3702_v20  ;;  %v3201_v20 = vrot.slane %v3193_v24, 9  ;;  %v2513_v39 = vrot.slane %v2511_v0, 4  ;;  %v2512_v11 = vsel %vm4026_vm7, %v3202_v31, %v2511_v0  ;;  %v2518_v15 = vrot.slane %v4480_v12, 5  ;;  %v4673_v0 = vld [vmem:[%s4766_s2] ss:$0 sm:$0xff] }
  0xa9   : > { %v1391_v44 = vrot.slane %v1390_v22, 4  ;;  %v1414_v40 = vor.u32 %v1413_v19, %v1410_v55  ;;  %v1424_v59 = vor.u32 %v1423_v38, %v1419_v10  ;;  %v3203_v30 = vrot.slane %v3195_v47, 9 }
  0xaa   : > { %v2505_v56 = vsel %vm4026_vm7, %v3201_v20, %v2504_v63  ;;  %v2515_v41 = vsel %vm4026_vm7, %v2513_v39, %v2514_v26  ;;  %v2520_v12 = vrot.slane %v2518_v15, 4  ;;  %v2521_v58 = vrot.slane %v4521_v60, 5 }
  0xab   : > { %v1396_v51 = vsel %vm3871_vm4, %v1391_v44, %v1395_v48  ;;  %v3210_v16 = vcombine.low %v2505_v56, %v2508_v28  ;;  %v3211_v49 = vcombine.low %v2512_v11, %v2515_v41  ;;  %v1415_v46 = vrot.slane %v1414_v40, 4 }
  0xac   : > { %v1425_v54 = vrot.slane %v1424_v59, 4  ;;  %v2519_v48 = vsel %vm4026_vm7, %v3203_v30, %v2518_v15  ;;  %v2522_v50 = vsel %vm4026_vm7, %v2520_v12, %v2521_v58 }
  0xad   : > { %3486 = vmatmul.mubr.msk.bf16.vlgmr.msra.gmra.mrb[0].mxu0 %vm474_vm3, %v3206_v43  ;;  %v1401_v43 = vrot.slane %v1400_v7, 4  ;;  %v1420_v60 = vsel %vm3871_vm4, %v1415_v46, %v1419_v10  ;;  %v3212_v29 = vcombine.low %v2519_v48, %v2522_v50 }
  0xae   : > { %3489 = vmatprep.mubr.msk.bf16.mxu0 %vm474_vm3, %v3207_v18  ;;  %v4790_v18 = vld [vmem:[#allocation4_spill] sm:$0xff] }
  0xaf   : > { %3404 = vmatmul.mubr.msk.bf16.gmra.mrb[8].mxu1 %vm474_vm3, %v3703_v37  ;;  %v1427_v4 = vshll.u32 %v4790_v18, 16  ;;  %v1406_v37 = vsel %vm3871_vm4, %v1401_v43, %v1405_v45 }
  0xb0   : > { %3407 = vmatprep.mubr.msk.bf16.mxu1 %vm474_vm3, %v3704_v23  ;;  %v3069_v23 = vcombine.low %v1396_v51, %v1406_v37 }
  0xb1   : > { %v1429_v62 = vrot.slane %v1427_v4, 5 }
  0xb3   : > { %v1430_v17 = vsel %vm3871_vm4, %v1425_v54, %v1429_v62 }
  0xb4   : > { %v3070_v35 = vcombine.low %v1420_v60, %v1430_v17 }
  0xb5   : > { %3490 = vmatmul.mubr.msk.bf16.gmra.mrb[4].mxu0 %vm474_vm3, %v3208_v42 }
  0xb6   : > { %3493 = vmatprep.mubr.msk.bf16.mxu0 %vm474_vm3, %v3209_v36 }
  0xb7   : > { %3408 = vmatmul.mubr.msk.bf16.gmra.mrb[12].mxu1 %vm474_vm3, %v3705_v52 }
  0xb8   : > { %3421 = vmatprep.mubr.msk.bf16.mxu1 %vm474_vm3, %v3067_v21 }
  0xbd   : > { %3494 = vmatmul.mubr.msk.bf16.gmra.mrb[8].mxu0 %vm474_vm3, %v3210_v16 }
  0xbe   : > { %3497 = vmatprep.mubr.msk.bf16.mxu0 %vm474_vm3, %v3211_v49 }
  0xbf   : > { %3422 = vmatmul.mubr.msk.bf16.vlgmr.msra.gmra.mrb[8].mxu1 %vm474_vm3, %v4574_v3 }
  0xc0   : > { %3425 = vmatprep.mubr.msk.bf16.mxu1 %vm474_vm3, %v3069_v23 }
  0xc5   : > { %3498 = vmatmul.mubr.msk.bf16.gmra.mrb[12].mxu0 %vm474_vm3, %v3212_v29 }
  0xc7   : > { %3426 = vmatmul.mubr.msk.bf16.gmra.mrb[12].mxu1 %vm474_vm3, %v3070_v35 }
 0x172   : > { %v3397_v3 = vpop.f32.mrb[0].mxu1 }
 0x173   : > { %v1136_v63 = vpop.f32.mrb[1].mxu1 }
 0x174   : > { %v3398_v14 = vpop.f32.mrb[2].mxu1 }
 0x175   : > { %v1139_v5 = vpop.f32.mrb[3].mxu1 }
 0x17a   : > { %v3401_v1 = vpop.f32.mrb[4].mxu1 }
 0x17b   : > { %v1152_v13 = vpop.f32.mrb[5].mxu1 }
 0x17c   : > { %v3402_v24 = vpop.f32.mrb[6].mxu1 }
 0x17d   : > { %v1155_v8 = vpop.f32.mrb[7].mxu1 }
 0x180   : > { %v3487_v32 = vpop.f32.mrb[0].mxu0 }
 0x181   : > { %v3503_v27 = vadd.f32 %v3487_v32, %v3397_v3  ;;  %v2610_v34 = vpop.f32.mrb[1].mxu0 }
 0x182   : > { %v3504_v9 = vadd.f32 %v2610_v34, %v1136_v63  ;;  %v3488_v61 = vpop.f32.mrb[2].mxu0 }
 0x183   : > { %v2698_v6 = vmul.f32 %v3503_v27, %v4673_v0  ;;  %v3505_v42 = vadd.f32 %v3488_v61, %v3398_v14  ;;  %v2613_v22 = vpop.f32.mrb[3].mxu0 }
 0x184   : > { %v2696_v7 = vmul.f32 %v3504_v9, %v4673_v0  ;;  %v3506_v33 = vadd.f32 %v2613_v22, %v1139_v5 }
 0x185   : > { %v2721_v25 = vadd.f32 %v4678_v2, %v2698_v6  ;;  %v2699_v36 = vmul.f32 %v3505_v42, %v4673_v0 }
 0x186   : > { %v2719_v20 = vadd.f32 %v4678_v2, %v2696_v7  ;;  %v2697_v53 = vmul.f32 %v3506_v33, %v4673_v0 }
 0x187   : > { %v2737_v57 = vmax.f32 %v2721_v25, 0.0  ;;  %v2722_v52 = vadd.f32 %v4678_v2, %v2699_v36 }
 0x188   : > { %v2735_v21 = vmax.f32 %v2719_v20, 0.0  ;;  %v2720_v31 = vadd.f32 %v4678_v2, %v2697_v53  ;;  %v3491_v39 = vpop.f32.mrb[4].mxu0 }
 0x189   : > { %v3244_v26 = vpack.c.bf16 %v2737_v57, %v2737_v57  ;;  %v2738_v55 = vmax.f32 %v2722_v52, 0.0  ;;  %v3507_v19 = vadd.f32 %v3491_v39, %v3401_v1  ;;  %v2626_v10 = vpop.f32.mrb[5].mxu0 }
 0x18a   : > { %v3242_v38 = vpack.c.bf16 %v2735_v21, %v2735_v21  ;;  %v2736_v44 = vmax.f32 %v2720_v31, 0.0  ;;  %v3508_v43 = vadd.f32 %v2626_v10, %v1152_v13  ;;  %v3492_v45 = vpop.f32.mrb[6].mxu0 }
 0x18b   : > { %2818 = vst.msk [vmem:[%s4690_s12 + $0x8] sm:$0xf] %vm2815_vm8, %v3244_v26  ;;  %v3245_v56 = vpack.c.bf16 %v2738_v55, %v2738_v55  ;;  %v2702_v28 = vmul.f32 %v3507_v19, %v4673_v0  ;;  %v3509_v11 = vadd.f32 %v3492_v45, %v3402_v24  ;;  %v2629_v15 = vpop.f32.mrb[7].mxu0 }
 0x18c   : > { %2816 = vst.msk [vmem:[%s4690_s12] sm:$0xf] %vm2815_vm8, %v3242_v38  ;;  %v3243_v41 = vpack.c.bf16 %v2736_v44, %v2736_v44  ;;  %v2700_v40 = vmul.f32 %v3508_v43, %v4673_v0  ;;  %v3510_v59 = vadd.f32 %v2629_v15, %v1155_v8 }
 0x18d   : > { %2819 = vst.msk [vmem:[%s4690_s12 + $0xc] sm:$0xf] %vm2815_vm8, %v3245_v56  ;;  %v2725_v18 = vadd.f32 %v4678_v2, %v2702_v28  ;;  %v2703_v4 = vmul.f32 %v3509_v11, %v4673_v0 }
 0x18e   : > { %2817 = vst.msk [vmem:[%s4690_s12 + $0x4] sm:$0xf] %vm2815_vm8, %v3243_v41  ;;  %v2723_v47 = vadd.f32 %v4678_v2, %v2700_v40  ;;  %v2701_v51 = vmul.f32 %v3510_v59, %v4673_v0 }
 0x18f   : > { %v2741_v37 = vmax.f32 %v2725_v18, 0.0  ;;  %v2726_v16 = vadd.f32 %v4678_v2, %v2703_v4 }
 0x190   : > { %v2739_v49 = vmax.f32 %v2723_v47, 0.0  ;;  %v2724_v30 = vadd.f32 %v4678_v2, %v2701_v51  ;;  %v3495_v12 = vpop.f32.mrb[8].mxu0 }
 0x191   : > { %v3248_v58 = vpack.c.bf16 %v2741_v37, %v2741_v37  ;;  %v2742_v23 = vmax.f32 %v2726_v16, 0.0  ;;  %v2642_v54 = vpop.f32.mrb[9].mxu0 }
 0x192   : > { %v3423_v46 = vpop.f32.mrb[8].mxu1  ;;  %v3246_v62 = vpack.c.bf16 %v2739_v49, %v2739_v49  ;;  %v2740_v48 = vmax.f32 %v2724_v30, 0.0  ;;  %v3496_v17 = vpop.f32.mrb[10].mxu0 }
 0x193   : > { %v3511_v50 = vadd.f32 %v3495_v12, %v3423_v46  ;;  %v1550_v60 = vpop.f32.mrb[9].mxu1  ;;  %2822 = vst.msk [vmem:[%s4690_s12 + $0x18] sm:$0xf] %vm2815_vm8, %v3248_v58  ;;  %v3249_v29 = vpack.c.bf16 %v2742_v23, %v2742_v23  ;;  %v2645_v63 = vpop.f32.mrb[11].mxu0 }
 0x194   : > { %v3512_v35 = vadd.f32 %v2642_v54, %v1550_v60  ;;  %v3424_v3 = vpop.f32.mrb[10].mxu1  ;;  %2820 = vst.msk [vmem:[%s4690_s12 + $0x10] sm:$0xf] %vm2815_vm8, %v3246_v62  ;;  %v3247_v14 = vpack.c.bf16 %v2740_v48, %v2740_v48 }
 0x195   : > { %v2706_v5 = vmul.f32 %v3511_v50, %v4673_v0  ;;  %v3513_v1 = vadd.f32 %v3496_v17, %v3424_v3  ;;  %v1553_v13 = vpop.f32.mrb[11].mxu1  ;;  %2823 = vst.msk [vmem:[%s4690_s12 + $0x1c] sm:$0xf] %vm2815_vm8, %v3249_v29 }
 0x196   : > { %v2704_v24 = vmul.f32 %v3512_v35, %v4673_v0  ;;  %v3514_v8 = vadd.f32 %v2645_v63, %v1553_v13  ;;  %2821 = vst.msk [vmem:[%s4690_s12 + $0x14] sm:$0xf] %vm2815_vm8, %v3247_v14 }
 0x197   : > { %v2729_v32 = vadd.f32 %v4678_v2, %v2706_v5  ;;  %v2707_v27 = vmul.f32 %v3513_v1, %v4673_v0 }
 0x198   : > { %v2727_v34 = vadd.f32 %v4678_v2, %v2704_v24  ;;  %v2705_v9 = vmul.f32 %v3514_v8, %v4673_v0  ;;  %v3499_v42 = vpop.f32.mrb[12].mxu0 }
 0x199   : > { %v2745_v61 = vmax.f32 %v2729_v32, 0.0  ;;  %v2730_v6 = vadd.f32 %v4678_v2, %v2707_v27  ;;  %v2658_v25 = vpop.f32.mrb[13].mxu0 }
 0x19a   : > { %v2743_v22 = vmax.f32 %v2727_v34, 0.0  ;;  %v2728_v7 = vadd.f32 %v4678_v2, %v2705_v9  ;;  %v3427_v33 = vpop.f32.mrb[12].mxu1  ;;  %v3500_v52 = vpop.f32.mrb[14].mxu0 }
 0x19b   : > { %v3252_v36 = vpack.c.bf16 %v2745_v61, %v2745_v61  ;;  %v2746_v20 = vmax.f32 %v2730_v6, 0.0  ;;  %v3515_v53 = vadd.f32 %v3499_v42, %v3427_v33  ;;  %v1566_v57 = vpop.f32.mrb[13].mxu1  ;;  %v2661_v55 = vpop.f32.mrb[15].mxu0 }
 0x19c   : > { %v3250_v21 = vpack.c.bf16 %v2743_v22, %v2743_v22  ;;  %v2744_v31 = vmax.f32 %v2728_v7, 0.0  ;;  %v3516_v39 = vadd.f32 %v2658_v25, %v1566_v57  ;;  %v3428_v26 = vpop.f32.mrb[14].mxu1 }
 0x19d   : > { %2826 = vst.msk [vmem:[%s4690_s12 + $0x28] sm:$0xf] %vm2815_vm8, %v3252_v36  ;;  %v3253_v19 = vpack.c.bf16 %v2746_v20, %v2746_v20  ;;  %v2710_v10 = vmul.f32 %v3515_v53, %v4673_v0  ;;  %v3517_v38 = vadd.f32 %v3500_v52, %v3428_v26  ;;  %v1569_v44 = vpop.f32.mrb[15].mxu1 }
 0x19e   : > { %2824 = vst.msk [vmem:[%s4690_s12 + $0x20] sm:$0xf] %vm2815_vm8, %v3250_v21  ;;  %v3251_v43 = vpack.c.bf16 %v2744_v31, %v2744_v31  ;;  %v2708_v45 = vmul.f32 %v3516_v39, %v4673_v0  ;;  %v3518_v56 = vadd.f32 %v2661_v55, %v1569_v44 }
 0x19f   : > { %2827 = vst.msk [vmem:[%s4690_s12 + $0x2c] sm:$0xf] %vm2815_vm8, %v3253_v19  ;;  %v2733_v28 = vadd.f32 %v4678_v2, %v2710_v10  ;;  %v2711_v11 = vmul.f32 %v3517_v38, %v4673_v0 }
 0x1a0   : > { %2825 = vst.msk [vmem:[%s4690_s12 + $0x24] sm:$0xf] %vm2815_vm8, %v3251_v43  ;;  %v2731_v15 = vadd.f32 %v4678_v2, %v2708_v45  ;;  %v2709_v41 = vmul.f32 %v3518_v56, %v4673_v0 }
 0x1a1   : > { %v2749_v40 = vmax.f32 %v2733_v28, 0.0  ;;  %v2734_v59 = vadd.f32 %v4678_v2, %v2711_v11 }
 0x1a2   : > { %v2747_v18 = vmax.f32 %v2731_v15, 0.0  ;;  %v2732_v4 = vadd.f32 %v4678_v2, %v2709_v41 }
 0x1a3   : > { %v3256_v47 = vpack.c.bf16 %v2749_v40, %v2749_v40  ;;  %v2750_v51 = vmax.f32 %v2734_v59, 0.0 }
 0x1a4   : > { %v3254_v37 = vpack.c.bf16 %v2747_v18, %v2747_v18  ;;  %v2748_v16 = vmax.f32 %v2732_v4, 0.0 }
 0x1a5   : > { %2830 = vst.msk [vmem:[%s4690_s12 + $0x38] sm:$0xf] %vm2815_vm8, %v3256_v47  ;;  %v3257_v49 = vpack.c.bf16 %v2750_v51, %v2750_v51 }
 0x1a6   : > { %2828 = vst.msk [vmem:[%s4690_s12 + $0x30] sm:$0xf] %vm2815_vm8, %v3254_v37  ;;  %v3255_v30 = vpack.c.bf16 %v2748_v16, %v2748_v16 }
 0x1a7   : > { %2831 = vst.msk [vmem:[%s4690_s12 + $0x3c] sm:$0xf] %vm2815_vm8, %v3257_v49 }
 0x1a8   : > { %2829 = vst.msk [vmem:[%s4690_s12 + $0x34] sm:$0xf] %vm2815_vm8, %v3255_v30 }
 0x1a9 PF: > { %s14_s19 = sadd.s32 1, %s3745_s19   ;;  %s4791_s15 = smov %s3737_s17 }
 0x1aa   : > { %p11_p7 = scmp.ge.s32.totalorder %s14_s19, 6   ;;  %s4792_s16 = smov %s3741_s18 }
 0x1ab   : > { %s4793_s17 = smov %s4796_s20  ;;  %s4794_s18 = smov %s4800_s21 }
 0x1ac   :  { %13 = sbr.rel (!%p11_p7) target bundleno = 3 (0x3), region = 77 }

// kernel: encoder_block_forward.3
= control target key start
LH: loop header
LB: loop body
LE: loop exit
PB: predicated region body
PF: predicated region fallthrough
CT: control target
= control target key end

     0   :  { %s3887_s18 = smov 0   ;;  %s3889_s19 = smov 0   ;;  %s4950_s0 = inlined_call_operand.vmem [shape: bf16[2,18,18,8], index: 0, kind: input, shape index: {}]   ;;  %s4951_s1 = inlined_call_operand.vmem [shape: bf16[9,8,8], index: 1, kind: input, shape index: {}]   ;;  %s4952_s2 = inlined_call_operand.vmem [shape: f32[1,8], index: 2, kind: input, shape index: {}]   ;;  %s4953_s3 = inlined_call_operand.vmem [shape: f32[1,8], index: 3, kind: input, shape index: {}]   ;;  %s4954_s4 = inlined_call_operand.vmem [shape: f32[2,16,16,8], index: 4, kind: output, shape index: {0}]   ;;  %s4955_s5 = inlined_call_operand.vmem [shape: f32[2,8,8,8], index: 5, kind: output, shape index: {1}]  }
   0x1   :  { %s3891_s20 = smov 0   ;;  %s3893_s21 = smov 0  }
   0x2   :  { %s3895_s22 = smov 0  }
   0x3 LB: > { %s25_s23 = sadd.s32 1, %s3847_s20  ;;  %s28_s24 = sadd.s32 1, %s3851_s21  ;;  %s3855_s22 = sphi %s3895_s22, %s16_s22   ;;  %s3851_s21 = sphi %s3893_s21, %s4981_s21   ;;  %s3847_s20 = sphi %s3891_s20, %s4980_s20   ;;  %s3843_s19 = sphi %s3889_s19, %s4979_s19   ;;  %s3839_s18 = sphi %s3887_s18, %s4978_s18  }
   0x4   : > { %p26_p0 = scmp.ge.s32.totalorder %s25_s23, 2  ;;  %p3051_p1 = scmp.ge.s32.totalorder %s3855_s22, 1 }
   0x5   : > { %p206_p2 = scmp.lt.s32.totalorder %s3855_s22, 5 }
   0x6   : > { %s4983_s23 = smov (%p26_p0, %s25_s23), 0  ;;  %s4985_s24 = smov (!%p26_p0, %s28_s24), %s3851_s21 }
   0x7   : > { %p207_p3 = pnand %p3051_p1, %p206_p2  ;;  %p30_p4 = scmp.ge.s32.totalorder %s4985_s24, 2 }
   0x9   : > { %s4987_s24 = smov (%p30_p4, %s4985_s24), 0  ;;  %210 = sbr.rel (%p207_p3) target bundleno = 432 (0x1b0), region = 36 }
  0x10   : > { %v3063_v0 = vld [vmem:[%s4951_s1 + $0x4] sm:$0xf]  ;;  %vm550_vm0 = vcmask 1043456   ;;  %v3180_v1 = vld [vmem:[%s4951_s1 + $0x10] sm:$0xf]  ;;  %p248_p5 = scmp.lt.s32.totalorder %s3843_s19, 1 }
  0x11   : > { %3741 = vmatprep.subr.msk.bf16.mxu1 %vm550_vm0, %v3063_v0  ;;  %3745 = vmatprep.subr.msk.bf16.mxu0 %vm550_vm0, %v3180_v1  ;;  %v552_v2 = vsel %vm550_vm0, %v3063_v0, 0  ;;  %v3929_v3 = vsel %vm550_vm0, %v3180_v1, 0  ;;  %v295_v4 = vld [vmem:[%s4951_s1] sm:$0xf]  ;;  %s3367_s6 = smul.u32 96, %s3839_s18  ;;  %vm525_vm3 = vcmask 64512  }
  0x12   : > { %3450 = vmatpush3.bf16.msra.mxu1 %v552_v2  ;;  %3522 = vmatpush3.bf16.msra.mxu0 %v3929_v3  ;;  %s4989_s19 = smov (!%p248_p5, %s3843_s19), 1  ;;  %v3213_v5 = vld [vmem:[%s4951_s1 + $0x14] sm:$0xf]  ;;  %vm304_vm1 = vsmask.f32 3328  ;;  %v3971_v17 = vsel %vm550_vm0, %v295_v4, 0 }
  0x13   : > { %3742 = vmatprep.subr.msk.bf16.mxu1 %vm550_vm0, %v295_v4  ;;  %s3751_s9 = smul.u32 216, %s4989_s19  ;;  %3747 = vmatprep.subr.msk.bf16.mxu0 %vm550_vm0, %v3213_v5  ;;  %vm305_vm2 = vsmask.f32 7440  ;;  %v3977_v26 = vld [vmem:[%s4951_s1 + $0x18] sm:$0xf]  ;;  %v3994_v37 = vsel %vm550_vm0, %v3213_v5, 0 }
  0x14   : > { %vm3986_vm4 = vmor %vm304_vm1, %vm305_vm2  ;;  %v3998_v41 = vsel %vm550_vm0, %v3977_v26, 0  ;;  %vm839_vm5 = vcmask 1042432   ;;  %vm840_vm6 = vcmask 1046532   ;;  %s3053_s8 = sshll.u32 %s3839_s18, 3  ;;  %s3057_s11 = sshll.u32 %s3839_s18, 2  ;;  %vm2824_vm8 = vcmask 57344  }
  0x15   : > { %s252_s12 = scalar_lea.vmem %s4950_s0, %s3751_s9  ;;  %vm4141_vm7 = vmor %vm839_vm5, %vm840_vm6  ;;  %p256_p6 = scmp.lt.s32.totalorder %s3053_s8, 15  ;;  %vm2826_vm9 = vcmask 59394   ;;  %vm2828_vm10 = vcmask 61444   ;;  %vm2830_vm11 = vcmask 63494  }
  0x16   : > { %s3947_s13 = scalar_lea.vmem %s252_s12, %s3367_s6  ;;  %s3055_s9 = sshll.u32 %s4989_s19, 5 }
  0x17   : > { %v3950_v6 = vld [vmem:[%s3947_s13] sm:$0xf]  ;;  %v3953_v7 = vld [vmem:[%s3947_s13 + $0x4] sm:$0xf]  ;;  %v3956_v8 = vld [vmem:[%s3947_s13 + $0x8] sm:$0x1] }
  0x18   : > { %v308_v9 = vshrl.u32 %v3950_v6, 16  ;;  %v311_v10 = vshll.u32 %v3950_v6, 16  ;;  %v317_v11 = vshll.u32 %v3953_v7, 16  ;;  %v321_v12 = vshrl.u32 %v3953_v7, 16  ;;  %v3156_v13 = vld [vmem:[%s3947_s13 + $0xc] sm:$0xf] }
  0x19   : > { %v327_v14 = vshll.u32 %v3956_v8, 16  ;;  %v3965_v15 = vld [vmem:[%s3947_s13 + $0x10] sm:$0xf]  ;;  %v3968_v16 = vld [vmem:[%s3947_s13 + $0x14] sm:$0x1]  ;;  %v1291_v23 = vshrl.u32 %v3156_v13, 16 }
  0x1a   : > { %v310_v18 = vrot.slane %v308_v9, 4  ;;  %v313_v19 = vrot.slane %v311_v10, 5  ;;  %v319_v20 = vrot.slane %v317_v11, 5  ;;  %v323_v21 = vrot.slane %v321_v12, 4  ;;  %v3982_v31 = vld [vmem:[%s3947_s13 + $0xc] sm:$0xf] }
  0x1b   : > { %v329_v22 = vrot.slane %v327_v14, 5  ;;  %v1294_v24 = vshll.u32 %v3156_v13, 16  ;;  %v1300_v25 = vshll.u32 %v3965_v15, 16  ;;  %v1304_v29 = vshrl.u32 %v3965_v15, 16  ;;  %v3991_v36 = vld [vmem:[%s3947_s13 + $0x10] sm:$0xf] }
  0x1c   : > { %v314_v27 = vor.u32 %v313_v19, %v310_v18  ;;  %v324_v28 = vor.u32 %v323_v21, %v319_v20  ;;  %v1310_v30 = vshll.u32 %v3968_v16, 16  ;;  %v1293_v33 = vrot.slane %v1291_v23, 4  ;;  %v4001_v44 = vld [vmem:[%s3947_s13 + $0x14] sm:$0x1]  ;;  %v3159_v55 = vld [vmem:[%s3947_s13 + $0x18] sm:$0xf] }
  0x1d   : > { %v1296_v34 = vrot.slane %v1294_v24, 5  ;;  %v1302_v35 = vrot.slane %v1300_v25, 5  ;;  %v1306_v40 = vrot.slane %v1304_v29, 4  ;;  %v332_v45 = vshrl.u32 %v3982_v31, 16  ;;  %v4014_v60 = vld [vmem:[%s3947_s13 + $0x1c] sm:$0xf] }
  0x1e   : > { %v315_v38 = vrot.slane %v314_v27, 4  ;;  %v325_v39 = vrot.slane %v324_v28, 4  ;;  %v1312_v43 = vrot.slane %v1310_v30, 5  ;;  %v335_v46 = vshll.u32 %v3982_v31, 16  ;;  %v4022_v1 = vld [vmem:[%s3947_s13 + $0x20] sm:$0x1] }
  0x1f   : > { %v1297_v42 = vor.u32 %v1296_v34, %v1293_v33  ;;  %v1307_v49 = vor.u32 %v1306_v40, %v1302_v35  ;;  %v341_v50 = vshll.u32 %v3991_v36, 16  ;;  %v334_v53 = vrot.slane %v332_v45, 4  ;;  %v4030_v21 = vld [vmem:[%s3947_s13 + $0x18] sm:$0xf]  ;;  %v4037_v27 = vld [vmem:[%s3947_s13 + $0x1c] sm:$0xf] }
  0x20   : > { %v320_v47 = vsel %vm3986_vm4, %v315_v38, %v319_v20  ;;  %v330_v48 = vsel %vm3986_vm4, %v325_v39, %v329_v22  ;;  %v337_v54 = vrot.slane %v335_v46, 5  ;;  %v345_v58 = vshrl.u32 %v3991_v36, 16  ;;  %v4045_v38 = vld [vmem:[%s3947_s13 + $0x20] sm:$0x1]  ;;  %s4991_s8 = smov (!%p256_p6, %s3053_s8), 15  ;;  %p267_p7 = scmp.lt.s32.totalorder %s3057_s11, 7 }
  0x21   : > { %v3064_v51 = vcombine.low %v320_v47, %v330_v48  ;;  %v1298_v52 = vrot.slane %v1297_v42, 4  ;;  %v1308_v56 = vrot.slane %v1307_v49, 4  ;;  %v343_v57 = vrot.slane %v341_v50, 5  ;;  %v3162_v47 = vld [vmem:[%s3947_s13 + $0x24] sm:$0xf]  ;;  %s3054_s10 = sshll.u32 %s4991_s8, 1 }
  0x22   : > { %v351_v59 = vshll.u32 %v4001_v44, 16  ;;  %v1682_v62 = vrot.slane %v3965_v15, 5  ;;  %v1685_v63 = vrot.slane %v3968_v16, 5  ;;  %v338_v0 = vor.u32 %v337_v54, %v334_v53  ;;  %s260_s12 = sadd.s32 %s3055_s9, %s3054_s10  ;;  %s4993_s11 = smov (!%p267_p7, %s3057_s11), 7 }
  0x23   : > { %3451 = vmatprep.mubr.msk.bf16.mxu1 %vm525_vm3, %v3064_v51  ;;  %v1303_v61 = vsel %vm3986_vm4, %v1298_v52, %v1302_v35  ;;  %v1313_v2 = vsel %vm3986_vm4, %v1308_v56, %v1312_v43  ;;  %v347_v4 = vrot.slane %v345_v58, 4  ;;  %v1315_v9 = vshrl.u32 %v3159_v55, 16  ;;  %v4055_v52 = vld [vmem:[%s3947_s13 + $0x28] sm:$0xf]  ;;  %s3056_s15 = sshll.u32 %s260_s12, 3  ;;  %s3058_s18 = sshll.u32 %s4989_s19, 3 }
  0x24   : > { %v353_v5 = vrot.slane %v351_v59, 5  ;;  %v3181_v10 = vcombine.low %v1303_v61, %v1313_v2  ;;  %v339_v11 = vrot.slane %v338_v0, 4  ;;  %v1318_v12 = vshll.u32 %v3159_v55, 16  ;;  %v4067_v61 = vld [vmem:[%s3947_s13 + $0x2c] sm:$0x1]  ;;  %s4804_s27 = scalar_lea.vmem %s4954_s4, %s3056_s15  ;;  %s270_s19 = sadd.s32 %s3058_s18, %s4993_s11 }
  0x25   : > { %v1324_v13 = vshll.u32 %v4014_v60, 16  ;;  %v348_v14 = vor.u32 %v347_v4, %v343_v57  ;;  %v1317_v18 = vrot.slane %v1315_v9, 4  ;;  %v1328_v19 = vshrl.u32 %v4014_v60, 16  ;;  %s3059_s28 = sshll.u32 %s270_s19, 3 }
  0x26   : > { %v1334_v20 = vshll.u32 %v4022_v1, 16  ;;  %3523 = vmatprep.mubr.msk.bf16.mxu0 %vm525_vm3, %v3181_v10  ;;  %v344_v22 = vsel %vm3986_vm4, %v339_v11, %v343_v57  ;;  %v1320_v23 = vrot.slane %v1318_v12, 5  ;;  %v1689_v25 = vrot.slane %v4014_v60, 5  ;;  %v4061_v57 = vld [vmem:[%s4951_s1 + $0x8] sm:$0xf]  ;;  %s4823_s6 = scalar_lea.vmem %s4955_s5, %s3059_s28 }
  0x27   : > { %v1326_v24 = vrot.slane %v1324_v13, 5  ;;  %v349_v28 = vrot.slane %v348_v14, 4  ;;  %v1330_v29 = vrot.slane %v1328_v19, 4  ;;  %v1692_v33 = vrot.slane %v4022_v1, 5  ;;  %v4074_v11 = vld [vmem:[%s3947_s13 + $0x24] sm:$0xf] }
  0x28   : > { %v1336_v30 = vrot.slane %v1334_v20, 5  ;;  %v1321_v34 = vor.u32 %v1320_v23, %v1317_v18  ;;  %v4042_v35 = vrot.slane %v1689_v25, 4  ;;  %v356_v39 = vshrl.u32 %v4030_v21, 16  ;;  %v4077_v19 = vld [vmem:[%s3947_s13 + $0x28] sm:$0xf] }
  0x29   : > { %v359_v40 = vshll.u32 %v4030_v21, 16  ;;  %v354_v42 = vsel %vm3986_vm4, %v349_v28, %v353_v5  ;;  %v1331_v43 = vor.u32 %v1330_v29, %v1326_v24  ;;  %v365_v45 = vshll.u32 %v4037_v27, 16  ;;  %v4087_v29 = vld [vmem:[%s3947_s13 + $0x2c] sm:$0x1] }
  0x2a   : > { %v369_v46 = vshrl.u32 %v4037_v27, 16  ;;  %v3065_v48 = vcombine.low %v344_v22, %v354_v42  ;;  %v1322_v49 = vrot.slane %v1321_v34, 4  ;;  %v358_v50 = vrot.slane %v356_v39, 4 }
  0x2b   : > { %v361_v51 = vrot.slane %v359_v40, 5  ;;  %v1332_v53 = vrot.slane %v1331_v43, 4  ;;  %v367_v54 = vrot.slane %v365_v45, 5  ;;  %v375_v56 = vshll.u32 %v4045_v38, 16  ;;  %v3165_v45 = vld [vmem:[%s3947_s13 + $0x30] sm:$0xf] }
  0x2c   : > { %v371_v55 = vrot.slane %v369_v46, 4  ;;  %3452 = vmatmul.mubr.msk.bf16.vlgmr.msra.gmra.mrb[0].mxu1 %vm525_vm3, %v3065_v48  ;;  %v1327_v58 = vsel %vm3986_vm4, %v1322_v49, %v1326_v24  ;;  %v1339_v0 = vshrl.u32 %v3162_v47, 16  ;;  %v1342_v2 = vshll.u32 %v3162_v47, 16 }
  0x2d   : > { %v362_v59 = vor.u32 %v361_v51, %v358_v50  ;;  %3468 = vmatpush3.bf16.msra.mxu1 %v3971_v17  ;;  %v1337_v4 = vsel %vm3986_vm4, %v1332_v53, %v1336_v30  ;;  %v377_v9 = vrot.slane %v375_v56, 5  ;;  %v1348_v10 = vshll.u32 %v4055_v52, 16  ;;  %v4097_v50 = vld [vmem:[%s3947_s13 + $0x34] sm:$0xf] }
  0x2e   : > { %v372_v5 = vor.u32 %v371_v55, %v367_v54  ;;  %v3182_v12 = vcombine.low %v1327_v58, %v1337_v4  ;;  %v1341_v14 = vrot.slane %v1339_v0, 4  ;;  %v1344_v18 = vrot.slane %v1342_v2, 5  ;;  %3743 = vmatprep.subr.msk.bf16.mxu1 %vm550_vm0, %v4061_v57  ;;  %v4107_v58 = vld [vmem:[%s3947_s13 + $0x38] sm:$0x1] }
  0x2f   : > { %v363_v13 = vrot.slane %v362_v59, 4  ;;  %v1350_v20 = vrot.slane %v1348_v10, 5  ;;  %v1352_v22 = vshrl.u32 %v4055_v52, 16  ;;  %v1358_v23 = vshll.u32 %v4067_v61, 16 }
  0x30   : > { %v373_v17 = vrot.slane %v372_v5, 4  ;;  %3524 = vmatmul.mubr.msk.bf16.vlgmr.msra.gmra.mrb[0].mxu0 %vm525_vm3, %v3182_v12  ;;  %v1345_v28 = vor.u32 %v1344_v18, %v1341_v14  ;;  %v380_v30 = vshrl.u32 %v4074_v11, 16  ;;  %v383_v34 = vshll.u32 %v4074_v11, 16  ;;  %v4112_v14 = vld [vmem:[%s3947_s13 + $0x30] sm:$0xf] }
  0x31   : > { %v368_v24 = vsel %vm3986_vm4, %v363_v13, %v367_v54  ;;  %3540 = vmatpush3.bf16.msra.mxu0 %v3994_v37  ;;  %v1354_v40 = vrot.slane %v1352_v22, 4  ;;  %v1360_v42 = vrot.slane %v1358_v23, 5  ;;  %v389_v43 = vshll.u32 %v4077_v19, 16  ;;  %v4118_v23 = vld [vmem:[%s3947_s13 + $0x34] sm:$0xf] }
  0x32   : > { %v378_v39 = vsel %vm3986_vm4, %v373_v17, %v377_v9  ;;  %v1346_v47 = vrot.slane %v1345_v28, 4  ;;  %v382_v48 = vrot.slane %v380_v30, 4  ;;  %v385_v49 = vrot.slane %v383_v34, 5  ;;  %3748 = vmatprep.subr.msk.bf16.mxu0 %vm550_vm0, %v3977_v26 }
  0x33   : > { %v3066_v46 = vcombine.low %v368_v24, %v378_v39  ;;  %v1355_v37 = vor.u32 %v1354_v40, %v1350_v20  ;;  %v391_v51 = vrot.slane %v389_v43, 5  ;;  %v393_v53 = vshrl.u32 %v4077_v19, 16  ;;  %v4123_v39 = vld [vmem:[%s3947_s13 + $0x38] sm:$0x1] }
  0x34   : > { %v399_v54 = vshll.u32 %v4087_v29, 16  ;;  %v1351_v55 = vsel %vm3986_vm4, %v1346_v47, %v1350_v20  ;;  %v386_v56 = vor.u32 %v385_v49, %v382_v48  ;;  %v1363_v59 = vshrl.u32 %v3165_v45, 16 }
  0x35   : > { %3455 = vmatprep.mubr.msk.bf16.mxu1 %vm525_vm3, %v3066_v46  ;;  %v1366_v0 = vshll.u32 %v3165_v45, 16  ;;  %v1356_v2 = vrot.slane %v1355_v37, 4  ;;  %v395_v26 = vrot.slane %v393_v53, 4  ;;  %v1372_v5 = vshll.u32 %v4097_v50, 16  ;;  %v3197_v37 = vld [vmem:[%s3947_s13 + $0xc] sm:$0xe] }
  0x36   : > { %v401_v4 = vrot.slane %v399_v54, 5  ;;  %v387_v9 = vrot.slane %v386_v56, 4  ;;  %v1365_v10 = vrot.slane %v1363_v59, 4  ;;  %v1376_v13 = vshrl.u32 %v4097_v50, 16  ;;  %v4135_v56 = vld [vmem:[%s3947_s13 + $0x3c] sm:$0xf] }
  0x37   : > { %v1368_v12 = vrot.slane %v1366_v0, 5  ;;  %v1361_v18 = vsel %vm3986_vm4, %v1356_v2, %v1360_v42  ;;  %v396_v17 = vor.u32 %v395_v26, %v391_v51  ;;  %v1374_v20 = vrot.slane %v1372_v5, 5 }
  0x38   : > { %v1382_v22 = vshll.u32 %v4107_v58, 16  ;;  %v3183_v24 = vcombine.low %v1351_v55, %v1361_v18  ;;  %v392_v28 = vsel %vm3986_vm4, %v387_v9, %v391_v51  ;;  %v1378_v34 = vrot.slane %v1376_v13, 4  ;;  %v4149_v18 = vld [vmem:[%s3947_s13 + $0x44] sm:$0x1] }
  0x39   : > { %v1369_v30 = vor.u32 %v1368_v12, %v1365_v10  ;;  %v397_v40 = vrot.slane %v396_v17, 4  ;;  %v404_v42 = vshrl.u32 %v4112_v14, 16  ;;  %v407_v45 = vshll.u32 %v4112_v14, 16  ;;  %v3198_v17 = vld [vmem:[%s3947_s13 + $0x18] sm:$0xe] }
  0x3a   : > { %v1384_v43 = vrot.slane %v1382_v22, 5  ;;  %3527 = vmatprep.mubr.msk.bf16.mxu0 %vm525_vm3, %v3183_v24  ;;  %v1379_v47 = vor.u32 %v1378_v34, %v1374_v20  ;;  %v413_v48 = vshll.u32 %v4118_v23, 16  ;;  %v417_v49 = vshrl.u32 %v4118_v23, 16 }
  0x3b   : > { %v1370_v46 = vrot.slane %v1369_v30, 4  ;;  %v402_v51 = vsel %vm3986_vm4, %v397_v40, %v401_v4  ;;  %v406_v53 = vrot.slane %v404_v42, 4  ;;  %v409_v54 = vrot.slane %v407_v45, 5  ;;  %v4146_v4 = vld [vmem:[%s3947_s13 + $0x40] sm:$0xf] }
  0x3c   : > { %v423_v55 = vshll.u32 %v4123_v39, 16  ;;  %v3067_v59 = vcombine.low %v392_v28, %v402_v51  ;;  %v1380_v2 = vrot.slane %v1379_v47, 4  ;;  %v415_v26 = vrot.slane %v413_v48, 5  ;;  %v4160_v30 = vld [vmem:[%s3947_s13 + $0x48] sm:$0xf] }
  0x3d   : > { %v1375_v0 = vsel %vm3986_vm4, %v1370_v46, %v1374_v20  ;;  %v410_v9 = vor.u32 %v409_v54, %v406_v53  ;;  %v419_v10 = vrot.slane %v417_v49, 4  ;;  %v3205_v13 = vrot.slane %v3197_v37, 9 }
  0x3e   : > { %v425_v12 = vrot.slane %v423_v55, 5  ;;  %3456 = vmatmul.mubr.msk.bf16.gmra.mrb[4].mxu1 %vm525_vm3, %v3067_v59  ;;  %v1385_v20 = vsel %vm3986_vm4, %v1380_v2, %v1384_v43  ;;  %v1684_v22 = vrot.slane %v1682_v62, 4  ;;  %v428_v24 = vshrl.u32 %v4135_v56, 16  ;;  %v4180_v55 = vld [vmem:[%s3947_s13 + $0x50] sm:$0x1] }
  0x3f   : > { %v431_v28 = vshll.u32 %v4135_v56, 16  ;;  %v3184_v34 = vcombine.low %v1375_v0, %v1385_v20  ;;  %v411_v40 = vrot.slane %v410_v9, 4  ;;  %v420_v42 = vor.u32 %v419_v10, %v415_v26 }
  0x40   : > { %v1683_v45 = vsel %vm4141_vm7, %v3205_v13, %v1682_v62  ;;  %v1686_v43 = vsel %vm4141_vm7, %v1684_v22, %v1685_v63  ;;  %v430_v46 = vrot.slane %v428_v24, 4  ;;  %v437_v48 = vshll.u32 %v4146_v4, 16  ;;  %v4176_v62 = vld [vmem:[%s3947_s13 + $0x4c] sm:$0xf] }
  0x41   : > { %v433_v47 = vrot.slane %v431_v28, 5  ;;  %3528 = vmatmul.mubr.msk.bf16.gmra.mrb[4].mxu0 %vm525_vm3, %v3184_v34  ;;  %v416_v49 = vsel %vm3986_vm4, %v411_v40, %v415_v26  ;;  %v421_v37 = vrot.slane %v420_v42, 4  ;;  %v3214_v15 = vcombine.low %v1683_v45, %v1686_v43  ;;  %v4198_v28 = vld [vmem:[%s3947_s13 + $0x54] sm:$0xf]  ;;  %v4209_v34 = vld [vmem:[%s4951_s1 + $0x1c] sm:$0xf] }
  0x42   : > { %v441_v51 = vshrl.u32 %v4146_v4, 16  ;;  %v439_v53 = vrot.slane %v437_v48, 5  ;;  %v447_v63 = vshll.u32 %v4149_v18, 16  ;;  %v3206_v54 = vrot.slane %v3198_v17, 9 }
  0x43   : > { %v434_v16 = vor.u32 %v433_v47, %v430_v46  ;;  %v426_v59 = vsel %vm3986_vm4, %v421_v37, %v425_v12  ;;  %3541 = vmatprep.mubr.msk.bf16.mxu0 %vm525_vm3, %v3214_v15  ;;  %v1693_v2 = vsel %vm4141_vm7, %v4042_v35, %v1692_v33  ;;  %v452_v26 = vshrl.u32 %v4160_v30, 16  ;;  %v3199_v12 = vld [vmem:[%s3947_s13 + $0x24] sm:$0xe]  ;;  %v4214_v37 = vld [vmem:[%s3947_s13 + $0x58] sm:$0xf] }
  0x44   : > { %v443_v0 = vrot.slane %v441_v51, 4  ;;  %v3068_v9 = vcombine.low %v416_v49, %v426_v59  ;;  %v449_v13 = vrot.slane %v447_v63, 5  ;;  %v1690_v17 = vsel %vm4141_vm7, %v3206_v54, %v1689_v25  ;;  %v4223_v54 = vld [vmem:[%s3947_s13 + $0x5c] sm:$0x1] }
  0x45   : > { %v435_v10 = vrot.slane %v434_v16, 4  ;;  %v3215_v22 = vcombine.low %v1690_v17, %v1693_v2  ;;  %v454_v24 = vrot.slane %v452_v26, 4  ;;  %v455_v1 = vshll.u32 %v4160_v30, 16 }
  0x46   : > { %v444_v20 = vor.u32 %v443_v0, %v439_v53  ;;  %3459 = vmatprep.mubr.msk.bf16.mxu1 %vm525_vm3, %v3068_v9  ;;  %v461_v35 = vshll.u32 %v4176_v62, 16  ;;  %v465_v60 = vshrl.u32 %v4176_v62, 16  ;;  %v471_v25 = vshll.u32 %v4180_v55, 16 }
  0x47   : > { %v440_v33 = vsel %vm3986_vm4, %v435_v10, %v439_v53  ;;  %v457_v42 = vrot.slane %v455_v1, 5  ;;  %v3207_v45 = vrot.slane %v3199_v12, 9  ;;  %v1696_v43 = vrot.slane %v4055_v52, 5  ;;  %v3200_v10 = vld [vmem:[%s3947_s13 + $0x30] sm:$0xe] }
  0x48   : > { %v445_v40 = vrot.slane %v444_v20, 4  ;;  %v463_v46 = vrot.slane %v461_v35, 5  ;;  %v467_v47 = vrot.slane %v465_v60, 4  ;;  %v473_v48 = vrot.slane %v471_v25, 5 }
  0x49   : > { %v1699_v49 = vrot.slane %v4067_v61, 5  ;;  %3542 = vmatmul.mubr.msk.bf16.vlgmr.msra.gmra.mrb[0].mxu0 %vm525_vm3, %v3215_v22  ;;  %v458_v51 = vor.u32 %v457_v42, %v454_v24  ;;  %v1697_v16 = vsel %vm4141_vm7, %v3207_v45, %v1696_v43  ;;  %v1698_v53 = vrot.slane %v1696_v43, 4  ;;  %v4244_v42 = vld [vmem:[%s3947_s13 + $0x40] sm:$0xf]  ;;  %v4247_v45 = vld [vmem:[%s3947_s13 + $0x44] sm:$0x1] }
  0x4a   : > { %v450_v15 = vsel %vm3986_vm4, %v445_v40, %v449_v13  ;;  %3558 = vmatpush3.bf16.msra.mxu0 %v3998_v41  ;;  %v468_v52 = vor.u32 %v467_v47, %v463_v46  ;;  %v476_v61 = vshrl.u32 %v4198_v28, 16  ;;  %v479_v59 = vshll.u32 %v4198_v28, 16 }
  0x4b   : > { %v3069_v63 = vcombine.low %v440_v33, %v450_v15  ;;  %v459_v0 = vrot.slane %v458_v51, 4  ;;  %v1700_v2 = vsel %vm4141_vm7, %v1698_v53, %v1699_v49  ;;  %v485_v26 = vshll.u32 %v4214_v37, 16  ;;  %3749 = vmatprep.subr.msk.bf16.mxu0 %vm550_vm0, %v4209_v34  ;;  %v3201_v33 = vld [vmem:[%s3947_s13 + $0x3c] sm:$0xe] }
  0x4c   : > { %v489_v9 = vshrl.u32 %v4214_v37, 16  ;;  %v469_v41 = vrot.slane %v468_v52, 4  ;;  %v3216_v13 = vcombine.low %v1697_v16, %v1700_v2  ;;  %v478_v17 = vrot.slane %v476_v61, 4  ;;  %v3202_v2 = vld [vmem:[%s3947_s13 + $0x48] sm:$0xe] }
  0x4d   : > { %3460 = vmatmul.mubr.msk.bf16.gmra.mrb[8].mxu1 %vm525_vm3, %v3069_v63  ;;  %v481_v12 = vrot.slane %v479_v59, 5  ;;  %v464_v20 = vsel %vm3986_vm4, %v459_v0, %v463_v46  ;;  %v487_v22 = vrot.slane %v485_v26, 5  ;;  %v495_v1 = vshll.u32 %v4223_v54, 16  ;;  %v4262_v59 = vld [vmem:[%s3947_s13 + $0x4c] sm:$0xf] }
  0x4e   : > { %v491_v24 = vrot.slane %v489_v9, 4  ;;  %v474_v35 = vsel %vm3986_vm4, %v469_v41, %v473_v48  ;;  %3545 = vmatprep.mubr.msk.bf16.mxu0 %vm525_vm3, %v3216_v13  ;;  %v3208_v25 = vrot.slane %v3200_v10, 9  ;;  %v1703_v40 = vrot.slane %v4097_v50, 5  ;;  %v4265_v0 = vld [vmem:[%s3947_s13 + $0x50] sm:$0x1] }
  0x4f   : > { %v482_v60 = vor.u32 %v481_v12, %v478_v17  ;;  %v3070_v43 = vcombine.low %v464_v20, %v474_v35  ;;  %v497_v47 = vrot.slane %v495_v1, 5  ;;  %v1706_v49 = vrot.slane %v4107_v58, 5  ;;  %v4273_v17 = vld [vmem:[%s3947_s13 + $0x58] sm:$0xf]  ;;  %v4276_v12 = vld [vmem:[%s3947_s13 + $0x5c] sm:$0x1] }
  0x50   : > { %v492_v46 = vor.u32 %v491_v24, %v487_v22  ;;  %v1704_v48 = vsel %vm4141_vm7, %v3208_v25, %v1703_v40  ;;  %v1705_v51 = vrot.slane %v1703_v40, 4  ;;  %v3209_v16 = vrot.slane %v3201_v33, 9  ;;  %4965 = vst [vmem:[#allocation2_spill] sm:$0xff] %v4276_v12  ;;  %v4286_v35 = vld [vmem:[%s3947_s13 + $0x64] sm:$0xf] }
  0x51   : > { %v483_v15 = vrot.slane %v482_v60, 4  ;;  %3463 = vmatprep.mubr.msk.bf16.mxu1 %vm525_vm3, %v3070_v43  ;;  %v1710_v53 = vrot.slane %v4244_v42, 5  ;;  %v1713_v63 = vrot.slane %v4247_v45, 5  ;;  %v3080_v61 = vcombine.low %v3950_v6, %v3953_v7  ;;  %v3203_v6 = vld [vmem:[%s3947_s13 + $0x54] sm:$0xe]  ;;  %4966 = vst [vmem:[#allocation3_spill] sm:$0xff] %v4286_v35 }
  0x52   : > { %v493_v50 = vrot.slane %v492_v46, 4  ;;  %v1707_v58 = vsel %vm4141_vm7, %v1705_v51, %v1706_v49  ;;  %v1717_v24 = vrot.slane %v4262_v59, 5  ;;  %v1720_v1 = vrot.slane %v4265_v0, 5  ;;  %v4289_v60 = vld [vmem:[%s3947_s13 + $0x68] sm:$0x1] }
  0x53   : > { %v488_v52 = vsel %vm3986_vm4, %v483_v15, %v487_v22  ;;  %v3217_v9 = vcombine.low %v1704_v48, %v1707_v58  ;;  %v1711_v10 = vsel %vm4141_vm7, %v3209_v16, %v1710_v53  ;;  %v1712_v41 = vrot.slane %v1710_v53, 4  ;;  %4967 = vst [vmem:[#allocation4_spill] sm:$0xff] %v4289_v60 }
  0x54   : > { %v498_v26 = vsel %vm3986_vm4, %v493_v50, %v497_v47  ;;  %v3210_v22 = vrot.slane %v3202_v2, 9  ;;  %v1719_v40 = vrot.slane %v1717_v24, 4  ;;  %v3211_v43 = vrot.slane %v3203_v6, 9  ;;  %v3204_v47 = vld [vmem:[%s3947_s13 + $0x60] sm:$0xe] }
  0x55   : > { %v3071_v13 = vcombine.low %v488_v52, %v498_v26  ;;  %3546 = vmatmul.mubr.msk.bf16.gmra.mrb[4].mxu0 %vm525_vm3, %v3217_v9  ;;  %v1714_v20 = vsel %vm4141_vm7, %v1712_v41, %v1713_v63  ;;  %v1724_v46 = vrot.slane %v4273_v17, 5  ;;  %v851_v49 = vrot.slane %v3991_v36, 5  ;;  %v817_v2 = vld [vmem:[%s3947_s13 + $0x18] sm:$0xe]  ;;  %v4321_v6 = vld [vmem:[%s4951_s1 + $0xc] sm:$0xf] }
  0x56   : > { %v3218_v33 = vcombine.low %v1711_v10, %v1714_v20  ;;  %v1718_v25 = vsel %vm4141_vm7, %v3210_v22, %v1717_v24  ;;  %v1727_v15 = vrot.slane %v4276_v12, 5  ;;  %v1721_v48 = vsel %vm4141_vm7, %v1719_v40, %v1720_v1  ;;  %v819_v1 = vld [vmem:[%s3947_s13 + $0x30] sm:$0xe] }
  0x57   : > { %3464 = vmatmul.mubr.msk.bf16.gmra.mrb[12].mxu1 %vm525_vm3, %v3071_v13  ;;  %v1725_v51 = vsel %vm4141_vm7, %v3211_v43, %v1724_v46  ;;  %v1726_v16 = vrot.slane %v1724_v46, 4  ;;  %v1731_v50 = vrot.slane %v4286_v35, 5  ;;  %v3081_v53 = vcombine.low %v3982_v31, %v3991_v36  ;;  %v818_v36 = vld [vmem:[%s3947_s13 + $0x24] sm:$0xe]  ;;  %v4595_v12 = vld [vmem:[%s3947_s13 + $0x70] sm:$0xf] }
  0x58   : > { %3469 = vmatprep.mubr.msk.bf16.mxu1 %vm525_vm3, %v3080_v61  ;;  %3549 = vmatprep.mubr.msk.bf16.mxu0 %vm525_vm3, %v3218_v33  ;;  %v3219_v63 = vcombine.low %v1718_v25, %v1721_v48  ;;  %v3212_v52 = vrot.slane %v3204_v47, 9  ;;  %v1734_v58 = vrot.slane %v4289_v60, 5  ;;  %v816_v61 = vld [vmem:[%s3947_s13 + $0xc] sm:$0xe]  ;;  %v854_v26 = vrot.slane %v4001_v44, 5 }
  0x59   : > { %v3082_v9 = vcombine.low %v4030_v21, %v4037_v27  ;;  %v1728_v10 = vsel %vm4141_vm7, %v1726_v16, %v1727_v15  ;;  %v1733_v41 = vrot.slane %v1731_v50, 4  ;;  %v949_v13 = vsel %vm550_vm0, %v4061_v57, 0  ;;  %v3797_v16 = vld [vmem:[%s3947_s13 + $0x18] sm:$0xff]   ;;  %v4567_v60 = vld [vmem:[%s3947_s13 + $0x64] sm:$0xf] }
  0x5a   : > { %v3220_v31 = vcombine.low %v1725_v51, %v1728_v10  ;;  %v3097_v44 = vrot.slane %v816_v61, 9  ;;  %v853_v20 = vrot.slane %v851_v49, 4  ;;  %v3098_v21 = vrot.slane %v817_v2, 9  ;;  %4968 = vst [vmem:[#allocation5_spill] sm:$0xff] %v4567_v60 }
  0x5b   : > { %v1732_v22 = vsel %vm4141_vm7, %v3212_v52, %v1731_v50  ;;  %v1735_v57 = vsel %vm4141_vm7, %v1733_v41, %v1734_v58  ;;  %v858_v24 = vrot.slane %v4037_v27, 5  ;;  %v861_v40 = vrot.slane %v4045_v38, 5 }
  0x5c   : > { %v4334_v33 = vsel %vm4141_vm7, %v3097_v44, %v851_v49  ;;  %v4338_v25 = vsel %vm4141_vm7, %v853_v20, %v854_v26  ;;  %v3099_v43 = vrot.slane %v818_v36, 9  ;;  %v3221_v49 = vcombine.low %v1732_v22, %v1735_v57  ;;  %v3265_v26 = vld [vmem:[%s3947_s13 + $0x18] sm:$0xf]  ;;  %v3799_v57 = vld [vmem:[%s3947_s13 + $0x24] sm:$0xff]  }
  0x5d   : > { %3550 = vmatmul.mubr.msk.bf16.gmra.mrb[8].mxu0 %vm525_vm3, %v3219_v63  ;;  %v3106_v27 = vcombine.low %v4334_v33, %v4338_v25  ;;  %v4347_v46 = vsel %vm4141_vm7, %v3098_v21, %v858_v24  ;;  %v860_v47 = vrot.slane %v858_v24, 4  ;;  %v865_v15 = vrot.slane %v4077_v19, 5 }
  0x5e   : > { %3553 = vmatprep.mubr.msk.bf16.mxu0 %vm525_vm3, %v3220_v31  ;;  %v868_v48 = vrot.slane %v4087_v29, 5  ;;  %v3100_v38 = vrot.slane %v819_v1, 9  ;;  %v3083_v51 = vcombine.low %v4074_v11, %v4077_v19  ;;  %v875_v63 = vrot.slane %v4123_v39, 5  ;;  %v820_v19 = vld [vmem:[%s3947_s13 + $0x3c] sm:$0xe] }
  0x5f   : > { %3470 = vmatmul.mubr.msk.bf16.vlgmr.msra.gmra.mrb[0].mxu1 %vm525_vm3, %v3081_v53  ;;  %v4356_v50 = vsel %vm4141_vm7, %v860_v47, %v861_v40  ;;  %v872_v53 = vrot.slane %v4118_v23, 5  ;;  %v3084_v52 = vcombine.low %v4112_v14, %v4118_v23  ;;  %v4366_v58 = vsel %vm4141_vm7, %v3099_v43, %v865_v15  ;;  %v815_v14 = vld [vmem:[%s3947_s13] sm:$0xe]  ;;  %v4394_v31 = vld [vmem:[%s3947_s13 + $0x1c] sm:$0xf] }
  0x60   : > { %3486 = vmatpush3.bf16.msra.mxu1 %v949_v13  ;;  %3473 = vmatprep.mubr.msk.bf16.mxu1 %vm525_vm3, %v3082_v9  ;;  %v3107_v29 = vcombine.low %v4347_v46, %v4356_v50  ;;  %v867_v11 = vrot.slane %v865_v15, 4  ;;  %v844_v61 = vrot.slane %v3953_v7, 5  ;;  %v3101_v10 = vrot.slane %v820_v19, 9  ;;  %v821_v1 = vld [vmem:[%s3947_s13 + $0x48] sm:$0xe] }
  0x61   : > { %3744 = vmatprep.subr.msk.bf16.mxu1 %vm550_vm0, %v4321_v6  ;;  %v4372_v2 = vsel %vm4141_vm7, %v3100_v38, %v872_v53  ;;  %v874_v39 = vrot.slane %v872_v53, 4  ;;  %v847_v41 = vrot.slane %v3956_v8, 5  ;;  %v3096_v36 = vrot.slane %v815_v14, 9  ;;  %v4420_v38 = vld [vmem:[%s4951_s1 + $0x20] sm:$0xf] }
  0x62   : > { %v4378_v23 = vsel %vm4141_vm7, %v867_v11, %v868_v48  ;;  %v846_v44 = vrot.slane %v844_v61, 4  ;;  %v879_v20 = vrot.slane %v4146_v4, 5  ;;  %v882_v21 = vrot.slane %v4149_v18, 5  ;;  %v4441_v14 = vld [vmem:[%s3947_s13 + $0x28] sm:$0xf] }
  0x63   : > { %v4387_v9 = vsel %vm4141_vm7, %v874_v39, %v875_v63  ;;  %v3085_v22 = vcombine.low %v4135_v56, %v4146_v4  ;;  %v2129_v24 = vshrl.u32 %v3265_v26, 16  ;;  %v2132_v8 = vshll.u32 %v3265_v26, 16  ;;  %v3801_v4 = vld [vmem:[%s3947_s13 + $0x30] sm:$0xff]   ;;  %v4543_v46 = vld [vmem:[%s3947_s13 + $0x44] sm:$0x1] }
  0x64   : > { %v2138_v40 = vshll.u32 %v4394_v31, 16  ;;  %v2142_v43 = vshrl.u32 %v4394_v31, 16  ;;  %v4406_v47 = vsel %vm4141_vm7, %v3101_v10, %v879_v20  ;;  %v2371_v18 = vsel %vm550_vm0, %v4209_v34, 0  ;;  %v3283_v7 = vld [vmem:[%s3947_s13 + $0x60] sm:$0xf] }
  0x65   : > { %3554 = vmatmul.mubr.msk.bf16.gmra.mrb[12].mxu0 %vm525_vm3, %v3221_v49  ;;  %v881_v49 = vrot.slane %v879_v20, 4  ;;  %v3086_v56 = vcombine.low %v4160_v30, %v4176_v62  ;;  %v845_v15 = vsel %vm4141_vm7, %v3096_v36, %v844_v61  ;;  %v848_v48 = vsel %vm4141_vm7, %v846_v44, %v847_v41  ;;  %v4428_v30 = vld [vmem:[%s3947_s13 + $0x20] sm:$0x1]  ;;  %v3268_v61 = vld [vmem:[%s3947_s13 + $0x24] sm:$0xf] }
  0x66   : > { %3559 = vmatprep.mubr.msk.bf16.mxu0 %vm525_vm3, %v3797_v16  ;;  %v3102_v34 = vrot.slane %v821_v1, 9  ;;  %v2131_v16 = vrot.slane %v2129_v24, 4  ;;  %v2134_v53 = vrot.slane %v2132_v8, 5  ;;  %v4434_v11 = vrot.slane %v2138_v40, 5  ;;  %v822_v44 = vld [vmem:[%s3947_s13 + $0x54] sm:$0xe] }
  0x67   : > { %3474 = vmatmul.mubr.msk.bf16.gmra.mrb[4].mxu1 %vm525_vm3, %v3083_v51  ;;  %v4424_v51 = vsel %vm4141_vm7, %v881_v49, %v882_v21  ;;  %v2144_v19 = vrot.slane %v2142_v43, 4  ;;  %v889_v39 = vrot.slane %v4180_v55, 5  ;;  %v3087_v10 = vcombine.low %v4198_v28, %v4214_v37  ;;  %v3271_v55 = vld [vmem:[%s3947_s13 + $0x30] sm:$0xf]  ;;  %v3803_v20 = vld [vmem:[%s3947_s13 + $0x3c] sm:$0xff]   ;;  %v3804_v1 = vld [vmem:[%s3947_s13 + $0x48] sm:$0xff]  }
  0x68   : > { %3477 = vmatprep.mubr.msk.bf16.mxu1 %vm525_vm3, %v3084_v52  ;;  %v886_v52 = vrot.slane %v4176_v62, 5  ;;  %v3105_v41 = vcombine.low %v845_v15, %v848_v48  ;;  %v2148_v36 = vshll.u32 %v4428_v30, 16  ;;  %v2135_v21 = vor.u32 %v2134_v53, %v2131_v16  ;;  %v4460_v8 = vld [vmem:[%s3947_s13 + $0x34] sm:$0xf] }
  0x69   : > { %v2145_v28 = vor.u32 %v2144_v19, %v4434_v11  ;;  %v2162_v40 = vshll.u32 %v4441_v14, 16  ;;  %v2166_v43 = vshrl.u32 %v4441_v14, 16  ;;  %v893_v15 = vrot.slane %v4214_v37, 5 }
  0x6a   : > { %v4445_v62 = vsel %vm4141_vm7, %v3102_v34, %v886_v52  ;;  %v888_v26 = vrot.slane %v886_v52, 4  ;;  %v2186_v48 = vshll.u32 %v4460_v8, 16  ;;  %v2190_v34 = vshrl.u32 %v4460_v8, 16 }
  0x6b   : > { %v896_v16 = vrot.slane %v4223_v54, 5  ;;  %v2136_v53 = vrot.slane %v2135_v21, 4  ;;  %v2150_v52 = vrot.slane %v2148_v36, 5  ;;  %v2146_v37 = vrot.slane %v2145_v28, 4  ;;  %v4483_v36 = vld [vmem:[%s3947_s13 + $0x2c] sm:$0x1] }
  0x6c   : > { %v4457_v24 = vsel %vm4141_vm7, %v888_v26, %v889_v39  ;;  %v4479_v26 = vrot.slane %v2162_v40, 5  ;;  %v4490_v21 = vld [vmem:[%s3947_s13 + $0x38] sm:$0x1]  ;;  %v1151_v28 = vsel %vm550_vm0, %v4321_v6, 0 }
  0x6d   : > { %3560 = vmatmul.mubr.msk.bf16.vlgmr.msra.gmra.mrb[0].mxu0 %vm525_vm3, %v3799_v57  ;;  %v2156_v57 = vshll.u32 %v3268_v61, 16  ;;  %v3805_v40 = vld [vmem:[%s3947_s13 + $0x54] sm:$0xff]  }
  0x6e   : > { %3576 = vmatpush3.bf16.msra.mxu0 %v2371_v18  ;;  %3563 = vmatprep.mubr.msk.bf16.mxu0 %vm525_vm3, %v3801_v4  ;;  %v2177_v18 = vshrl.u32 %v3271_v55, 16  ;;  %v3103_v4 = vrot.slane %v822_v44, 9 }
  0x6f   : > { %3478 = vmatmul.mubr.msk.bf16.gmra.mrb[8].mxu1 %vm525_vm3, %v3085_v22  ;;  %3750 = vmatprep.subr.msk.bf16.mxu0 %vm550_vm0, %v4420_v38  ;;  %v2153_v22 = vshrl.u32 %v3268_v61, 16  ;;  %v895_v61 = vrot.slane %v893_v15, 4  ;;  %v2158_v54 = vrot.slane %v2156_v57, 5  ;;  %v2192_v57 = vrot.slane %v2190_v34, 4  ;;  %v3277_v34 = vld [vmem:[%s3947_s13 + $0x48] sm:$0xf] }
  0x70   : > { %3481 = vmatprep.mubr.msk.bf16.mxu1 %vm525_vm3, %v3086_v56  ;;  %v2180_v56 = vshll.u32 %v3271_v55, 16  ;;  %v4475_v19 = vsel %vm4141_vm7, %v3103_v4, %v893_v15  ;;  %v2168_v55 = vrot.slane %v2166_v43, 4  ;;  %v2179_v44 = vrot.slane %v2177_v18, 4  ;;  %v4501_v43 = vld [vmem:[%s3947_s13 + $0x40] sm:$0xf] }
  0x71   : > { %v2155_v39 = vrot.slane %v2153_v22, 4  ;;  %v4492_v22 = vrot.slane %v2186_v48, 5  ;;  %v3806_v18 = vld [vmem:[%s3947_s13 + $0x60] sm:$0xff]   ;;  %v2151_v4 = vsel %vm3986_vm4, %v2146_v37, %v2150_v52  ;;  %v2172_v48 = vshll.u32 %v4483_v36, 16 }
  0x72   : > { %v2225_v52 = vshrl.u32 %v3277_v34, 16  ;;  %v2228_v37 = vshll.u32 %v3277_v34, 16 }
  0x73   : > { %v2159_v15 = vor.u32 %v2158_v54, %v2155_v39  ;;  %v2193_v63 = vor.u32 %v2192_v57, %v4492_v22  ;;  %v3280_v57 = vld [vmem:[%s3947_s13 + $0x54] sm:$0xf] }
  0x74   : > { %v2227_v50 = vrot.slane %v2225_v52, 4  ;;  %v2252_v34 = vshll.u32 %v3280_v57, 16 }
  0x75   : > { %3564 = vmatmul.mubr.msk.bf16.gmra.mrb[4].mxu0 %vm525_vm3, %v3803_v20  ;;  %v2182_v20 = vrot.slane %v2180_v56, 5  ;;  %v2141_v56 = vsel %vm3986_vm4, %v2136_v53, %v4434_v11  ;;  %v2210_v11 = vshll.u32 %v4501_v43, 16  ;;  %v2214_v53 = vshrl.u32 %v4501_v43, 16 }
  0x76   : > { %3567 = vmatprep.mubr.msk.bf16.mxu0 %vm525_vm3, %v3804_v1  ;;  %v2196_v1 = vshll.u32 %v4490_v21, 16  ;;  %v3290_v54 = vcombine.low %v2141_v56, %v2151_v4  ;;  %v2194_v56 = vrot.slane %v2193_v63, 4  ;;  %v4548_v63 = vld [vmem:[%s3947_s13 + $0x50] sm:$0x1] }
  0x77   : > { %3482 = vmatmul.mubr.msk.bf16.gmra.mrb[12].mxu1 %vm525_vm3, %v3087_v10  ;;  %v4487_v10 = vsel %vm4141_vm7, %v895_v61, %v896_v16  ;;  %v4512_v16 = vld [vmem:[%s3947_s13 + $0x4c] sm:$0xf]  ;;  %v2169_v61 = vor.u32 %v2168_v55, %v4479_v26  ;;  %v2183_v6 = vor.u32 %v2182_v20, %v2179_v44  ;;  %v2160_v55 = vrot.slane %v2159_v15, 4 }
  0x78   : > { %3487 = vmatprep.mubr.msk.bf16.mxu1 %vm525_vm3, %v3105_v41  ;;  %v3274_v41 = vld [vmem:[%s3947_s13 + $0x3c] sm:$0xf]  ;;  %v2234_v39 = vshll.u32 %v4512_v16, 16  ;;  %v2174_v44 = vrot.slane %v2172_v48, 5  ;;  %v2238_v20 = vshrl.u32 %v4512_v16, 16  ;;  %v2198_v33 = vrot.slane %v2196_v1, 5 }
  0x79   : > { %v2201_v49 = vshrl.u32 %v3274_v41, 16  ;;  %v2204_v13 = vshll.u32 %v3274_v41, 16  ;;  %v2170_v41 = vrot.slane %v2169_v61, 4  ;;  %v4536_v15 = vrot.slane %v2210_v11, 5 }
  0x7a   : > { %v2216_v48 = vrot.slane %v2214_v53, 4  ;;  %v2249_v1 = vshrl.u32 %v3280_v57, 16  ;;  %v1420_v11 = vshll.u32 %v4262_v59, 16  ;;  %v2165_v53 = vsel %vm3986_vm4, %v2160_v55, %v4479_v26 }
  0x7b   : > { %v2203_v25 = vrot.slane %v2201_v49, 4  ;;  %v2206_v4 = vrot.slane %v2204_v13, 5  ;;  %v4545_v49 = vrot.slane %v2234_v39, 5  ;;  %v2240_v13 = vrot.slane %v2238_v20, 4 }
  0x7c   : > { %v2175_v52 = vsel %vm3986_vm4, %v2170_v41, %v2174_v44  ;;  %v2217_v57 = vor.u32 %v2216_v48, %v4536_v15  ;;  %v2199_v26 = vsel %vm3986_vm4, %v2194_v56, %v2198_v33  ;;  %v2251_v44 = vrot.slane %v2249_v1, 4  ;;  %v4586_v56 = vld [vmem:[%s3947_s13 + $0x5c] sm:$0x1] }
  0x7d   : > { %3568 = vmatmul.mubr.msk.bf16.gmra.mrb[8].mxu0 %vm525_vm3, %v3805_v40  ;;  %v2184_v40 = vrot.slane %v2183_v6, 4  ;;  %v2207_v20 = vor.u32 %v2206_v4, %v2203_v25  ;;  %v2241_v41 = vor.u32 %v2240_v13, %v4545_v49  ;;  %v4970_v33 = vcombine.low %v4372_v2, %v4387_v9 }
  0x7e   : > { %3571 = vmatprep.mubr.msk.bf16.mxu0 %vm525_vm3, %v3806_v18  ;;  %v3807_v18 = vld [vmem:[%s3947_s13 + $0x6c] sm:$0xff]   ;;  %v2273_v4 = vshrl.u32 %v3283_v7, 16  ;;  %v1424_v48 = vshrl.u32 %v4262_v59, 16  ;;  %v3291_v13 = vcombine.low %v2165_v53, %v2175_v52 }
  0x7f   : > { %3488 = vmatmul.mubr.msk.bf16.vlgmr.msra.gmra.mrb[0].mxu1 %vm525_vm3, %v3106_v27  ;;  %v4533_v27 = vld [vmem:[%s3947_s13 + $0x58] sm:$0xf]  ;;  %v2189_v39 = vsel %vm3986_vm4, %v2184_v40, %v4492_v22  ;;  %v4969_v22 = vcombine.low %v4366_v58, %v4378_v23  ;;  %v2254_v40 = vrot.slane %v2252_v34, 5  ;;  %v2276_v58 = vshll.u32 %v3283_v7, 16 }
  0x80   : > { %3504 = vmatpush3.bf16.msra.mxu1 %v1151_v28  ;;  %3491 = vmatprep.mubr.msk.bf16.mxu1 %vm525_vm3, %v3107_v29  ;;  %v3816_v28 = vld [vmem:[%s4951_s1 + $0x10] sm:$0xf]  ;;  %v2230_v29 = vrot.slane %v2228_v37, 5  ;;  %v2258_v61 = vshll.u32 %v4533_v27, 16  ;;  %v2262_v6 = vshrl.u32 %v4533_v27, 16  ;;  %v2625_v37 = vsel %vm550_vm0, %v4420_v38, 0 }
  0x81   : > { %3746 = vmatprep.subr.msk.bf16.mxu1 %vm550_vm0, %v3816_v28  ;;  %v2220_v28 = vshll.u32 %v4543_v46, 16  ;;  %v2244_v38 = vshll.u32 %v4548_v63, 16  ;;  %v2282_v23 = vshll.u32 %v4567_v60, 16  ;;  %v3292_v34 = vcombine.low %v2189_v39, %v2199_v26 }
  0x82   : > { %v2231_v55 = vor.u32 %v2230_v29, %v2227_v50  ;;  %v4579_v25 = vrot.slane %v2258_v61, 5  ;;  %v2208_v50 = vrot.slane %v2207_v20, 4  ;;  %v2218_v29 = vrot.slane %v2217_v57, 4 }
  0x83   : > { %v2222_v1 = vrot.slane %v2220_v28, 5  ;;  %v2246_v9 = vrot.slane %v2244_v38, 5  ;;  %v2242_v61 = vrot.slane %v2241_v41, 4  ;;  %v2268_v7 = vshll.u32 %v4586_v56, 16  ;;  %v4607_v28 = vld [vmem:[%s3947_s13 + $0x68] sm:$0x1] }
  0x84   : > { %v2232_v2 = vrot.slane %v2231_v55, 4  ;;  %v2275_v35 = vrot.slane %v2273_v4, 4  ;;  %v4597_v59 = vrot.slane %v2282_v23, 5  ;;  %v4599_v57 = vrot.slane %v1420_v11, 5 }
  0x85   : > { %3572 = vmatmul.mubr.msk.bf16.gmra.mrb[12].mxu0 %vm525_vm3, %v3807_v18  ;;  %v2264_v18 = vrot.slane %v2262_v6, 4  ;;  %v2255_v6 = vor.u32 %v2254_v40, %v2251_v44  ;;  %v1426_v53 = vrot.slane %v1424_v48, 4  ;;  %v2213_v52 = vsel %vm3986_vm4, %v2208_v50, %v4536_v15 }
  0x86   : > { %3577 = vmatprep.mubr.msk.bf16.mxu0 %vm525_vm3, %v3290_v54  ;;  %v2286_v54 = vshrl.u32 %v4567_v60, 16  ;;  %v2278_v60 = vrot.slane %v2276_v58, 5  ;;  %v2223_v39 = vsel %vm3986_vm4, %v2218_v29, %v2222_v1  ;;  %v2306_v38 = vshll.u32 %v4595_v12, 16  ;;  %v3808_v1 = vld [vmem:[%s3947_s13 + $0xc] sm:$0xff]  }
  0x87   : > { %3492 = vmatmul.mubr.msk.bf16.gmra.mrb[4].mxu1 %vm525_vm3, %v4969_v22  ;;  %v2265_v22 = vor.u32 %v2264_v18, %v4579_v25  ;;  %v2310_v44 = vshrl.u32 %v4595_v12, 16  ;;  %v4971_v11 = vcombine.low %v4406_v47, %v4424_v51  ;;  %v2237_v15 = vsel %vm3986_vm4, %v2232_v2, %v4545_v49 }
  0x88   : > { %3495 = vmatprep.mubr.msk.bf16.mxu1 %vm525_vm3, %v4970_v33  ;;  %v3286_v33 = vld [vmem:[%s3947_s13 + $0x6c] sm:$0xf]  ;;  %v2288_v20 = vrot.slane %v2286_v54, 4  ;;  %v2247_v41 = vsel %vm3986_vm4, %v2242_v61, %v2246_v9  ;;  %v2256_v40 = vrot.slane %v2255_v6, 4  ;;  %v2270_v18 = vrot.slane %v2268_v7, 5 }
  0x89   : > { %v2297_v26 = vshrl.u32 %v3286_v33, 16  ;;  %v2300_v55 = vshll.u32 %v3286_v33, 16  ;;  %v4972_v4 = vcombine.low %v4445_v62, %v4457_v24  ;;  %v2266_v47 = vrot.slane %v2265_v22, 4  ;;  %v3171_v22 = vld [vmem:[%s3947_s13 + $0x48] sm:$0xf] }
  0x8a   : > { %v2279_v51 = vor.u32 %v2278_v60, %v2275_v35  ;;  %v2292_v49 = vshll.u32 %v4607_v28, 16  ;;  %v1427_v58 = vor.u32 %v1426_v53, %v4599_v57  ;;  %v1430_v23 = vshll.u32 %v4265_v0, 16  ;;  %v4636_v60 = vld [vmem:[%s3947_s13 + $0x74] sm:$0x1] }
  0x8b   : > { %v3293_v54 = vcombine.low %v2213_v52, %v2223_v39  ;;  %v2299_v48 = vrot.slane %v2297_v26, 4  ;;  %v2302_v62 = vrot.slane %v2300_v55, 5  ;;  %v4630_v24 = vrot.slane %v2306_v38, 5 }
  0x8c   : > { %v2312_v50 = vrot.slane %v2310_v44, 4  ;;  %v3294_v29 = vcombine.low %v2237_v15, %v2247_v41  ;;  %v2261_v35 = vsel %vm3986_vm4, %v2256_v40, %v4579_v25  ;;  %v2280_v0 = vrot.slane %v2279_v51, 4  ;;  %v3810_v51 = vld [vmem:[%s3947_s13 + $0x24] sm:$0xff]  }
  0x8d   : > { %3578 = vmatmul.mubr.msk.bf16.vlgmr.msra.gmra.mrb[0].mxu0 %vm525_vm3, %v3291_v13  ;;  %v2271_v13 = vsel %vm3986_vm4, %v2266_v47, %v2270_v18  ;;  %v2294_v2 = vrot.slane %v2292_v49, 5  ;;  %v1428_v9 = vrot.slane %v1427_v58, 4  ;;  %v1432_v61 = vrot.slane %v1430_v23, 5 }
  0x8e   : > { %3594 = vmatpush3.bf16.msra.mxu0 %v2625_v37  ;;  %3581 = vmatprep.mubr.msk.bf16.mxu0 %vm525_vm3, %v3292_v34  ;;  %v2289_v37 = vor.u32 %v2288_v20, %v4597_v59  ;;  %v2520_v6 = vrot.slane %v4394_v31, 5  ;;  %v2303_v7 = vor.u32 %v2302_v62, %v2299_v48  ;;  %v2313_v33 = vor.u32 %v2312_v50, %v4630_v24  ;;  %v3306_v20 = vld [vmem:[%s3947_s13 + $0x18] sm:$0xe]  ;;  %v3308_v62 = vld [vmem:[%s3947_s13 + $0x30] sm:$0xe] }
  0x8f   : > { %3496 = vmatmul.mubr.msk.bf16.gmra.mrb[8].mxu1 %vm525_vm3, %v4971_v11  ;;  %v2316_v25 = vshll.u32 %v4636_v60, 16  ;;  %v4973_v53 = vcombine.low %v4475_v19, %v4487_v10  ;;  %v3295_v52 = vcombine.low %v2261_v35, %v2271_v13  ;;  %v2285_v31 = vsel %vm3986_vm4, %v2280_v0, %v4597_v59  ;;  %v3809_v59 = vld [vmem:[%s3947_s13 + $0x18] sm:$0xff]  }
  0x90   : > { %3499 = vmatprep.mubr.msk.bf16.mxu1 %vm525_vm3, %v4972_v4  ;;  %v2290_v34 = vrot.slane %v2289_v37, 4  ;;  %v1411_v26 = vshrl.u32 %v3171_v22, 16  ;;  %v1414_v55 = vshll.u32 %v3171_v22, 16  ;;  %v3314_v19 = vrot.slane %v3306_v20, 9  ;;  %v3168_v4 = vld [vmem:[%s3947_s13 + $0x3c] sm:$0xf] }
  0x91   : > { %v2522_v10 = vrot.slane %v2520_v6, 4  ;;  %v2523_v38 = vrot.slane %v4428_v30, 5  ;;  %v1433_v44 = vsel %vm3986_vm4, %v1428_v9, %v1432_v61  ;;  %v2304_v11 = vrot.slane %v2303_v7, 4  ;;  %v3307_v30 = vld [vmem:[%s3947_s13 + $0x24] sm:$0xe]  ;;  %v3811_v22 = vld [vmem:[%s3947_s13 + $0x30] sm:$0xff]  }
  0x92   : > { %v2295_v39 = vsel %vm3986_vm4, %v2290_v34, %v2294_v2  ;;  %v2314_v15 = vrot.slane %v2313_v33, 4  ;;  %v2318_v41 = vrot.slane %v2316_v25, 5  ;;  %v1413_v40 = vrot.slane %v1411_v26, 4  ;;  %v3812_v20 = vld [vmem:[%s3947_s13 + $0x3c] sm:$0xff]   ;;  %v3174_v26 = vld [vmem:[%s3947_s13 + $0x54] sm:$0xf] }
  0x93   : > { %v3296_v18 = vcombine.low %v2285_v31, %v2295_v39  ;;  %v1416_v47 = vrot.slane %v1414_v55, 5  ;;  %v2521_v37 = vsel %vm4141_vm7, %v3314_v19, %v2520_v6  ;;  %v2524_v49 = vsel %vm4141_vm7, %v2522_v10, %v2523_v38  ;;  %v3310_v38 = vld [vmem:[%s3947_s13 + $0x48] sm:$0xe] }
  0x94   : > { %v2527_v58 = vrot.slane %v4441_v14, 5  ;;  %v2319_v48 = vsel %vm3986_vm4, %v2314_v15, %v2318_v41  ;;  %v2534_v50 = vrot.slane %v4460_v8, 5  ;;  %v1390_v35 = vshll.u32 %v3168_v4, 16 }
  0x95   : > { %3582 = vmatmul.mubr.msk.bf16.gmra.mrb[4].mxu0 %vm525_vm3, %v3293_v54  ;;  %v1417_v23 = vor.u32 %v1416_v47, %v1413_v40  ;;  %v2309_v54 = vsel %vm3986_vm4, %v2304_v11, %v4630_v24  ;;  %v1396_v14 = vshll.u32 %v4244_v42, 16  ;;  %v3315_v24 = vrot.slane %v3307_v30, 9 }
  0x96   : > { %3585 = vmatprep.mubr.msk.bf16.mxu0 %vm525_vm3, %v3294_v29  ;;  %v1387_v29 = vshrl.u32 %v3168_v4, 16  ;;  %v2530_v8 = vrot.slane %v4483_v36, 5  ;;  %v3323_v0 = vcombine.low %v2521_v37, %v2524_v49  ;;  %v2529_v34 = vrot.slane %v2527_v58, 4  ;;  %v3813_v37 = vld [vmem:[%s3947_s13 + $0x48] sm:$0xff]  }
  0x97   : > { %3500 = vmatmul.mubr.msk.bf16.gmra.mrb[12].mxu1 %vm525_vm3, %v4973_v53  ;;  %v1418_v13 = vrot.slane %v1417_v23, 4  ;;  %v3316_v2 = vrot.slane %v3308_v62, 9  ;;  %v3297_v61 = vcombine.low %v2309_v54, %v2319_v48  ;;  %v2536_v6 = vrot.slane %v2534_v50, 4  ;;  %v3814_v23 = vld [vmem:[%s3947_s13 + $0x54] sm:$0xff]  }
  0x98   : > { %3505 = vmatprep.mubr.msk.bf16.mxu1 %vm525_vm3, %v3808_v1  ;;  %v1400_v1 = vshrl.u32 %v4244_v42, 16  ;;  %v2537_v42 = vrot.slane %v4490_v21, 5  ;;  %v1389_v7 = vrot.slane %v1387_v29, 4  ;;  %v1392_v33 = vrot.slane %v1390_v35, 5 }
  0x99   : > { %v1423_v9 = vsel %vm3986_vm4, %v1418_v13, %v4599_v57  ;;  %v4692_v25 = vrot.slane %v1396_v14, 5  ;;  %v2528_v53 = vsel %vm4141_vm7, %v3315_v24, %v2527_v58  ;;  %v2531_v57 = vsel %vm4141_vm7, %v2529_v34, %v2530_v8  ;;  %v3311_v24 = vld [vmem:[%s3947_s13 + $0x54] sm:$0xe]  ;;  %v4974_v8 = vld [vmem:[#allocation5_spill] sm:$0xff] }
  0x9a   : > { %v1402_v36 = vrot.slane %v1400_v1, 4  ;;  %v2535_v21 = vsel %vm4141_vm7, %v3316_v2, %v2534_v50  ;;  %v2541_v31 = vrot.slane %v4501_v43, 5  ;;  %v1406_v39 = vshll.u32 %v4247_v45, 16  ;;  %v3177_v50 = vld [vmem:[%s3947_s13 + $0x60] sm:$0xf] }
  0x9b   : > { %v2538_v55 = vsel %vm4141_vm7, %v2536_v6, %v2537_v42  ;;  %v1393_v19 = vor.u32 %v1392_v33, %v1389_v7  ;;  %v3324_v43 = vcombine.low %v2528_v53, %v2531_v57  ;;  %v2544_v11 = vrot.slane %v4543_v46, 5  ;;  %v4976_v33 = vld [vmem:[#allocation2_spill] sm:$0xff] }
  0x9c   : > { %v1403_v10 = vor.u32 %v1402_v36, %v4692_v25  ;;  %v1435_v15 = vshrl.u32 %v3174_v26, 16  ;;  %v1438_v41 = vshll.u32 %v3174_v26, 16  ;;  %v1444_v40 = vshll.u32 %v4273_v17, 16 }
  0x9d   : > { %3586 = vmatmul.mubr.msk.bf16.gmra.mrb[8].mxu0 %vm525_vm3, %v3295_v52  ;;  %v3309_v52 = vld [vmem:[%s3947_s13 + $0x3c] sm:$0xe]  ;;  %v2543_v4 = vrot.slane %v2541_v31, 4  ;;  %v1408_v47 = vrot.slane %v1406_v39, 5  ;;  %v2551_v58 = vrot.slane %v4548_v63, 5  ;;  %v2555_v63 = vrot.slane %v4533_v27, 5 }
  0x9e   : > { %3589 = vmatprep.mubr.msk.bf16.mxu0 %vm525_vm3, %v3296_v18  ;;  %v3317_v45 = vrot.slane %v3309_v52, 9  ;;  %v3325_v18 = vcombine.low %v2535_v21, %v2538_v55  ;;  %v1404_v49 = vrot.slane %v1403_v10, 4  ;;  %v1437_v46 = vrot.slane %v1435_v15, 4  ;;  %v3312_v27 = vld [vmem:[%s3947_s13 + $0x60] sm:$0xe] }
  0x9f   : > { %3506 = vmatmul.mubr.msk.bf16.vlgmr.msra.gmra.mrb[0].mxu1 %vm525_vm3, %v3809_v59  ;;  %v1448_v59 = vshrl.u32 %v4273_v17, 16  ;;  %v1440_v54 = vrot.slane %v1438_v41, 5  ;;  %v1446_v48 = vrot.slane %v1444_v40, 5  ;;  %v2545_v29 = vsel %vm4141_vm7, %v2543_v4, %v2544_v11  ;;  %v3815_v52 = vld [vmem:[%s3947_s13 + $0x60] sm:$0xff]  }
  0xa0   : > { %3612 = vmatpush3.bf16.msra.mxu1 %v3929_v3  ;;  %3509 = vmatprep.mubr.msk.bf16.mxu1 %vm525_vm3, %v3810_v51  ;;  %v4689_v3 = vcombine.low %v1423_v9, %v1433_v44  ;;  %v2548_v44 = vrot.slane %v4512_v16, 5  ;;  %v3318_v51 = vrot.slane %v3310_v38, 9  ;;  %v1394_v16 = vrot.slane %v1393_v19, 4  ;;  %v4975_v9 = vld [vmem:[#allocation3_spill] sm:$0xff] }
  0xa1   : > { %v1450_v62 = vrot.slane %v1448_v59, 4  ;;  %v2542_v17 = vsel %vm4141_vm7, %v3317_v45, %v2541_v31  ;;  %v1409_v1 = vsel %vm3986_vm4, %v1404_v49, %v1408_v47  ;;  %v1459_v34 = vshrl.u32 %v3177_v50, 16  ;;  %v3313_v47 = vld [vmem:[%s3947_s13 + $0x6c] sm:$0xe] }
  0xa2   : > { %v2550_v30 = vrot.slane %v2548_v44, 4  ;;  %v2549_v35 = vsel %vm4141_vm7, %v3318_v51, %v2548_v44  ;;  %v1399_v14 = vsel %vm3986_vm4, %v1394_v16, %v4692_v25  ;;  %v1462_v2 = vshll.u32 %v3177_v50, 16 }
  0xa3   : > { %v1472_v6 = vshrl.u32 %v4975_v9, 16  ;;  %v3326_v42 = vcombine.low %v2542_v17, %v2545_v29  ;;  %v1451_v7 = vor.u32 %v1450_v62, %v1446_v48  ;;  %v1454_v25 = vshll.u32 %v4976_v33, 16 }
  0xa4   : > { %v2552_v13 = vsel %vm4141_vm7, %v2550_v30, %v2551_v58  ;;  %v2557_v53 = vrot.slane %v2555_v63, 4  ;;  %v2558_v57 = vrot.slane %v4586_v56, 5  ;;  %v3185_v21 = vcombine.low %v1399_v14, %v1409_v1 }
  0xa5   : > { %3590 = vmatmul.mubr.msk.bf16.gmra.mrb[12].mxu0 %vm525_vm3, %v3297_v61  ;;  %v1468_v61 = vshll.u32 %v4975_v9, 16  ;;  %v3327_v36 = vcombine.low %v2549_v35, %v2552_v13  ;;  %v3320_v31 = vrot.slane %v3312_v27, 9  ;;  %v2565_v26 = vrot.slane %v4607_v28, 5 }
  0xa6   : > { %3595 = vmatprep.mubr.msk.bf16.mxu0 %vm525_vm3, %v3323_v0  ;;  %v2562_v0 = vrot.slane %v4974_v8, 5  ;;  %v1461_v55 = vrot.slane %v1459_v34, 4  ;;  %v1464_v19 = vrot.slane %v1462_v2, 5  ;;  %v1474_v38 = vrot.slane %v1472_v6, 4  ;;  %v4794_v2 = vld [vmem:[%s4953_s3] ss:$0 sm:$0xff] }
  0xa7   : > { %3510 = vmatmul.mubr.msk.bf16.gmra.mrb[4].mxu1 %vm525_vm3, %v3811_v22  ;;  %v1441_v22 = vor.u32 %v1440_v54, %v1437_v46  ;;  %v1470_v10 = vrot.slane %v1468_v61, 5  ;;  %v1456_v45 = vrot.slane %v1454_v25, 5  ;;  %v2559_v28 = vsel %vm4141_vm7, %v2557_v53, %v2558_v57 }
  0xa8   : > { %3513 = vmatprep.mubr.msk.bf16.mxu1 %vm525_vm3, %v3812_v20  ;;  %v3319_v20 = vrot.slane %v3311_v24, 9  ;;  %v2564_v39 = vrot.slane %v2562_v0, 4  ;;  %v2563_v11 = vsel %vm4141_vm7, %v3320_v31, %v2562_v0  ;;  %v2569_v15 = vrot.slane %v4595_v12, 5  ;;  %v4789_v0 = vld [vmem:[%s4952_s2] ss:$0 sm:$0xff] }
  0xa9   : > { %v1442_v44 = vrot.slane %v1441_v22, 4  ;;  %v1465_v40 = vor.u32 %v1464_v19, %v1461_v55  ;;  %v1475_v59 = vor.u32 %v1474_v38, %v1470_v10  ;;  %v3321_v30 = vrot.slane %v3313_v47, 9 }
  0xaa   : > { %v2556_v56 = vsel %vm4141_vm7, %v3319_v20, %v2555_v63  ;;  %v2566_v41 = vsel %vm4141_vm7, %v2564_v39, %v2565_v26  ;;  %v2571_v12 = vrot.slane %v2569_v15, 4  ;;  %v2572_v58 = vrot.slane %v4636_v60, 5 }
  0xab   : > { %v1447_v51 = vsel %vm3986_vm4, %v1442_v44, %v1446_v48  ;;  %v3328_v16 = vcombine.low %v2556_v56, %v2559_v28  ;;  %v3329_v49 = vcombine.low %v2563_v11, %v2566_v41  ;;  %v1466_v46 = vrot.slane %v1465_v40, 4 }
  0xac   : > { %v1476_v54 = vrot.slane %v1475_v59, 4  ;;  %v2570_v48 = vsel %vm4141_vm7, %v3321_v30, %v2569_v15  ;;  %v2573_v50 = vsel %vm4141_vm7, %v2571_v12, %v2572_v58 }
  0xad   : > { %3596 = vmatmul.mubr.msk.bf16.vlgmr.msra.gmra.mrb[0].mxu0 %vm525_vm3, %v3324_v43  ;;  %v1452_v43 = vrot.slane %v1451_v7, 4  ;;  %v1471_v60 = vsel %vm3986_vm4, %v1466_v46, %v1470_v10  ;;  %v3330_v29 = vcombine.low %v2570_v48, %v2573_v50 }
  0xae   : > { %3599 = vmatprep.mubr.msk.bf16.mxu0 %vm525_vm3, %v3325_v18  ;;  %v4977_v18 = vld [vmem:[#allocation4_spill] sm:$0xff] }
  0xaf   : > { %3514 = vmatmul.mubr.msk.bf16.gmra.mrb[8].mxu1 %vm525_vm3, %v3813_v37  ;;  %v1478_v4 = vshll.u32 %v4977_v18, 16  ;;  %v1457_v37 = vsel %vm3986_vm4, %v1452_v43, %v1456_v45 }
  0xb0   : > { %3517 = vmatprep.mubr.msk.bf16.mxu1 %vm525_vm3, %v3814_v23  ;;  %v3187_v23 = vcombine.low %v1447_v51, %v1457_v37 }
  0xb1   : > { %v1480_v62 = vrot.slane %v1478_v4, 5 }
  0xb3   : > { %v1481_v17 = vsel %vm3986_vm4, %v1476_v54, %v1480_v62 }
  0xb4   : > { %v3188_v35 = vcombine.low %v1471_v60, %v1481_v17 }
  0xb5   : > { %3600 = vmatmul.mubr.msk.bf16.gmra.mrb[4].mxu0 %vm525_vm3, %v3326_v42 }
  0xb6   : > { %3603 = vmatprep.mubr.msk.bf16.mxu0 %vm525_vm3, %v3327_v36 }
  0xb7   : > { %3518 = vmatmul.mubr.msk.bf16.gmra.mrb[12].mxu1 %vm525_vm3, %v3815_v52 }
  0xb8   : > { %3531 = vmatprep.mubr.msk.bf16.mxu1 %vm525_vm3, %v3185_v21 }
  0xbd   : > { %3604 = vmatmul.mubr.msk.bf16.gmra.mrb[8].mxu0 %vm525_vm3, %v3328_v16 }
  0xbe   : > { %3607 = vmatprep.mubr.msk.bf16.mxu0 %vm525_vm3, %v3329_v49 }
  0xbf   : > { %3532 = vmatmul.mubr.msk.bf16.vlgmr.msra.gmra.mrb[8].mxu1 %vm525_vm3, %v4689_v3 }
  0xc0   : > { %3535 = vmatprep.mubr.msk.bf16.mxu1 %vm525_vm3, %v3187_v23 }
  0xc5   : > { %3608 = vmatmul.mubr.msk.bf16.gmra.mrb[12].mxu0 %vm525_vm3, %v3330_v29 }
  0xc7   : > { %3536 = vmatmul.mubr.msk.bf16.gmra.mrb[12].mxu1 %vm525_vm3, %v3188_v35 }
 0x172   : > { %v3507_v3 = vpop.f32.mrb[0].mxu1 }
 0x173   : > { %v1187_v5 = vpop.f32.mrb[1].mxu1 }
 0x174   : > { %v3508_v63 = vpop.f32.mrb[2].mxu1 }
 0x175   : > { %v1190_v14 = vpop.f32.mrb[3].mxu1 }
 0x17a   : > { %v3511_v1 = vpop.f32.mrb[4].mxu1 }
 0x17b   : > { %v1203_v13 = vpop.f32.mrb[5].mxu1 }
 0x17c   : > { %v3512_v24 = vpop.f32.mrb[6].mxu1 }
 0x17d   : > { %v1206_v32 = vpop.f32.mrb[7].mxu1 }
 0x180   : > { %v3597_v8 = vpop.f32.mrb[0].mxu0 }
 0x181   : > { %v3613_v27 = vadd.f32 %v3597_v8, %v3507_v3  ;;  %v2661_v34 = vpop.f32.mrb[1].mxu0 }
 0x182   : > { %v3614_v9 = vadd.f32 %v2661_v34, %v1187_v5  ;;  %v3598_v61 = vpop.f32.mrb[2].mxu0 }
 0x183   : > { %v2749_v6 = vmul.f32 %v3613_v27, %v4789_v0  ;;  %v3615_v42 = vadd.f32 %v3598_v61, %v3508_v63  ;;  %v2664_v22 = vpop.f32.mrb[3].mxu0 }
 0x184   : > { %v2747_v7 = vmul.f32 %v3614_v9, %v4789_v0  ;;  %v3616_v33 = vadd.f32 %v2664_v22, %v1190_v14 }
 0x185   : > { %v2772_v25 = vadd.f32 %v4794_v2, %v2749_v6  ;;  %v2750_v36 = vmul.f32 %v3615_v42, %v4789_v0 }
 0x186   : > { %v2770_v20 = vadd.f32 %v4794_v2, %v2747_v7  ;;  %v2748_v53 = vmul.f32 %v3616_v33, %v4789_v0 }
 0x187   : > { %v2788_v57 = vmax.f32 %v2772_v25, 0.0  ;;  %v2773_v52 = vadd.f32 %v4794_v2, %v2750_v36 }
 0x188   : > { %v2786_v21 = vmax.f32 %v2770_v20, 0.0  ;;  %v2771_v31 = vadd.f32 %v4794_v2, %v2748_v53  ;;  %v3601_v39 = vpop.f32.mrb[4].mxu0 }
 0x189   : > { %2804 = vst.msk [vmem:[%s4804_s27 + $0x10] sm:$0xff] %vm525_vm3, %v2788_v57  ;;  %v2789_v26 = vmax.f32 %v2773_v52, 0.0  ;;  %v3617_v55 = vadd.f32 %v3601_v39, %v3511_v1  ;;  %v2677_v19 = vpop.f32.mrb[5].mxu0 }
 0x18a   : > { %2802 = vst.msk [vmem:[%s4804_s27] sm:$0xff] %vm525_vm3, %v2786_v21  ;;  %v2818_v10 = vmax.f32 %v2786_v21, %v2788_v57  ;;  %v2787_v38 = vmax.f32 %v2771_v31, 0.0  ;;  %v3618_v44 = vadd.f32 %v2677_v19, %v1203_v13  ;;  %v3602_v43 = vpop.f32.mrb[6].mxu0 }
 0x18b   : > { %2805 = vst.msk [vmem:[%s4804_s27 + $0x18] sm:$0xff] %vm525_vm3, %v2789_v26  ;;  %v2753_v45 = vmul.f32 %v3617_v55, %v4789_v0  ;;  %v3619_v56 = vadd.f32 %v3602_v43, %v3512_v24  ;;  %v2680_v28 = vpop.f32.mrb[7].mxu0 }
 0x18c   : > { %v2821_v11 = vrot.slane %v2818_v10, 1  ;;  %2803 = vst.msk [vmem:[%s4804_s27 + $0x8] sm:$0xff] %vm525_vm3, %v2787_v38  ;;  %v2819_v15 = vmax.f32 %v2787_v38, %v2789_v26  ;;  %v2751_v41 = vmul.f32 %v3618_v44, %v4789_v0  ;;  %v3620_v40 = vadd.f32 %v2680_v28, %v1206_v32 }
 0x18d   : > { %v2776_v59 = vadd.f32 %v4794_v2, %v2753_v45  ;;  %v2754_v18 = vmul.f32 %v3619_v56, %v4789_v0 }
 0x18e   : > { %v2823_v4 = vmax.f32 %v2818_v10, %v2821_v11  ;;  %v2833_v47 = vrot.slane %v2819_v15, 1  ;;  %v2774_v51 = vadd.f32 %v4794_v2, %v2751_v41  ;;  %v2752_v37 = vmul.f32 %v3620_v40, %v4789_v0 }
 0x18f   : > { %v2792_v16 = vmax.f32 %v2776_v59, 0.0  ;;  %v2777_v49 = vadd.f32 %v4794_v2, %v2754_v18 }
 0x190   : > { %2825 = vst.msk [vmem:[%s4823_s6] sm:$0x1] %vm2824_vm8, %v2823_v4  ;;  %v2835_v30 = vmax.f32 %v2819_v15, %v2833_v47  ;;  %v2790_v12 = vmax.f32 %v2774_v51, 0.0  ;;  %v2775_v58 = vadd.f32 %v4794_v2, %v2752_v37  ;;  %v3605_v23 = vpop.f32.mrb[8].mxu0 }
 0x191   : > { %2827 = vst.msk [vmem:[%s4823_s6 - $0x1] sm:$0x4] %vm2826_vm9, %v2823_v4  ;;  %v2793_v46 = vmax.f32 %v2777_v49, 0.0  ;;  %v2693_v62 = vpop.f32.mrb[9].mxu0 }
 0x192   : > { %2829 = vst.msk [vmem:[%s4823_s6 - $0x2] sm:$0x10] %vm2828_vm10, %v2823_v4  ;;  %v3533_v54 = vpop.f32.mrb[8].mxu1  ;;  %2838 = vst.msk [vmem:[%s4823_s6 + $0x2] sm:$0x10] %vm2828_vm10, %v2835_v30  ;;  %v2840_v48 = vmax.f32 %v2790_v12, %v2792_v16  ;;  %v2791_v50 = vmax.f32 %v2775_v58, 0.0 }
 0x193   : > { %2831 = vst.msk [vmem:[%s4823_s6 - $0x3] sm:$0x40] %vm2830_vm11, %v2823_v4  ;;  %2839 = vst.msk [vmem:[%s4823_s6 + $0x1] sm:$0x40] %vm2830_vm11, %v2835_v30  ;;  %v3621_v60 = vadd.f32 %v3605_v23, %v3533_v54  ;;  %v1601_v17 = vpop.f32.mrb[9].mxu1  ;;  %v3606_v29 = vpop.f32.mrb[10].mxu0 }
 0x194   : > { %2808 = vst.msk [vmem:[%s4804_s27 + $0x30] sm:$0xff] %vm525_vm3, %v2792_v16  ;;  %2806 = vst.msk [vmem:[%s4804_s27 + $0x20] sm:$0xff] %vm525_vm3, %v2790_v12  ;;  %v3622_v35 = vadd.f32 %v2693_v62, %v1601_v17  ;;  %v3534_v3 = vpop.f32.mrb[10].mxu1  ;;  %v2696_v5 = vpop.f32.mrb[11].mxu0  ;;  %v2843_v63 = vrot.slane %v2840_v48, 1  ;;  %v2841_v14 = vmax.f32 %v2791_v50, %v2793_v46 }
 0x195   : > { %2836 = vst.msk [vmem:[%s4823_s6 + $0x4] sm:$0x1] %vm2824_vm8, %v2835_v30  ;;  %v2757_v1 = vmul.f32 %v3621_v60, %v4789_v0  ;;  %v3623_v13 = vadd.f32 %v3606_v29, %v3534_v3  ;;  %v1604_v24 = vpop.f32.mrb[11].mxu1 }
 0x196   : > { %2837 = vst.msk [vmem:[%s4823_s6 + $0x3] sm:$0x4] %vm2826_vm9, %v2835_v30  ;;  %v2755_v32 = vmul.f32 %v3622_v35, %v4789_v0  ;;  %v3624_v8 = vadd.f32 %v2696_v5, %v1604_v24  ;;  %v2845_v27 = vmax.f32 %v2840_v48, %v2843_v63  ;;  %v2852_v34 = vrot.slane %v2841_v14, 1 }
 0x197   : > { %2809 = vst.msk [vmem:[%s4804_s27 + $0x38] sm:$0xff] %vm525_vm3, %v2793_v46  ;;  %2807 = vst.msk [vmem:[%s4804_s27 + $0x28] sm:$0xff] %vm525_vm3, %v2791_v50  ;;  %v2780_v9 = vadd.f32 %v4794_v2, %v2757_v1  ;;  %v2758_v61 = vmul.f32 %v3623_v13, %v4789_v0 }
 0x198   : > { %v2778_v6 = vadd.f32 %v4794_v2, %v2755_v32  ;;  %v2756_v42 = vmul.f32 %v3624_v8, %v4789_v0  ;;  %3341 = vst.msk [vmem:[%s4823_s6 + $0x8] sm:$0x1] %vm2824_vm8, %v2845_v27  ;;  %v2854_v22 = vmax.f32 %v2841_v14, %v2852_v34  ;;  %v3609_v25 = vpop.f32.mrb[12].mxu0 }
 0x199   : > { %3342 = vst.msk [vmem:[%s4823_s6 + $0x7] sm:$0x4] %vm2826_vm9, %v2845_v27  ;;  %v2796_v7 = vmax.f32 %v2780_v9, 0.0  ;;  %v2781_v33 = vadd.f32 %v4794_v2, %v2758_v61  ;;  %v2709_v57 = vpop.f32.mrb[13].mxu0 }
 0x19a   : > { %3343 = vst.msk [vmem:[%s4823_s6 + $0x6] sm:$0x10] %vm2828_vm10, %v2845_v27  ;;  %v2794_v36 = vmax.f32 %v2778_v6, 0.0  ;;  %v2779_v20 = vadd.f32 %v4794_v2, %v2756_v42  ;;  %v3537_v53 = vpop.f32.mrb[12].mxu1  ;;  %3347 = vst.msk [vmem:[%s4823_s6 + $0xa] sm:$0x10] %vm2828_vm10, %v2854_v22 }
 0x19b   : > { %3344 = vst.msk [vmem:[%s4823_s6 + $0x5] sm:$0x40] %vm2830_vm11, %v2845_v27  ;;  %3348 = vst.msk [vmem:[%s4823_s6 + $0x9] sm:$0x40] %vm2830_vm11, %v2854_v22  ;;  %v2797_v52 = vmax.f32 %v2781_v33, 0.0  ;;  %v3625_v21 = vadd.f32 %v3609_v25, %v3537_v53  ;;  %v1617_v31 = vpop.f32.mrb[13].mxu1 }
 0x19c   : > { %3345 = vst.msk [vmem:[%s4823_s6 + $0xc] sm:$0x1] %vm2824_vm8, %v2854_v22  ;;  %v3610_v39 = vpop.f32.mrb[14].mxu0  ;;  %v2859_v26 = vmax.f32 %v2794_v36, %v2796_v7  ;;  %v2795_v55 = vmax.f32 %v2779_v20, 0.0  ;;  %v3626_v19 = vadd.f32 %v2709_v57, %v1617_v31  ;;  %v3538_v10 = vpop.f32.mrb[14].mxu1 }
 0x19d   : > { %3346 = vst.msk [vmem:[%s4823_s6 + $0xb] sm:$0x4] %vm2826_vm9, %v2854_v22  ;;  %v2712_v38 = vpop.f32.mrb[15].mxu0  ;;  %v2761_v44 = vmul.f32 %v3625_v21, %v4789_v0  ;;  %v3627_v43 = vadd.f32 %v3610_v39, %v3538_v10  ;;  %v1620_v45 = vpop.f32.mrb[15].mxu1 }
 0x19e   : > { %2812 = vst.msk [vmem:[%s4804_s27 + $0x50] sm:$0xff] %vm525_vm3, %v2796_v7  ;;  %2810 = vst.msk [vmem:[%s4804_s27 + $0x40] sm:$0xff] %vm525_vm3, %v2794_v36  ;;  %v2862_v56 = vrot.slane %v2859_v26, 1  ;;  %v2860_v28 = vmax.f32 %v2795_v55, %v2797_v52  ;;  %v2759_v11 = vmul.f32 %v3626_v19, %v4789_v0  ;;  %v3628_v15 = vadd.f32 %v2712_v38, %v1620_v45 }
 0x19f   : > { %2813 = vst.msk [vmem:[%s4804_s27 + $0x58] sm:$0xff] %vm525_vm3, %v2797_v52  ;;  %2811 = vst.msk [vmem:[%s4804_s27 + $0x48] sm:$0xff] %vm525_vm3, %v2795_v55  ;;  %v2784_v41 = vadd.f32 %v4794_v2, %v2761_v44  ;;  %v2762_v40 = vmul.f32 %v3627_v43, %v4789_v0 }
 0x1a0   : > { %v2864_v59 = vmax.f32 %v2859_v26, %v2862_v56  ;;  %v2871_v18 = vrot.slane %v2860_v28, 1  ;;  %v2782_v4 = vadd.f32 %v4794_v2, %v2759_v11  ;;  %v2760_v47 = vmul.f32 %v3628_v15, %v4789_v0 }
 0x1a1   : > { %v2800_v51 = vmax.f32 %v2784_v41, 0.0  ;;  %v2785_v37 = vadd.f32 %v4794_v2, %v2762_v40 }
 0x1a2   : > { %3349 = vst.msk [vmem:[%s4823_s6 + $0x10] sm:$0x1] %vm2824_vm8, %v2864_v59  ;;  %v2873_v16 = vmax.f32 %v2860_v28, %v2871_v18  ;;  %v2798_v49 = vmax.f32 %v2782_v4, 0.0  ;;  %v2783_v30 = vadd.f32 %v4794_v2, %v2760_v47 }
 0x1a3   : > { %3350 = vst.msk [vmem:[%s4823_s6 + $0xf] sm:$0x4] %vm2826_vm9, %v2864_v59  ;;  %v2801_v0 = vmax.f32 %v2785_v37, 0.0 }
 0x1a4   : > { %3351 = vst.msk [vmem:[%s4823_s6 + $0xe] sm:$0x10] %vm2828_vm10, %v2864_v59  ;;  %3355 = vst.msk [vmem:[%s4823_s6 + $0x12] sm:$0x10] %vm2828_vm10, %v2873_v16  ;;  %v2878_v2 = vmax.f32 %v2798_v49, %v2800_v51  ;;  %v2799_v12 = vmax.f32 %v2783_v30, 0.0 }
 0x1a5   : > { %3352 = vst.msk [vmem:[%s4823_s6 + $0xd] sm:$0x40] %vm2830_vm11, %v2864_v59  ;;  %3356 = vst.msk [vmem:[%s4823_s6 + $0x11] sm:$0x40] %vm2830_vm11, %v2873_v16 }
 0x1a6   : > { %2816 = vst.msk [vmem:[%s4804_s27 + $0x70] sm:$0xff] %vm525_vm3, %v2800_v51  ;;  %2814 = vst.msk [vmem:[%s4804_s27 + $0x60] sm:$0xff] %vm525_vm3, %v2798_v49  ;;  %v2881_v58 = vrot.slane %v2878_v2, 1  ;;  %v2879_v23 = vmax.f32 %v2799_v12, %v2801_v0 }
 0x1a7   : > { %3353 = vst.msk [vmem:[%s4823_s6 + $0x14] sm:$0x1] %vm2824_vm8, %v2873_v16 }
 0x1a8   : > { %3354 = vst.msk [vmem:[%s4823_s6 + $0x13] sm:$0x4] %vm2826_vm9, %v2873_v16  ;;  %v2883_v46 = vmax.f32 %v2878_v2, %v2881_v58  ;;  %v2890_v54 = vrot.slane %v2879_v23, 1 }
 0x1a9   : > { %2817 = vst.msk [vmem:[%s4804_s27 + $0x78] sm:$0xff] %vm525_vm3, %v2801_v0  ;;  %2815 = vst.msk [vmem:[%s4804_s27 + $0x68] sm:$0xff] %vm525_vm3, %v2799_v12 }
 0x1aa   : > { %3357 = vst.msk [vmem:[%s4823_s6 + $0x18] sm:$0x1] %vm2824_vm8, %v2883_v46  ;;  %v2892_v62 = vmax.f32 %v2879_v23, %v2890_v54 }
 0x1ab   : > { %3358 = vst.msk [vmem:[%s4823_s6 + $0x17] sm:$0x4] %vm2826_vm9, %v2883_v46 }
 0x1ac   : > { %3359 = vst.msk [vmem:[%s4823_s6 + $0x16] sm:$0x10] %vm2828_vm10, %v2883_v46  ;;  %3363 = vst.msk [vmem:[%s4823_s6 + $0x1a] sm:$0x10] %vm2828_vm10, %v2892_v62 }
 0x1ad   : > { %3360 = vst.msk [vmem:[%s4823_s6 + $0x15] sm:$0x40] %vm2830_vm11, %v2883_v46  ;;  %3364 = vst.msk [vmem:[%s4823_s6 + $0x19] sm:$0x40] %vm2830_vm11, %v2892_v62 }
 0x1ae   : > { %3361 = vst.msk [vmem:[%s4823_s6 + $0x1c] sm:$0x1] %vm2824_vm8, %v2892_v62 }
 0x1af   : > { %3362 = vst.msk [vmem:[%s4823_s6 + $0x1b] sm:$0x4] %vm2826_vm9, %v2892_v62 }
 0x1b0 PF: > { %s16_s22 = sadd.s32 1, %s3855_s22   ;;  %s4978_s18 = smov %s3847_s20 }
 0x1b1   : > { %p13_p8 = scmp.ge.s32.totalorder %s16_s22, 6   ;;  %s4979_s19 = smov %s3851_s21 }
 0x1b2   : > { %s4980_s20 = smov %s4983_s23  ;;  %s4981_s21 = smov %s4987_s24 }
 0x1b3   :  { %15 = sbr.rel (!%p13_p8) target bundleno = 3 (0x3), region = 92 }

</bundles_post_ra>
